<compile_context>
chip_gen: v7x
topology: tpu7x:2x2x1
jax: 0.10.0
libtpu: 0.0.40
codegen_flags: <defaults>
</compile_context>

<pallas_src>
import functools
import math

import jax
import jax.numpy as jnp
from jax import lax
from jax.experimental import pallas as pl
from jax.experimental.pallas import tpu as pltpu

_SELU_ALPHA = 1.6732632423543772
_SELU_SCALE = 1.0507009873554805


def _selu(v):
    return _SELU_SCALE * jnp.where(v > 0, v, _SELU_ALPHA * (jnp.exp(v) - 1.0))


def _layer_norm(v, gamma, beta, eps):
    mu = jnp.mean(v, axis=-1, keepdims=True)
    c = v - mu
    var = jnp.mean(c * c, axis=-1, keepdims=True)
    return c * lax.rsqrt(var + eps) * gamma + beta


def _round_up(x, m):
    return ((x + m - 1) // m) * m


# --------------------------------------------------------------------------------------
# Kernel 1: LModel (pre-LN transformer encoder block), `block_b` batch rows per grid step.
# --------------------------------------------------------------------------------------
def _lmodel_kernel(x_ref,
                   g1_ref, be1_ref,
                   wqkv_ref, bqkv_ref, wo_ref, bo_ref,
                   g2_ref, be2_ref,
                   w1_ref, b1_ref, w2_ref, b2_ref,
                   out_ref, attn_ref,
                   *, num_heads, eps, matmul_dtype):
    TB, L, D = x_ref.shape
    R = TB * L
    hd = D // num_heads
    scale = 1.0 / math.sqrt(hd)
    md = matmul_dtype                      # bf16 on v6e/v7x doubles MXU throughput

    x = x_ref[...].astype(jnp.float32).reshape(R, D)

    # ---- self-attention block (pre-LN) --------------------------------------------
    h = _layer_norm(x, g1_ref[...], be1_ref[...], eps)
    # One fused QKV matmul over all TB*L rows (full-D MXU contraction).
    qkv = jnp.dot(h.astype(md), wqkv_ref[...].astype(md),
                  preferred_element_type=jnp.float32) + bqkv_ref[...]

    ctx_rows = []
    for b in range(TB):
        r0 = b * L
        attn_acc = jnp.zeros((L, L), jnp.float32)
        head_ctx = []
        for hh in range(num_heads):
            q_h = qkv[r0:r0 + L, hh * hd:(hh + 1) * hd]
            k_h = qkv[r0:r0 + L, D + hh * hd:D + (hh + 1) * hd]
            v_h = qkv[r0:r0 + L, 2 * D + hh * hd:2 * D + (hh + 1) * hd]
            # q @ k^T without materializing a transpose: contract dim 1 of both.
            s = lax.dot_general(q_h.astype(md), k_h.astype(md),
                                (((1,), (1,)), ((), ())),
                                preferred_element_type=jnp.float32) * scale
            m = jnp.max(s, axis=-1, keepdims=True)
            e = jnp.exp(s - m)
            # EUP approximate reciprocal: the divide goes to an otherwise idle slot.
            p = e * pl.reciprocal(jnp.sum(e, axis=-1, keepdims=True), approx=True)
            attn_acc = attn_acc + p
            head_ctx.append(jnp.dot(p.astype(md), v_h.astype(md),
                                    preferred_element_type=jnp.float32))   # (L, hd)
        attn_ref[b] = (attn_acc * (1.0 / num_heads)).astype(attn_ref.dtype)
        ctx_rows.append(jnp.concatenate(head_ctx, axis=-1))                # (L, D)

    # Single full-D output projection for ALL rows (one MXU push instead of TB*H).
    ctx = jnp.concatenate(ctx_rows, axis=0)                                # (R, D)
    sa = jnp.dot(ctx.astype(md), wo_ref[...].astype(md),
                 preferred_element_type=jnp.float32) + bo_ref[...]
    x2 = x + sa                                      # dropout1: identity (eval)

    # ---- feed-forward block (pre-LN, SELU) ------------------------------------------
    h2 = _layer_norm(x2, g2_ref[...], be2_ref[...], eps)
    f = jnp.dot(h2.astype(md), w1_ref[...].astype(md),
                preferred_element_type=jnp.float32) + b1_ref[...]
    f = _selu(f)                                     # dropout: identity (eval)
    f = jnp.dot(f.astype(md), w2_ref[...].astype(md),
                preferred_element_type=jnp.float32) + b2_ref[...]
    out_ref[...] = (x2 + f).astype(out_ref.dtype).reshape(TB, L, D)


def _choose_block_b(batch, seq, dim, *, act_budget_bytes=4 << 20, max_block=8):
    """Largest batch tile that fits the activation budget, preferring an EVEN number of
    grid steps so both v7x TensorCores stay busy (no effect on v5e/v6e)."""
    per_row = 4 * seq * (2 * dim + seq) * 2          # double-buffered in+out+attn, f32
    cap = max(1, min(max_block, act_budget_bytes // max(per_row, 1)))
    divisors = [t for t in range(1, batch + 1) if batch % t == 0 and t <= cap]
    even = [t for t in divisors if (batch // t) % 2 == 0]
    return max(even) if even else max(divisors)


def lmodel_forward(text_src, params, *, num_heads, eps=1e-5, block_b=None,
                   matmul_dtype=jnp.float32):
    """text_src: (B, L, D). params: tuple from prepare_lmodel_params (pre-transposed)."""
    B, L, D = text_src.shape
    assert D % num_heads == 0
    if block_b is None:
        block_b = _choose_block_b(B, L, D)
    assert B % block_b == 0
    kernel = functools.partial(_lmodel_kernel, num_heads=num_heads, eps=eps,
                               matmul_dtype=matmul_dtype)
    # Weights/biases: full blocks with a constant index_map -> fetched once, VMEM-resident.
    # (On v7x, pipeline_mode=pl.Buffered(1) on these specs halves their VMEM residency.)
    param_specs = [pl.BlockSpec(p.shape, lambda b: (0, 0)) for p in params]
    param_bytes = sum(int(p.size) * p.dtype.itemsize for p in params)
    cost = pl.CostEstimate(
        flops=2 * B * L * D * (6 * D + 2 * L),
        transcendentals=B * (num_heads * L * L + L * D),
        bytes_accessed=4 * (2 * B * L * D + B * L * L) + param_bytes)
    return pl.pallas_call(
        kernel,
        out_shape=(jax.ShapeDtypeStruct((B, L, D), text_src.dtype),
                   jax.ShapeDtypeStruct((B, L, L), jnp.float32)),
        grid=(B // block_b,),
        in_specs=[pl.BlockSpec((block_b, L, D), lambda b: (b, 0, 0))] + param_specs,
        out_specs=(pl.BlockSpec((block_b, L, D), lambda b: (b, 0, 0)),
                   pl.BlockSpec((block_b, L, L), lambda b: (b, 0, 0))),
        compiler_params=pltpu.CompilerParams(dimension_semantics=("parallel",)),
        cost_estimate=cost,
    )(text_src, *params)


# --------------------------------------------------------------------------------------
# Kernel 2: MultiAttn — sequential update of all_user_feature (functional output copy).
# --------------------------------------------------------------------------------------
def _multiattn_kernel(nbr_ref,                              # SMEM (B, K) int32 (prefetch)
                      feat_in_hbm,                          # ANY (N, D)
                      wqkv_ref, bqkv_ref, wo_ref, bo_ref,   # VMEM-resident params
                      feat_out_hbm,                         # ANY (N, D) output
                      gather_buf, row_buf, sems,            # scratch
                      *, num_heads, num_neighbors):
    b = pl.program_id(0)
    last = pl.num_programs(0) - 1
    K = num_neighbors
    Kpad, D = gather_buf.shape
    hd = D // num_heads
    scale = 1.0 / math.sqrt(hd)
    TABLE_SEM, WB_SEM = K, K + 1

    # Read every SMEM scalar needed this step BEFORE any DMA wait
    # (.wait() breaks SMEM sst->sld forwarding).
    idxs = [nbr_ref[b, k] for k in range(K)]
    dst = idxs[0]
    prev_dst = nbr_ref[jnp.maximum(b - 1, 0), 0]

    # Step 0: materialize the functional output = full copy of the feature table.
    # All later reads AND writes go through feat_out_hbm, so earlier rows' updates are
    # observed by later rows (matches the sequential PyTorch loop).
    @pl.when(b == 0)
    def _():
        cp = pltpu.make_async_copy(feat_in_hbm, feat_out_hbm, sems.at[TABLE_SEM])
        cp.start()
        cp.wait()

    # Deferred write-back: only now (right before this step's gathers could read that
    # row) wait for the PREVIOUS step's row store.
    @pl.when(b > 0)
    def _():
        pltpu.make_async_copy(row_buf, feat_out_hbm.at[pl.ds(prev_dst, 1)],
                              sems.at[WB_SEM]).wait()

    # Keep the padded sublanes defined (they are masked out of the softmax below).
    if Kpad > K:
        gather_buf[pl.ds(K, Kpad - K), :] = jnp.zeros((Kpad - K, D), gather_buf.dtype)

    # Gather the K neighbour rows from the (already-updated) feature table.
    for k in range(K):
        pltpu.make_async_copy(feat_out_hbm.at[pl.ds(idxs[k], 1)],
                              gather_buf.at[pl.ds(k, 1)], sems.at[k]).start()
    for k in range(K):
        pltpu.make_async_copy(feat_out_hbm.at[pl.ds(idxs[k], 1)],
                              gather_buf.at[pl.ds(k, 1)], sems.at[k]).wait()

    x = gather_buf[...].astype(jnp.float32)                 # (Kpad, D)
    qkv = jnp.dot(x, wqkv_ref[...], preferred_element_type=jnp.float32) + bqkv_ref[...]

    valid = lax.broadcasted_iota(jnp.int32, (1, Kpad), 1) < K
    head_ctx = []
    for hh in range(num_heads):
        q_h = qkv[0:1, hh * hd:(hh + 1) * hd]               # only query position 0 is kept
        k_h = qkv[:, D + hh * hd:D + (hh + 1) * hd]
        v_h = qkv[:, 2 * D + hh * hd:2 * D + (hh + 1) * hd]
        s = lax.dot_general(q_h, k_h, (((1,), (1,)), ((), ())),
                            preferred_element_type=jnp.float32) * scale     # (1, Kpad)
        s = jnp.where(valid, s, -1e30)                      # mask padded keys
        m = jnp.max(s, axis=-1, keepdims=True)
        e = jnp.exp(s - m)
        p = e * pl.reciprocal(jnp.sum(e, axis=-1, keepdims=True), approx=True)
        head_ctx.append(jnp.dot(p, v_h, preferred_element_type=jnp.float32))  # (1, hd)
    ctx = jnp.concatenate(head_ctx, axis=-1)                                   # (1, D)
    row = jnp.dot(ctx, wo_ref[...], preferred_element_type=jnp.float32) + bo_ref[...]
    row_buf[...] = row.astype(row_buf.dtype)

    # Start the in-place row write-back; do NOT block here — the next step (or the
    # final-step guard below) waits for it.
    wb = pltpu.make_async_copy(row_buf, feat_out_hbm.at[pl.ds(dst, 1)], sems.at[WB_SEM])
    wb.start()

    @pl.when(b == last)
    def _():
        wb.wait()


def multiattn_forward(user_neighbor_index, all_user_feature, params, *, num_heads):
    """user_neighbor_index: (B, K) int32, column 0 is the target user index."""
    N, D = all_user_feature.shape
    B, K = user_neighbor_index.shape
    assert D % num_heads == 0
    Kpad = _round_up(K, 8)                      # full sublanes for the gather buffer
    kernel = functools.partial(_multiattn_kernel, num_heads=num_heads, num_neighbors=K)
    # index_maps receive the scalar-prefetch ref as a trailing positional arg.
    param_specs = [pl.BlockSpec(p.shape, lambda b, nbr: (0, 0)) for p in params]
    grid_spec = pltpu.PrefetchScalarGridSpec(
        num_scalar_prefetch=1,
        grid=(B,),
        in_specs=[pl.BlockSpec(memory_space=pl.ANY)] + param_specs,
        out_specs=pl.BlockSpec(memory_space=pl.ANY),
        scratch_shapes=[pltpu.VMEM((Kpad, D), jnp.float32),
                        pltpu.VMEM((1, D), all_user_feature.dtype),
                        pltpu.SemaphoreType.DMA((K + 2,))],
    )
    return pl.pallas_call(
        kernel,
        grid_spec=grid_spec,
        out_shape=jax.ShapeDtypeStruct((N, D), all_user_feature.dtype),
        compiler_params=pltpu.CompilerParams(dimension_semantics=("arbitrary",),
                                             has_side_effects=True),
    )(user_neighbor_index, all_user_feature, *params)


# --------------------------------------------------------------------------------------
# Parameter preparation: transpose torch-layout weights ONCE (outside the hot path).
# --------------------------------------------------------------------------------------
def prepare_lmodel_params(raw):
    t = lambda w: jnp.asarray(w).T             # (out, in) -> (in, out)
    r = lambda v: jnp.asarray(v).reshape(1, -1)
    return (r(raw['g1']), r(raw['be1']),
            t(raw['in_w']), r(raw['in_b']),
            t(raw['ow']), r(raw['ob']),
            r(raw['g2']), r(raw['be2']),
            t(raw['w1']), r(raw['b1']),
            t(raw['w2']), r(raw['b2']))


def prepare_mha_params(raw):
    t = lambda w: jnp.asarray(w).T
    r = lambda v: jnp.asarray(v).reshape(1, -1)
    return (t(raw['in_w']), r(raw['in_b']), t(raw['ow']), r(raw['ob']))


# --------------------------------------------------------------------------------------
# RespectiveLayer.forward
# --------------------------------------------------------------------------------------
def respective_layer_forward(user_text, user_neighbor_index, all_user_feature,
                             edge_index, lmodel_params, multiattn_params,
                             *, text_num_heads, graph_num_heads):
    del edge_index  # TODO(synk): GCNConv/NeighborSampler step skipped (class not provided).
    text, attention = lmodel_forward(user_text, lmodel_params, num_heads=text_num_heads)
    all_user_feature = multiattn_forward(user_neighbor_index, all_user_feature,
                                         multiattn_params, num_heads=graph_num_heads)
    # TODO(synk): FixedPooling(fixed_size=attention_dim) is not defined in the spec;
    # the head-averaged attention weights are returned un-pooled.
    attention_graph = attention
    return text, all_user_feature, attention_graph


# --------------------------------------------------------------------------------------
# Pure-JAX reference (torch-layout weights) for correctness checking.
# --------------------------------------------------------------------------------------
def _ref_layer_norm(x, g, b, eps=1e-5):
    mu = x.mean(-1, keepdims=True)
    var = ((x - mu) ** 2).mean(-1, keepdims=True)
    return (x - mu) / jnp.sqrt(var + eps) * g + b


def _ref_mha(q_in, kv_in, in_w, in_b, ow, ob, H):
    Lq, D = q_in.shape
    Lk = kv_in.shape[0]
    hd = D // H
    wq, wk, wv = in_w[:D], in_w[D:2 * D], in_w[2 * D:]
    bq, bk, bv = in_b[:D], in_b[D:2 * D], in_b[2 * D:]
    q = (q_in @ wq.T + bq).reshape(Lq, H, hd).transpose(1, 0, 2)
    k = (kv_in @ wk.T + bk).reshape(Lk, H, hd).transpose(1, 0, 2)
    v = (kv_in @ wv.T + bv).reshape(Lk, H, hd).transpose(1, 0, 2)
    s = jnp.einsum('hld,hmd->hlm', q, k) / jnp.sqrt(jnp.float32(hd))
    p = jax.nn.softmax(s, axis=-1)
    ctx = jnp.einsum('hlm,hmd->hld', p, v).transpose(1, 0, 2).reshape(Lq, D)
    return ctx @ ow.T + ob, p.mean(0)


def _ref_lmodel(x, raw, H, eps=1e-5):
    h = _ref_layer_norm(x, raw['g1'], raw['be1'], eps)
    sa, attn = _ref_mha(h, h, raw['in_w'], raw['in_b'], raw['ow'], raw['ob'], H)
    x2 = x + sa
    h2 = _ref_layer_norm(x2, raw['g2'], raw['be2'], eps)
    f = jax.nn.selu(h2 @ raw['w1'].T + raw['b1']) @ raw['w2'].T + raw['b2']
    return x2 + f, attn


def _ref_multiattn(nbr, feat, raw, H):
    feat = jnp.asarray(feat)
    for b in range(nbr.shape[0]):
        idx = nbr[b]
        x = feat[idx]
        out, _ = _ref_mha(x, x, raw['in_w'], raw['in_b'], raw['ow'], raw['ob'], H)
        feat = feat.at[idx[0]].set(out[0])
    return feat


if __name__ == "__main__":
    B, L, D, H = 4, 8, 32, 4            # batch, seq, embed_dim, heads (small demo shapes)
    N_USERS, K = 16, 4                   # users, neighbours per user

    key = jax.random.PRNGKey(0)
    ks = jax.random.split(key, 4)

    user_text = jax.random.normal(ks[0], (B, L, D), jnp.float32)
    all_user_feature = jax.random.normal(ks[1], (N_USERS, D), jnp.float32)
    # Column 0 = target user index. Later rows re-read users updated by earlier rows to
    # exercise the sequential in-place-update semantics of MultiAttn.
    user_neighbor_index = jnp.array([[3, 1, 7, 2],
                                     [9, 3, 12, 5],
                                     [7, 9, 3, 0],
                                     [2, 7, 14, 9]], dtype=jnp.int32)
    edge_index = jnp.zeros((2, 1), jnp.int32)   # unused (GCN step skipped)

    def uni(k, shape, fan_in):
        b = 1.0 / math.sqrt(fan_in)
        return jax.random.uniform(k, shape, jnp.float32, -b, b)

    kk = jax.random.split(ks[2], 12)
    lm_raw = dict(
        g1=1.0 + 0.1 * jax.random.normal(kk[0], (D,), jnp.float32),
        be1=0.1 * jax.random.normal(kk[1], (D,), jnp.float32),
        in_w=uni(kk[2], (3 * D, D), D), in_b=uni(kk[3], (3 * D,), D),
        ow=uni(kk[4], (D, D), D), ob=uni(kk[5], (D,), D),
        g2=1.0 + 0.1 * jax.random.normal(kk[6], (D,), jnp.float32),
        be2=0.1 * jax.random.normal(kk[7], (D,), jnp.float32),
        w1=uni(kk[8], (D, D), D), b1=uni(kk[9], (D,), D),
        w2=uni(kk[10], (D, D), D), b2=uni(kk[11], (D,), D),
    )
    gk = jax.random.split(ks[3], 4)
    ga_raw = dict(in_w=uni(gk[0], (3 * D, D), D), in_b=uni(gk[1], (3 * D,), D),
                  ow=uni(gk[2], (D, D), D), ob=uni(gk[3], (D,), D))

    # Transposed once, outside the jitted forward (no per-call transpose HLOs).
    lm_params = prepare_lmodel_params(lm_raw)
    ga_params = prepare_mha_params(ga_raw)

    fwd = jax.jit(functools.partial(respective_layer_forward,
                                    text_num_heads=H, graph_num_heads=H))
    text_out, feat_out, attn_graph = fwd(user_text, user_neighbor_index,
                                         all_user_feature, edge_index,
                                         lm_params, ga_params)
    jax.block_until_ready((text_out, feat_out, attn_graph))

    # Reference check (tolerance accounts for the EUP approximate reciprocal on HW).
    ref_text, ref_attn = jax.vmap(lambda xb: _ref_lmodel(xb, lm_raw, H))(user_text)
    ref_feat = _ref_multiattn(user_neighbor_index, all_user_feature, ga_raw, H)

    assert jnp.allclose(text_out, ref_text, atol=1e-3, rtol=1e-3), "LModel output mismatch"
    assert jnp.allclose(attn_graph, ref_attn, atol=1e-3, rtol=1e-3), "attention mismatch"
    assert jnp.allclose(feat_out, ref_feat, atol=1e-3, rtol=1e-3), "MultiAttn output mismatch"

    print("KERNEL_OK")
</pallas_src>

<mosaic_0001>
module attributes {stable_mosaic.version = 11 : i64} {
  func.func @_multiattn_kernel(%arg0: i32, %arg1: memref<4x4xi32, #tpu.memory_space<smem>>, %arg2: memref<16x32xf32, #tpu.memory_space<any>>, %arg3: memref<32x96xf32, #tpu.memory_space<vmem>>, %arg4: memref<1x96xf32, #tpu.memory_space<vmem>>, %arg5: memref<32x32xf32, #tpu.memory_space<vmem>>, %arg6: memref<1x32xf32, #tpu.memory_space<vmem>>, %arg7: memref<16x32xf32, #tpu.memory_space<any>>, %arg8: memref<8x32xf32, #tpu.memory_space<vmem>>, %arg9: memref<1x32xf32, #tpu.memory_space<vmem>>, %arg10: memref<6x!tpu.dma_semaphore, #tpu.memory_space<semaphore_mem>>) attributes {dimension_semantics = [#tpu.dimension_semantics<arbitrary>], iteration_bounds = array<i64: 4>, scalar_prefetch = 1 : i64, scratch_operands = 3 : i64, tpu.core_type = #tpu.core_type<tc>, window_params = [{}, {pipeline_mode = #tpu.pipeline_mode<synchronous>, transform_indices = @transform_1, window_bounds = array<i64: 32, 96>}, {pipeline_mode = #tpu.pipeline_mode<synchronous>, transform_indices = @transform_2, window_bounds = array<i64: 1, 96>}, {pipeline_mode = #tpu.pipeline_mode<synchronous>, transform_indices = @transform_3, window_bounds = array<i64: 32, 32>}, {pipeline_mode = #tpu.pipeline_mode<synchronous>, transform_indices = @transform_4, window_bounds = array<i64: 1, 32>}, {}]} {
    %0 = arith.index_cast %arg0 : i32 to index
    %c0 = arith.constant 0 : index
    %1 = memref.load %arg1[%0, %c0] : memref<4x4xi32, #tpu.memory_space<smem>>
    %2 = arith.index_cast %arg0 : i32 to index
    %c1 = arith.constant 1 : index
    %3 = memref.load %arg1[%2, %c1] : memref<4x4xi32, #tpu.memory_space<smem>>
    %4 = arith.index_cast %arg0 : i32 to index
    %c2 = arith.constant 2 : index
    %5 = memref.load %arg1[%4, %c2] : memref<4x4xi32, #tpu.memory_space<smem>>
    %6 = arith.index_cast %arg0 : i32 to index
    %c3 = arith.constant 3 : index
    %7 = memref.load %arg1[%6, %c3] : memref<4x4xi32, #tpu.memory_space<smem>>
    %c1_i32 = arith.constant 1 : i32
    %8 = arith.subi %arg0, %c1_i32 : i32
    %c0_i32 = arith.constant 0 : i32
    %9 = arith.maxsi %8, %c0_i32 : i32
    %10 = arith.index_cast %9 : i32 to index
    %c0_0 = arith.constant 0 : index
    %11 = memref.load %arg1[%10, %c0_0] : memref<4x4xi32, #tpu.memory_space<smem>>
    %c0_i32_1 = arith.constant 0 : i32
    %12 = arith.cmpi eq, %arg0, %c0_i32_1 : i32
    %13 = arith.extui %12 : i1 to i32
    %c0_i32_2 = arith.constant 0 : i32
    %14 = arith.cmpi ne, %13, %c0_i32_2 : i32
    scf.if %14 {
      %c4_i32_78 = arith.constant 4 : i32
      %149 = tpu.memref_slice %arg10[%c4_i32_78] : memref<6x!tpu.dma_semaphore, #tpu.memory_space<semaphore_mem>> -> memref<1x!tpu.dma_semaphore, #tpu.memory_space<semaphore_mem>>
      %150 = tpu.memref_squeeze %149 : memref<1x!tpu.dma_semaphore, #tpu.memory_space<semaphore_mem>> -> memref<!tpu.dma_semaphore, #tpu.memory_space<semaphore_mem>>
      tpu.enqueue_dma source(%arg2 : memref<16x32xf32, #tpu.memory_space<any>>) target(%arg7 : memref<16x32xf32, #tpu.memory_space<any>>) target_semaphore(%150 : memref<!tpu.dma_semaphore, #tpu.memory_space<semaphore_mem>>)
      %c4_i32_79 = arith.constant 4 : i32
      %151 = tpu.memref_slice %arg10[%c4_i32_79] : memref<6x!tpu.dma_semaphore, #tpu.memory_space<semaphore_mem>> -> memref<1x!tpu.dma_semaphore, #tpu.memory_space<semaphore_mem>>
      %152 = tpu.memref_squeeze %151 : memref<1x!tpu.dma_semaphore, #tpu.memory_space<semaphore_mem>> -> memref<!tpu.dma_semaphore, #tpu.memory_space<semaphore_mem>>
      tpu.wait_dma2 semaphore(%152 : memref<!tpu.dma_semaphore, #tpu.memory_space<semaphore_mem>>) src(%arg2 : memref<16x32xf32, #tpu.memory_space<any>>) dst(%arg7 : memref<16x32xf32, #tpu.memory_space<any>>)
    } else {
    }
    %c0_i32_3 = arith.constant 0 : i32
    %15 = arith.cmpi sgt, %arg0, %c0_i32_3 : i32
    %16 = arith.extui %15 : i1 to i32
    %c0_i32_4 = arith.constant 0 : i32
    %17 = arith.cmpi ne, %16, %c0_i32_4 : i32
    scf.if %17 {
      %c5_i32_78 = arith.constant 5 : i32
      %c0_i32_79 = arith.constant 0 : i32
      %149 = tpu.memref_slice %arg7[%11, %c0_i32_79] : memref<16x32xf32, #tpu.memory_space<any>> -> memref<1x32xf32, #tpu.memory_space<any>>
      %150 = tpu.memref_slice %arg10[%c5_i32_78] : memref<6x!tpu.dma_semaphore, #tpu.memory_space<semaphore_mem>> -> memref<1x!tpu.dma_semaphore, #tpu.memory_space<semaphore_mem>>
      %151 = tpu.memref_squeeze %150 : memref<1x!tpu.dma_semaphore, #tpu.memory_space<semaphore_mem>> -> memref<!tpu.dma_semaphore, #tpu.memory_space<semaphore_mem>>
      tpu.wait_dma2 semaphore(%151 : memref<!tpu.dma_semaphore, #tpu.memory_space<semaphore_mem>>) src(%arg9 : memref<1x32xf32, #tpu.memory_space<vmem>>) dst(%149 : memref<1x32xf32, #tpu.memory_space<any>>)
    } else {
    }
    %cst = arith.constant 0.000000e+00 : f32
    %18 = vector.broadcast %cst : f32 to vector<4x32xf32>
    %c4 = arith.constant 4 : index
    %c0_5 = arith.constant 0 : index
    %19 = vector.load %arg8[%c4, %c0_5] : memref<8x32xf32, #tpu.memory_space<vmem>>, vector<4x32xf32>
    tpu.vector_store %arg8[%c4, %c0_5], %18 {strides = array<i32>} : memref<8x32xf32, #tpu.memory_space<vmem>>, vector<4x32xf32>,
    %c0_i32_6 = arith.constant 0 : i32
    %c0_i32_7 = arith.constant 0 : i32
    %20 = tpu.memref_slice %arg7[%1, %c0_i32_7] : memref<16x32xf32, #tpu.memory_space<any>> -> memref<1x32xf32, #tpu.memory_space<any>>
    %c0_i32_8 = arith.constant 0 : i32
    %c0_i32_9 = arith.constant 0 : i32
    %21 = tpu.memref_slice %arg8[%c0_i32_8, %c0_i32_9] : memref<8x32xf32, #tpu.memory_space<vmem>> -> memref<1x32xf32, #tpu.memory_space<vmem>>
    %22 = tpu.memref_slice %arg10[%c0_i32_6] : memref<6x!tpu.dma_semaphore, #tpu.memory_space<semaphore_mem>> -> memref<1x!tpu.dma_semaphore, #tpu.memory_space<semaphore_mem>>
    %23 = tpu.memref_squeeze %22 : memref<1x!tpu.dma_semaphore, #tpu.memory_space<semaphore_mem>> -> memref<!tpu.dma_semaphore, #tpu.memory_space<semaphore_mem>>
    tpu.enqueue_dma source(%20 : memref<1x32xf32, #tpu.memory_space<any>>) target(%21 : memref<1x32xf32, #tpu.memory_space<vmem>>) target_semaphore(%23 : memref<!tpu.dma_semaphore, #tpu.memory_space<semaphore_mem>>)
    %c1_i32_10 = arith.constant 1 : i32
    %c0_i32_11 = arith.constant 0 : i32
    %24 = tpu.memref_slice %arg7[%3, %c0_i32_11] : memref<16x32xf32, #tpu.memory_space<any>> -> memref<1x32xf32, #tpu.memory_space<any>>
    %c1_i32_12 = arith.constant 1 : i32
    %c0_i32_13 = arith.constant 0 : i32
    %25 = tpu.memref_slice %arg8[%c1_i32_12, %c0_i32_13] : memref<8x32xf32, #tpu.memory_space<vmem>> -> memref<1x32xf32, #tpu.memory_space<vmem>>
    %26 = tpu.memref_slice %arg10[%c1_i32_10] : memref<6x!tpu.dma_semaphore, #tpu.memory_space<semaphore_mem>> -> memref<1x!tpu.dma_semaphore, #tpu.memory_space<semaphore_mem>>
    %27 = tpu.memref_squeeze %26 : memref<1x!tpu.dma_semaphore, #tpu.memory_space<semaphore_mem>> -> memref<!tpu.dma_semaphore, #tpu.memory_space<semaphore_mem>>
    tpu.enqueue_dma source(%24 : memref<1x32xf32, #tpu.memory_space<any>>) target(%25 : memref<1x32xf32, #tpu.memory_space<vmem>>) target_semaphore(%27 : memref<!tpu.dma_semaphore, #tpu.memory_space<semaphore_mem>>)
    %c2_i32 = arith.constant 2 : i32
    %c0_i32_14 = arith.constant 0 : i32
    %28 = tpu.memref_slice %arg7[%5, %c0_i32_14] : memref<16x32xf32, #tpu.memory_space<any>> -> memref<1x32xf32, #tpu.memory_space<any>>
    %c2_i32_15 = arith.constant 2 : i32
    %c0_i32_16 = arith.constant 0 : i32
    %29 = tpu.memref_slice %arg8[%c2_i32_15, %c0_i32_16] : memref<8x32xf32, #tpu.memory_space<vmem>> -> memref<1x32xf32, #tpu.memory_space<vmem>>
    %30 = tpu.memref_slice %arg10[%c2_i32] : memref<6x!tpu.dma_semaphore, #tpu.memory_space<semaphore_mem>> -> memref<1x!tpu.dma_semaphore, #tpu.memory_space<semaphore_mem>>
    %31 = tpu.memref_squeeze %30 : memref<1x!tpu.dma_semaphore, #tpu.memory_space<semaphore_mem>> -> memref<!tpu.dma_semaphore, #tpu.memory_space<semaphore_mem>>
    tpu.enqueue_dma source(%28 : memref<1x32xf32, #tpu.memory_space<any>>) target(%29 : memref<1x32xf32, #tpu.memory_space<vmem>>) target_semaphore(%31 : memref<!tpu.dma_semaphore, #tpu.memory_space<semaphore_mem>>)
    %c3_i32 = arith.constant 3 : i32
    %c0_i32_17 = arith.constant 0 : i32
    %32 = tpu.memref_slice %arg7[%7, %c0_i32_17] : memref<16x32xf32, #tpu.memory_space<any>> -> memref<1x32xf32, #tpu.memory_space<any>>
    %c3_i32_18 = arith.constant 3 : i32
    %c0_i32_19 = arith.constant 0 : i32
    %33 = tpu.memref_slice %arg8[%c3_i32_18, %c0_i32_19] : memref<8x32xf32, #tpu.memory_space<vmem>> -> memref<1x32xf32, #tpu.memory_space<vmem>>
    %34 = tpu.memref_slice %arg10[%c3_i32] : memref<6x!tpu.dma_semaphore, #tpu.memory_space<semaphore_mem>> -> memref<1x!tpu.dma_semaphore, #tpu.memory_space<semaphore_mem>>
    %35 = tpu.memref_squeeze %34 : memref<1x!tpu.dma_semaphore, #tpu.memory_space<semaphore_mem>> -> memref<!tpu.dma_semaphore, #tpu.memory_space<semaphore_mem>>
    tpu.enqueue_dma source(%32 : memref<1x32xf32, #tpu.memory_space<any>>) target(%33 : memref<1x32xf32, #tpu.memory_space<vmem>>) target_semaphore(%35 : memref<!tpu.dma_semaphore, #tpu.memory_space<semaphore_mem>>)
    %c0_i32_20 = arith.constant 0 : i32
    %c0_i32_21 = arith.constant 0 : i32
    %36 = tpu.memref_slice %arg7[%1, %c0_i32_21] : memref<16x32xf32, #tpu.memory_space<any>> -> memref<1x32xf32, #tpu.memory_space<any>>
    %c0_i32_22 = arith.constant 0 : i32
    %c0_i32_23 = arith.constant 0 : i32
    %37 = tpu.memref_slice %arg8[%c0_i32_22, %c0_i32_23] : memref<8x32xf32, #tpu.memory_space<vmem>> -> memref<1x32xf32, #tpu.memory_space<vmem>>
    %38 = tpu.memref_slice %arg10[%c0_i32_20] : memref<6x!tpu.dma_semaphore, #tpu.memory_space<semaphore_mem>> -> memref<1x!tpu.dma_semaphore, #tpu.memory_space<semaphore_mem>>
    %39 = tpu.memref_squeeze %38 : memref<1x!tpu.dma_semaphore, #tpu.memory_space<semaphore_mem>> -> memref<!tpu.dma_semaphore, #tpu.memory_space<semaphore_mem>>
    tpu.wait_dma2 semaphore(%39 : memref<!tpu.dma_semaphore, #tpu.memory_space<semaphore_mem>>) src(%36 : memref<1x32xf32, #tpu.memory_space<any>>) dst(%37 : memref<1x32xf32, #tpu.memory_space<vmem>>)
    %c1_i32_24 = arith.constant 1 : i32
    %c0_i32_25 = arith.constant 0 : i32
    %40 = tpu.memref_slice %arg7[%3, %c0_i32_25] : memref<16x32xf32, #tpu.memory_space<any>> -> memref<1x32xf32, #tpu.memory_space<any>>
    %c1_i32_26 = arith.constant 1 : i32
    %c0_i32_27 = arith.constant 0 : i32
    %41 = tpu.memref_slice %arg8[%c1_i32_26, %c0_i32_27] : memref<8x32xf32, #tpu.memory_space<vmem>> -> memref<1x32xf32, #tpu.memory_space<vmem>>
    %42 = tpu.memref_slice %arg10[%c1_i32_24] : memref<6x!tpu.dma_semaphore, #tpu.memory_space<semaphore_mem>> -> memref<1x!tpu.dma_semaphore, #tpu.memory_space<semaphore_mem>>
    %43 = tpu.memref_squeeze %42 : memref<1x!tpu.dma_semaphore, #tpu.memory_space<semaphore_mem>> -> memref<!tpu.dma_semaphore, #tpu.memory_space<semaphore_mem>>
    tpu.wait_dma2 semaphore(%43 : memref<!tpu.dma_semaphore, #tpu.memory_space<semaphore_mem>>) src(%40 : memref<1x32xf32, #tpu.memory_space<any>>) dst(%41 : memref<1x32xf32, #tpu.memory_space<vmem>>)
    %c2_i32_28 = arith.constant 2 : i32
    %c0_i32_29 = arith.constant 0 : i32
    %44 = tpu.memref_slice %arg7[%5, %c0_i32_29] : memref<16x32xf32, #tpu.memory_space<any>> -> memref<1x32xf32, #tpu.memory_space<any>>
    %c2_i32_30 = arith.constant 2 : i32
    %c0_i32_31 = arith.constant 0 : i32
    %45 = tpu.memref_slice %arg8[%c2_i32_30, %c0_i32_31] : memref<8x32xf32, #tpu.memory_space<vmem>> -> memref<1x32xf32, #tpu.memory_space<vmem>>
    %46 = tpu.memref_slice %arg10[%c2_i32_28] : memref<6x!tpu.dma_semaphore, #tpu.memory_space<semaphore_mem>> -> memref<1x!tpu.dma_semaphore, #tpu.memory_space<semaphore_mem>>
    %47 = tpu.memref_squeeze %46 : memref<1x!tpu.dma_semaphore, #tpu.memory_space<semaphore_mem>> -> memref<!tpu.dma_semaphore, #tpu.memory_space<semaphore_mem>>
    tpu.wait_dma2 semaphore(%47 : memref<!tpu.dma_semaphore, #tpu.memory_space<semaphore_mem>>) src(%44 : memref<1x32xf32, #tpu.memory_space<any>>) dst(%45 : memref<1x32xf32, #tpu.memory_space<vmem>>)
    %c3_i32_32 = arith.constant 3 : i32
    %c0_i32_33 = arith.constant 0 : i32
    %48 = tpu.memref_slice %arg7[%7, %c0_i32_33] : memref<16x32xf32, #tpu.memory_space<any>> -> memref<1x32xf32, #tpu.memory_space<any>>
    %c3_i32_34 = arith.constant 3 : i32
    %c0_i32_35 = arith.constant 0 : i32
    %49 = tpu.memref_slice %arg8[%c3_i32_34, %c0_i32_35] : memref<8x32xf32, #tpu.memory_space<vmem>> -> memref<1x32xf32, #tpu.memory_space<vmem>>
    %50 = tpu.memref_slice %arg10[%c3_i32_32] : memref<6x!tpu.dma_semaphore, #tpu.memory_space<semaphore_mem>> -> memref<1x!tpu.dma_semaphore, #tpu.memory_space<semaphore_mem>>
    %51 = tpu.memref_squeeze %50 : memref<1x!tpu.dma_semaphore, #tpu.memory_space<semaphore_mem>> -> memref<!tpu.dma_semaphore, #tpu.memory_space<semaphore_mem>>
    tpu.wait_dma2 semaphore(%51 : memref<!tpu.dma_semaphore, #tpu.memory_space<semaphore_mem>>) src(%48 : memref<1x32xf32, #tpu.memory_space<any>>) dst(%49 : memref<1x32xf32, #tpu.memory_space<vmem>>)
    %c0_36 = arith.constant 0 : index
    %c0_37 = arith.constant 0 : index
    %52 = vector.load %arg8[%c0_36, %c0_37] : memref<8x32xf32, #tpu.memory_space<vmem>>, vector<8x32xf32>
    %c0_38 = arith.constant 0 : index
    %c0_39 = arith.constant 0 : index
    %53 = vector.load %arg3[%c0_38, %c0_39] : memref<32x96xf32, #tpu.memory_space<vmem>>, vector<32x96xf32>
    %cst_40 = arith.constant dense<0.000000e+00> : vector<8x96xf32>
    %54 = tpu.matmul %52, %53, %cst_40 {dimension_numbers = #tpu.dot_dimension_numbers<[1], [0], [0], [1], [0, 0, 1, 1], [], []>} : vector<8x32xf32>, vector<32x96xf32>, vector<8x96xf32> -> vector<8x96xf32>
    %c0_41 = arith.constant 0 : index
    %c0_42 = arith.constant 0 : index
    %55 = vector.load %arg4[%c0_41, %c0_42] : memref<1x96xf32, #tpu.memory_space<vmem>>, vector<1x96xf32>
    %56 = vector.broadcast %55 : vector<1x96xf32> to vector<8x96xf32>
    %57 = arith.addf %54, %56 : vector<8x96xf32>
    %58 = tpu.iota {dimensions = array<i32: 1>} : vector<1x8xi32>
    %c4_i32 = arith.constant 4 : i32
    %59 = vector.broadcast %c4_i32 : i32 to vector<1x8xi32>
    %60 = arith.cmpi slt, %58, %59 : vector<1x8xi32>
    %61 = vector.extract_strided_slice %57 {offsets = [0, 0], sizes = [1, 8], strides = [1, 1]} : vector<8x96xf32> to vector<1x8xf32>
    %62 = vector.extract_strided_slice %57 {offsets = [0, 32], sizes = [8, 8], strides = [1, 1]} : vector<8x96xf32> to vector<8x8xf32>
    %63 = vector.extract_strided_slice %57 {offsets = [0, 64], sizes = [8, 8], strides = [1, 1]} : vector<8x96xf32> to vector<8x8xf32>
    %cst_43 = arith.constant dense<0.000000e+00> : vector<1x8xf32>
    %64 = tpu.matmul %61, %62, %cst_43 {dimension_numbers = #tpu.dot_dimension_numbers<[1], [1], [0], [0], [0, 0, 1, 0], [], []>} : vector<1x8xf32>, vector<8x8xf32>, vector<1x8xf32> -> vector<1x8xf32>
    %cst_44 = arith.constant 0.353553385 : f32
    %65 = vector.broadcast %cst_44 : f32 to vector<1x8xf32>
    %66 = arith.mulf %64, %65 : vector<1x8xf32>
    %cst_45 = arith.constant -1.000000e+30 : f32
    %67 = vector.broadcast %cst_45 : f32 to vector<1x8xf32>
    %68 = arith.select %60, %66, %67 : vector<1x8xi1>, vector<1x8xf32>
    %cst_46 = arith.constant dense<0xFF800000> : vector<1xf32>
    %69 = vector.multi_reduction <maximumf>, %68, %cst_46 [1] : vector<1x8xf32> to vector<1xf32>
    %70 = vector.shape_cast %69 : vector<1xf32> to vector<1x1xf32>
    %71 = vector.broadcast %70 : vector<1x1xf32> to vector<1x8xf32>
    %72 = arith.subf %68, %71 : vector<1x8xf32>
    %73 = math.exp %72 : vector<1x8xf32>
    %cst_47 = arith.constant dense<0.000000e+00> : vector<1xf32>
    %74 = vector.multi_reduction <add>, %73, %cst_47 [1] : vector<1x8xf32> to vector<1xf32>
    %75 = vector.shape_cast %74 : vector<1xf32> to vector<1x1xf32>
    %76 = tpu.reciprocal %75 {approx = true} : vector<1x1xf32> -> vector<1x1xf32>
    %77 = vector.broadcast %76 : vector<1x1xf32> to vector<1x8xf32>
    %78 = arith.mulf %73, %77 : vector<1x8xf32>
    %cst_48 = arith.constant dense<0.000000e+00> : vector<1x8xf32>
    %79 = tpu.matmul %78, %63, %cst_48 {dimension_numbers = #tpu.dot_dimension_numbers<[1], [0], [0], [1], [0, 0, 1, 1], [], []>} : vector<1x8xf32>, vector<8x8xf32>, vector<1x8xf32> -> vector<1x8xf32>
    %80 = vector.extract_strided_slice %57 {offsets = [0, 8], sizes = [1, 8], strides = [1, 1]} : vector<8x96xf32> to vector<1x8xf32>
    %81 = vector.extract_strided_slice %57 {offsets = [0, 40], sizes = [8, 8], strides = [1, 1]} : vector<8x96xf32> to vector<8x8xf32>
    %82 = vector.extract_strided_slice %57 {offsets = [0, 72], sizes = [8, 8], strides = [1, 1]} : vector<8x96xf32> to vector<8x8xf32>
    %cst_49 = arith.constant dense<0.000000e+00> : vector<1x8xf32>
    %83 = tpu.matmul %80, %81, %cst_49 {dimension_numbers = #tpu.dot_dimension_numbers<[1], [1], [0], [0], [0, 0, 1, 0], [], []>} : vector<1x8xf32>, vector<8x8xf32>, vector<1x8xf32> -> vector<1x8xf32>
    %cst_50 = arith.constant 0.353553385 : f32
    %84 = vector.broadcast %cst_50 : f32 to vector<1x8xf32>
    %85 = arith.mulf %83, %84 : vector<1x8xf32>
    %cst_51 = arith.constant -1.000000e+30 : f32
    %86 = vector.broadcast %cst_51 : f32 to vector<1x8xf32>
    %87 = arith.select %60, %85, %86 : vector<1x8xi1>, vector<1x8xf32>
    %cst_52 = arith.constant dense<0xFF800000> : vector<1xf32>
    %88 = vector.multi_reduction <maximumf>, %87, %cst_52 [1] : vector<1x8xf32> to vector<1xf32>
    %89 = vector.shape_cast %88 : vector<1xf32> to vector<1x1xf32>
    %90 = vector.broadcast %89 : vector<1x1xf32> to vector<1x8xf32>
    %91 = arith.subf %87, %90 : vector<1x8xf32>
    %92 = math.exp %91 : vector<1x8xf32>
    %cst_53 = arith.constant dense<0.000000e+00> : vector<1xf32>
    %93 = vector.multi_reduction <add>, %92, %cst_53 [1] : vector<1x8xf32> to vector<1xf32>
    %94 = vector.shape_cast %93 : vector<1xf32> to vector<1x1xf32>
    %95 = tpu.reciprocal %94 {approx = true} : vector<1x1xf32> -> vector<1x1xf32>
    %96 = vector.broadcast %95 : vector<1x1xf32> to vector<1x8xf32>
    %97 = arith.mulf %92, %96 : vector<1x8xf32>
    %cst_54 = arith.constant dense<0.000000e+00> : vector<1x8xf32>
    %98 = tpu.matmul %97, %82, %cst_54 {dimension_numbers = #tpu.dot_dimension_numbers<[1], [0], [0], [1], [0, 0, 1, 1], [], []>} : vector<1x8xf32>, vector<8x8xf32>, vector<1x8xf32> -> vector<1x8xf32>
    %99 = vector.extract_strided_slice %57 {offsets = [0, 16], sizes = [1, 8], strides = [1, 1]} : vector<8x96xf32> to vector<1x8xf32>
    %100 = vector.extract_strided_slice %57 {offsets = [0, 48], sizes = [8, 8], strides = [1, 1]} : vector<8x96xf32> to vector<8x8xf32>
    %101 = vector.extract_strided_slice %57 {offsets = [0, 80], sizes = [8, 8], strides = [1, 1]} : vector<8x96xf32> to vector<8x8xf32>
    %cst_55 = arith.constant dense<0.000000e+00> : vector<1x8xf32>
    %102 = tpu.matmul %99, %100, %cst_55 {dimension_numbers = #tpu.dot_dimension_numbers<[1], [1], [0], [0], [0, 0, 1, 0], [], []>} : vector<1x8xf32>, vector<8x8xf32>, vector<1x8xf32> -> vector<1x8xf32>
    %cst_56 = arith.constant 0.353553385 : f32
    %103 = vector.broadcast %cst_56 : f32 to vector<1x8xf32>
    %104 = arith.mulf %102, %103 : vector<1x8xf32>
    %cst_57 = arith.constant -1.000000e+30 : f32
    %105 = vector.broadcast %cst_57 : f32 to vector<1x8xf32>
    %106 = arith.select %60, %104, %105 : vector<1x8xi1>, vector<1x8xf32>
    %cst_58 = arith.constant dense<0xFF800000> : vector<1xf32>
    %107 = vector.multi_reduction <maximumf>, %106, %cst_58 [1] : vector<1x8xf32> to vector<1xf32>
    %108 = vector.shape_cast %107 : vector<1xf32> to vector<1x1xf32>
    %109 = vector.broadcast %108 : vector<1x1xf32> to vector<1x8xf32>
    %110 = arith.subf %106, %109 : vector<1x8xf32>
    %111 = math.exp %110 : vector<1x8xf32>
    %cst_59 = arith.constant dense<0.000000e+00> : vector<1xf32>
    %112 = vector.multi_reduction <add>, %111, %cst_59 [1] : vector<1x8xf32> to vector<1xf32>
    %113 = vector.shape_cast %112 : vector<1xf32> to vector<1x1xf32>
    %114 = tpu.reciprocal %113 {approx = true} : vector<1x1xf32> -> vector<1x1xf32>
    %115 = vector.broadcast %114 : vector<1x1xf32> to vector<1x8xf32>
    %116 = arith.mulf %111, %115 : vector<1x8xf32>
    %cst_60 = arith.constant dense<0.000000e+00> : vector<1x8xf32>
    %117 = tpu.matmul %116, %101, %cst_60 {dimension_numbers = #tpu.dot_dimension_numbers<[1], [0], [0], [1], [0, 0, 1, 1], [], []>} : vector<1x8xf32>, vector<8x8xf32>, vector<1x8xf32> -> vector<1x8xf32>
    %118 = vector.extract_strided_slice %57 {offsets = [0, 24], sizes = [1, 8], strides = [1, 1]} : vector<8x96xf32> to vector<1x8xf32>
    %119 = vector.extract_strided_slice %57 {offsets = [0, 56], sizes = [8, 8], strides = [1, 1]} : vector<8x96xf32> to vector<8x8xf32>
    %120 = vector.extract_strided_slice %57 {offsets = [0, 88], sizes = [8, 8], strides = [1, 1]} : vector<8x96xf32> to vector<8x8xf32>
    %cst_61 = arith.constant dense<0.000000e+00> : vector<1x8xf32>
    %121 = tpu.matmul %118, %119, %cst_61 {dimension_numbers = #tpu.dot_dimension_numbers<[1], [1], [0], [0], [0, 0, 1, 0], [], []>} : vector<1x8xf32>, vector<8x8xf32>, vector<1x8xf32> -> vector<1x8xf32>
    %cst_62 = arith.constant 0.353553385 : f32
    %122 = vector.broadcast %cst_62 : f32 to vector<1x8xf32>
    %123 = arith.mulf %121, %122 : vector<1x8xf32>
    %cst_63 = arith.constant -1.000000e+30 : f32
    %124 = vector.broadcast %cst_63 : f32 to vector<1x8xf32>
    %125 = arith.select %60, %123, %124 : vector<1x8xi1>, vector<1x8xf32>
    %cst_64 = arith.constant dense<0xFF800000> : vector<1xf32>
    %126 = vector.multi_reduction <maximumf>, %125, %cst_64 [1] : vector<1x8xf32> to vector<1xf32>
    %127 = vector.shape_cast %126 : vector<1xf32> to vector<1x1xf32>
    %128 = vector.broadcast %127 : vector<1x1xf32> to vector<1x8xf32>
    %129 = arith.subf %125, %128 : vector<1x8xf32>
    %130 = math.exp %129 : vector<1x8xf32>
    %cst_65 = arith.constant dense<0.000000e+00> : vector<1xf32>
    %131 = vector.multi_reduction <add>, %130, %cst_65 [1] : vector<1x8xf32> to vector<1xf32>
    %132 = vector.shape_cast %131 : vector<1xf32> to vector<1x1xf32>
    %133 = tpu.reciprocal %132 {approx = true} : vector<1x1xf32> -> vector<1x1xf32>
    %134 = vector.broadcast %133 : vector<1x1xf32> to vector<1x8xf32>
    %135 = arith.mulf %130, %134 : vector<1x8xf32>
    %cst_66 = arith.constant dense<0.000000e+00> : vector<1x8xf32>
    %136 = tpu.matmul %135, %120, %cst_66 {dimension_numbers = #tpu.dot_dimension_numbers<[1], [0], [0], [1], [0, 0, 1, 1], [], []>} : vector<1x8xf32>, vector<8x8xf32>, vector<1x8xf32> -> vector<1x8xf32>
    %137 = tpu.concatenate %79, %98, %117, %136 in 1 : vector<1x8xf32>, vector<1x8xf32>, vector<1x8xf32>, vector<1x8xf32> -> vector<1x32xf32>
    %c0_67 = arith.constant 0 : index
    %c0_68 = arith.constant 0 : index
    %138 = vector.load %arg5[%c0_67, %c0_68] : memref<32x32xf32, #tpu.memory_space<vmem>>, vector<32x32xf32>
    %cst_69 = arith.constant dense<0.000000e+00> : vector<1x32xf32>
    %139 = tpu.matmul %137, %138, %cst_69 {dimension_numbers = #tpu.dot_dimension_numbers<[1], [0], [0], [1], [0, 0, 1, 1], [], []>} : vector<1x32xf32>, vector<32x32xf32>, vector<1x32xf32> -> vector<1x32xf32>
    %c0_70 = arith.constant 0 : index
    %c0_71 = arith.constant 0 : index
    %140 = vector.load %arg6[%c0_70, %c0_71] : memref<1x32xf32, #tpu.memory_space<vmem>>, vector<1x32xf32>
    %141 = arith.addf %139, %140 : vector<1x32xf32>
    %c0_72 = arith.constant 0 : index
    %c0_73 = arith.constant 0 : index
    %142 = vector.load %arg9[%c0_72, %c0_73] : memref<1x32xf32, #tpu.memory_space<vmem>>, vector<1x32xf32>
    tpu.vector_store %arg9[%c0_72, %c0_73], %141 {strides = array<i32>} : memref<1x32xf32, #tpu.memory_space<vmem>>, vector<1x32xf32>,
    %c5_i32 = arith.constant 5 : i32
    %c0_i32_74 = arith.constant 0 : i32
    %143 = tpu.memref_slice %arg7[%1, %c0_i32_74] : memref<16x32xf32, #tpu.memory_space<any>> -> memref<1x32xf32, #tpu.memory_space<any>>
    %144 = tpu.memref_slice %arg10[%c5_i32] : memref<6x!tpu.dma_semaphore, #tpu.memory_space<semaphore_mem>> -> memref<1x!tpu.dma_semaphore, #tpu.memory_space<semaphore_mem>>
    %145 = tpu.memref_squeeze %144 : memref<1x!tpu.dma_semaphore, #tpu.memory_space<semaphore_mem>> -> memref<!tpu.dma_semaphore, #tpu.memory_space<semaphore_mem>>
    tpu.enqueue_dma source(%arg9 : memref<1x32xf32, #tpu.memory_space<vmem>>) target(%143 : memref<1x32xf32, #tpu.memory_space<any>>) target_semaphore(%145 : memref<!tpu.dma_semaphore, #tpu.memory_space<semaphore_mem>>)
    %c3_i32_75 = arith.constant 3 : i32
    %146 = arith.cmpi eq, %arg0, %c3_i32_75 : i32
    %147 = arith.extui %146 : i1 to i32
    %c5_i32_76 = arith.constant 5 : i32
    %c0_i32_77 = arith.constant 0 : i32
    %148 = arith.cmpi ne, %147, %c0_i32_77 : i32
    scf.if %148 {
      %c0_i32_78 = arith.constant 0 : i32
      %149 = tpu.memref_slice %arg7[%1, %c0_i32_78] : memref<16x32xf32, #tpu.memory_space<any>> -> memref<1x32xf32, #tpu.memory_space<any>>
      %150 = tpu.memref_slice %arg10[%c5_i32_76] : memref<6x!tpu.dma_semaphore, #tpu.memory_space<semaphore_mem>> -> memref<1x!tpu.dma_semaphore, #tpu.memory_space<semaphore_mem>>
      %151 = tpu.memref_squeeze %150 : memref<1x!tpu.dma_semaphore, #tpu.memory_space<semaphore_mem>> -> memref<!tpu.dma_semaphore, #tpu.memory_space<semaphore_mem>>
      tpu.wait_dma2 semaphore(%151 : memref<!tpu.dma_semaphore, #tpu.memory_space<semaphore_mem>>) src(%arg9 : memref<1x32xf32, #tpu.memory_space<vmem>>) dst(%149 : memref<1x32xf32, #tpu.memory_space<any>>)
    } else {
    }
    return
  }
  func.func @transform_1(%arg0: i32, %arg1: memref<4x4xi32, #tpu.memory_space<smem>>) -> (i32, i32) {
    %c0_i32 = arith.constant 0 : i32
    %c0_i32_0 = arith.constant 0 : i32
    %c0_i32_1 = arith.constant 0 : i32
    return %c0_i32, %c0_i32_0 : i32, i32
  }
  func.func @transform_2(%arg0: i32, %arg1: memref<4x4xi32, #tpu.memory_space<smem>>) -> (i32, i32) {
    %c0_i32 = arith.constant 0 : i32
    %c0_i32_0 = arith.constant 0 : i32
    %c0_i32_1 = arith.constant 0 : i32
    return %c0_i32, %c0_i32_0 : i32, i32
  }
  func.func @transform_3(%arg0: i32, %arg1: memref<4x4xi32, #tpu.memory_space<smem>>) -> (i32, i32) {
    %c0_i32 = arith.constant 0 : i32
    %c0_i32_0 = arith.constant 0 : i32
    %c0_i32_1 = arith.constant 0 : i32
    return %c0_i32, %c0_i32_0 : i32, i32
  }
  func.func @transform_4(%arg0: i32, %arg1: memref<4x4xi32, #tpu.memory_space<smem>>) -> (i32, i32) {
    %c0_i32 = arith.constant 0 : i32
    %c0_i32_0 = arith.constant 0 : i32
    %c0_i32_1 = arith.constant 0 : i32
    return %c0_i32, %c0_i32_0 : i32, i32
  }
}

module attributes {stable_mosaic.version = 11 : i64} {
  func.func @_lmodel_kernel(%arg0: i32, %arg1: memref<2x8x32xf32, #tpu.memory_space<vmem>>, %arg2: memref<1x32xf32, #tpu.memory_space<vmem>>, %arg3: memref<1x32xf32, #tpu.memory_space<vmem>>, %arg4: memref<32x96xf32, #tpu.memory_space<vmem>>, %arg5: memref<1x96xf32, #tpu.memory_space<vmem>>, %arg6: memref<32x32xf32, #tpu.memory_space<vmem>>, %arg7: memref<1x32xf32, #tpu.memory_space<vmem>>, %arg8: memref<1x32xf32, #tpu.memory_space<vmem>>, %arg9: memref<1x32xf32, #tpu.memory_space<vmem>>, %arg10: memref<32x32xf32, #tpu.memory_space<vmem>>, %arg11: memref<1x32xf32, #tpu.memory_space<vmem>>, %arg12: memref<32x32xf32, #tpu.memory_space<vmem>>, %arg13: memref<1x32xf32, #tpu.memory_space<vmem>>, %arg14: memref<2x8x32xf32, #tpu.memory_space<vmem>>, %arg15: memref<2x8x8xf32, #tpu.memory_space<vmem>>) attributes {dimension_semantics = [#tpu.dimension_semantics<parallel>], iteration_bounds = array<i64: 2>, scalar_prefetch = 0 : i64, scratch_operands = 0 : i64, tpu.core_type = #tpu.core_type<tc>, window_params = [{transform_indices = @transform_0, window_bounds = array<i64: 2, 8, 32>}, {pipeline_mode = #tpu.pipeline_mode<synchronous>, transform_indices = @transform_1, window_bounds = array<i64: 1, 32>}, {pipeline_mode = #tpu.pipeline_mode<synchronous>, transform_indices = @transform_2, window_bounds = array<i64: 1, 32>}, {pipeline_mode = #tpu.pipeline_mode<synchronous>, transform_indices = @transform_3, window_bounds = array<i64: 32, 96>}, {pipeline_mode = #tpu.pipeline_mode<synchronous>, transform_indices = @transform_4, window_bounds = array<i64: 1, 96>}, {pipeline_mode = #tpu.pipeline_mode<synchronous>, transform_indices = @transform_5, window_bounds = array<i64: 32, 32>}, {pipeline_mode = #tpu.pipeline_mode<synchronous>, transform_indices = @transform_6, window_bounds = array<i64: 1, 32>}, {pipeline_mode = #tpu.pipeline_mode<synchronous>, transform_indices = @transform_7, window_bounds = array<i64: 1, 32>}, {pipeline_mode = #tpu.pipeline_mode<synchronous>, transform_indices = @transform_8, window_bounds = array<i64: 1, 32>}, {pipeline_mode = #tpu.pipeline_mode<synchronous>, transform_indices = @transform_9, window_bounds = array<i64: 32, 32>}, {pipeline_mode = #tpu.pipeline_mode<synchronous>, transform_indices = @transform_10, window_bounds = array<i64: 1, 32>}, {pipeline_mode = #tpu.pipeline_mode<synchronous>, transform_indices = @transform_11, window_bounds = array<i64: 32, 32>}, {pipeline_mode = #tpu.pipeline_mode<synchronous>, transform_indices = @transform_12, window_bounds = array<i64: 1, 32>}, {transform_indices = @transform_13, window_bounds = array<i64: 2, 8, 32>}, {transform_indices = @transform_14, window_bounds = array<i64: 2, 8, 8>}]} {
    %c0 = arith.constant 0 : index
    %c0_0 = arith.constant 0 : index
    %c0_1 = arith.constant 0 : index
    %0 = vector.load %arg1[%c0, %c0_0, %c0_1] : memref<2x8x32xf32, #tpu.memory_space<vmem>>, vector<2x8x32xf32>
    %1 = vector.shape_cast %0 : vector<2x8x32xf32> to vector<16x32xf32>
    %c0_2 = arith.constant 0 : index
    %c0_3 = arith.constant 0 : index
    %2 = vector.load %arg2[%c0_2, %c0_3] : memref<1x32xf32, #tpu.memory_space<vmem>>, vector<1x32xf32>
    %c0_4 = arith.constant 0 : index
    %c0_5 = arith.constant 0 : index
    %3 = vector.load %arg3[%c0_4, %c0_5] : memref<1x32xf32, #tpu.memory_space<vmem>>, vector<1x32xf32>
    %cst = arith.constant dense<0.000000e+00> : vector<16xf32>
    %4 = vector.multi_reduction <add>, %1, %cst [1] : vector<16x32xf32> to vector<16xf32>
    %5 = vector.shape_cast %4 : vector<16xf32> to vector<16x1xf32>
    %cst_6 = arith.constant 3.200000e+01 : f32
    %6 = vector.broadcast %cst_6 : f32 to vector<16x1xf32>
    %7 = arith.divf %5, %6 : vector<16x1xf32>
    %8 = vector.broadcast %7 : vector<16x1xf32> to vector<16x32xf32>
    %9 = arith.subf %1, %8 : vector<16x32xf32>
    %10 = arith.mulf %9, %9 : vector<16x32xf32>
    %cst_7 = arith.constant dense<0.000000e+00> : vector<16xf32>
    %11 = vector.multi_reduction <add>, %10, %cst_7 [1] : vector<16x32xf32> to vector<16xf32>
    %12 = vector.shape_cast %11 : vector<16xf32> to vector<16x1xf32>
    %cst_8 = arith.constant 3.200000e+01 : f32
    %13 = vector.broadcast %cst_8 : f32 to vector<16x1xf32>
    %14 = arith.divf %12, %13 : vector<16x1xf32>
    %cst_9 = arith.constant 9.99999974E-6 : f32
    %15 = vector.broadcast %cst_9 : f32 to vector<16x1xf32>
    %16 = arith.addf %14, %15 : vector<16x1xf32>
    %17 = math.rsqrt %16 : vector<16x1xf32>
    %18 = vector.broadcast %17 : vector<16x1xf32> to vector<16x32xf32>
    %19 = arith.mulf %9, %18 : vector<16x32xf32>
    %20 = vector.broadcast %2 : vector<1x32xf32> to vector<16x32xf32>
    %21 = arith.mulf %19, %20 : vector<16x32xf32>
    %22 = vector.broadcast %3 : vector<1x32xf32> to vector<16x32xf32>
    %23 = arith.addf %21, %22 : vector<16x32xf32>
    %c0_10 = arith.constant 0 : index
    %c0_11 = arith.constant 0 : index
    %24 = vector.load %arg4[%c0_10, %c0_11] : memref<32x96xf32, #tpu.memory_space<vmem>>, vector<32x96xf32>
    %cst_12 = arith.constant dense<0.000000e+00> : vector<16x96xf32>
    %25 = tpu.matmul %23, %24, %cst_12 {dimension_numbers = #tpu.dot_dimension_numbers<[1], [0], [0], [1], [0, 0, 1, 1], [], []>} : vector<16x32xf32>, vector<32x96xf32>, vector<16x96xf32> -> vector<16x96xf32>
    %c0_13 = arith.constant 0 : index
    %c0_14 = arith.constant 0 : index
    %26 = vector.load %arg5[%c0_13, %c0_14] : memref<1x96xf32, #tpu.memory_space<vmem>>, vector<1x96xf32>
    %27 = vector.broadcast %26 : vector<1x96xf32> to vector<16x96xf32>
    %28 = arith.addf %25, %27 : vector<16x96xf32>
    %cst_15 = arith.constant 0.000000e+00 : f32
    %29 = vector.broadcast %cst_15 : f32 to vector<8x8xf32>
    %30 = vector.extract_strided_slice %28 {offsets = [0, 0], sizes = [8, 8], strides = [1, 1]} : vector<16x96xf32> to vector<8x8xf32>
    %31 = vector.extract_strided_slice %28 {offsets = [0, 32], sizes = [8, 8], strides = [1, 1]} : vector<16x96xf32> to vector<8x8xf32>
    %32 = vector.extract_strided_slice %28 {offsets = [0, 64], sizes = [8, 8], strides = [1, 1]} : vector<16x96xf32> to vector<8x8xf32>
    %cst_16 = arith.constant dense<0.000000e+00> : vector<8x8xf32>
    %33 = tpu.matmul %30, %31, %cst_16 {dimension_numbers = #tpu.dot_dimension_numbers<[1], [1], [0], [0], [0, 0, 1, 0], [], []>} : vector<8x8xf32>, vector<8x8xf32>, vector<8x8xf32> -> vector<8x8xf32>
    %cst_17 = arith.constant 0.353553385 : f32
    %34 = vector.broadcast %cst_17 : f32 to vector<8x8xf32>
    %35 = arith.mulf %33, %34 : vector<8x8xf32>
    %cst_18 = arith.constant dense<0xFF800000> : vector<8xf32>
    %36 = vector.multi_reduction <maximumf>, %35, %cst_18 [1] : vector<8x8xf32> to vector<8xf32>
    %37 = vector.shape_cast %36 : vector<8xf32> to vector<8x1xf32>
    %38 = vector.broadcast %37 : vector<8x1xf32> to vector<8x8xf32>
    %39 = arith.subf %35, %38 : vector<8x8xf32>
    %40 = math.exp %39 : vector<8x8xf32>
    %cst_19 = arith.constant dense<0.000000e+00> : vector<8xf32>
    %41 = vector.multi_reduction <add>, %40, %cst_19 [1] : vector<8x8xf32> to vector<8xf32>
    %42 = vector.shape_cast %41 : vector<8xf32> to vector<8x1xf32>
    %43 = tpu.reciprocal %42 {approx = true} : vector<8x1xf32> -> vector<8x1xf32>
    %44 = vector.broadcast %43 : vector<8x1xf32> to vector<8x8xf32>
    %45 = arith.mulf %40, %44 : vector<8x8xf32>
    %46 = arith.addf %29, %45 : vector<8x8xf32>
    %cst_20 = arith.constant dense<0.000000e+00> : vector<8x8xf32>
    %47 = tpu.matmul %45, %32, %cst_20 {dimension_numbers = #tpu.dot_dimension_numbers<[1], [0], [0], [1], [0, 0, 1, 1], [], []>} : vector<8x8xf32>, vector<8x8xf32>, vector<8x8xf32> -> vector<8x8xf32>
    %48 = vector.extract_strided_slice %28 {offsets = [0, 8], sizes = [8, 8], strides = [1, 1]} : vector<16x96xf32> to vector<8x8xf32>
    %49 = vector.extract_strided_slice %28 {offsets = [0, 40], sizes = [8, 8], strides = [1, 1]} : vector<16x96xf32> to vector<8x8xf32>
    %50 = vector.extract_strided_slice %28 {offsets = [0, 72], sizes = [8, 8], strides = [1, 1]} : vector<16x96xf32> to vector<8x8xf32>
    %cst_21 = arith.constant dense<0.000000e+00> : vector<8x8xf32>
    %51 = tpu.matmul %48, %49, %cst_21 {dimension_numbers = #tpu.dot_dimension_numbers<[1], [1], [0], [0], [0, 0, 1, 0], [], []>} : vector<8x8xf32>, vector<8x8xf32>, vector<8x8xf32> -> vector<8x8xf32>
    %cst_22 = arith.constant 0.353553385 : f32
    %52 = vector.broadcast %cst_22 : f32 to vector<8x8xf32>
    %53 = arith.mulf %51, %52 : vector<8x8xf32>
    %cst_23 = arith.constant dense<0xFF800000> : vector<8xf32>
    %54 = vector.multi_reduction <maximumf>, %53, %cst_23 [1] : vector<8x8xf32> to vector<8xf32>
    %55 = vector.shape_cast %54 : vector<8xf32> to vector<8x1xf32>
    %56 = vector.broadcast %55 : vector<8x1xf32> to vector<8x8xf32>
    %57 = arith.subf %53, %56 : vector<8x8xf32>
    %58 = math.exp %57 : vector<8x8xf32>
    %cst_24 = arith.constant dense<0.000000e+00> : vector<8xf32>
    %59 = vector.multi_reduction <add>, %58, %cst_24 [1] : vector<8x8xf32> to vector<8xf32>
    %60 = vector.shape_cast %59 : vector<8xf32> to vector<8x1xf32>
    %61 = tpu.reciprocal %60 {approx = true} : vector<8x1xf32> -> vector<8x1xf32>
    %62 = vector.broadcast %61 : vector<8x1xf32> to vector<8x8xf32>
    %63 = arith.mulf %58, %62 : vector<8x8xf32>
    %64 = arith.addf %46, %63 : vector<8x8xf32>
    %cst_25 = arith.constant dense<0.000000e+00> : vector<8x8xf32>
    %65 = tpu.matmul %63, %50, %cst_25 {dimension_numbers = #tpu.dot_dimension_numbers<[1], [0], [0], [1], [0, 0, 1, 1], [], []>} : vector<8x8xf32>, vector<8x8xf32>, vector<8x8xf32> -> vector<8x8xf32>
    %66 = vector.extract_strided_slice %28 {offsets = [0, 16], sizes = [8, 8], strides = [1, 1]} : vector<16x96xf32> to vector<8x8xf32>
    %67 = vector.extract_strided_slice %28 {offsets = [0, 48], sizes = [8, 8], strides = [1, 1]} : vector<16x96xf32> to vector<8x8xf32>
    %68 = vector.extract_strided_slice %28 {offsets = [0, 80], sizes = [8, 8], strides = [1, 1]} : vector<16x96xf32> to vector<8x8xf32>
    %cst_26 = arith.constant dense<0.000000e+00> : vector<8x8xf32>
    %69 = tpu.matmul %66, %67, %cst_26 {dimension_numbers = #tpu.dot_dimension_numbers<[1], [1], [0], [0], [0, 0, 1, 0], [], []>} : vector<8x8xf32>, vector<8x8xf32>, vector<8x8xf32> -> vector<8x8xf32>
    %cst_27 = arith.constant 0.353553385 : f32
    %70 = vector.broadcast %cst_27 : f32 to vector<8x8xf32>
    %71 = arith.mulf %69, %70 : vector<8x8xf32>
    %cst_28 = arith.constant dense<0xFF800000> : vector<8xf32>
    %72 = vector.multi_reduction <maximumf>, %71, %cst_28 [1] : vector<8x8xf32> to vector<8xf32>
    %73 = vector.shape_cast %72 : vector<8xf32> to vector<8x1xf32>
    %74 = vector.broadcast %73 : vector<8x1xf32> to vector<8x8xf32>
    %75 = arith.subf %71, %74 : vector<8x8xf32>
    %76 = math.exp %75 : vector<8x8xf32>
    %cst_29 = arith.constant dense<0.000000e+00> : vector<8xf32>
    %77 = vector.multi_reduction <add>, %76, %cst_29 [1] : vector<8x8xf32> to vector<8xf32>
    %78 = vector.shape_cast %77 : vector<8xf32> to vector<8x1xf32>
    %79 = tpu.reciprocal %78 {approx = true} : vector<8x1xf32> -> vector<8x1xf32>
    %80 = vector.broadcast %79 : vector<8x1xf32> to vector<8x8xf32>
    %81 = arith.mulf %76, %80 : vector<8x8xf32>
    %82 = arith.addf %64, %81 : vector<8x8xf32>
    %cst_30 = arith.constant dense<0.000000e+00> : vector<8x8xf32>
    %83 = tpu.matmul %81, %68, %cst_30 {dimension_numbers = #tpu.dot_dimension_numbers<[1], [0], [0], [1], [0, 0, 1, 1], [], []>} : vector<8x8xf32>, vector<8x8xf32>, vector<8x8xf32> -> vector<8x8xf32>
    %84 = vector.extract_strided_slice %28 {offsets = [0, 24], sizes = [8, 8], strides = [1, 1]} : vector<16x96xf32> to vector<8x8xf32>
    %85 = vector.extract_strided_slice %28 {offsets = [0, 56], sizes = [8, 8], strides = [1, 1]} : vector<16x96xf32> to vector<8x8xf32>
    %86 = vector.extract_strided_slice %28 {offsets = [0, 88], sizes = [8, 8], strides = [1, 1]} : vector<16x96xf32> to vector<8x8xf32>
    %cst_31 = arith.constant dense<0.000000e+00> : vector<8x8xf32>
    %87 = tpu.matmul %84, %85, %cst_31 {dimension_numbers = #tpu.dot_dimension_numbers<[1], [1], [0], [0], [0, 0, 1, 0], [], []>} : vector<8x8xf32>, vector<8x8xf32>, vector<8x8xf32> -> vector<8x8xf32>
    %cst_32 = arith.constant 0.353553385 : f32
    %88 = vector.broadcast %cst_32 : f32 to vector<8x8xf32>
    %89 = arith.mulf %87, %88 : vector<8x8xf32>
    %cst_33 = arith.constant dense<0xFF800000> : vector<8xf32>
    %90 = vector.multi_reduction <maximumf>, %89, %cst_33 [1] : vector<8x8xf32> to vector<8xf32>
    %91 = vector.shape_cast %90 : vector<8xf32> to vector<8x1xf32>
    %92 = vector.broadcast %91 : vector<8x1xf32> to vector<8x8xf32>
    %93 = arith.subf %89, %92 : vector<8x8xf32>
    %94 = math.exp %93 : vector<8x8xf32>
    %cst_34 = arith.constant dense<0.000000e+00> : vector<8xf32>
    %95 = vector.multi_reduction <add>, %94, %cst_34 [1] : vector<8x8xf32> to vector<8xf32>
    %96 = vector.shape_cast %95 : vector<8xf32> to vector<8x1xf32>
    %97 = tpu.reciprocal %96 {approx = true} : vector<8x1xf32> -> vector<8x1xf32>
    %98 = vector.broadcast %97 : vector<8x1xf32> to vector<8x8xf32>
    %99 = arith.mulf %94, %98 : vector<8x8xf32>
    %100 = arith.addf %82, %99 : vector<8x8xf32>
    %cst_35 = arith.constant dense<0.000000e+00> : vector<8x8xf32>
    %101 = tpu.matmul %99, %86, %cst_35 {dimension_numbers = #tpu.dot_dimension_numbers<[1], [0], [0], [1], [0, 0, 1, 1], [], []>} : vector<8x8xf32>, vector<8x8xf32>, vector<8x8xf32> -> vector<8x8xf32>
    %cst_36 = arith.constant 2.500000e-01 : f32
    %102 = vector.broadcast %cst_36 : f32 to vector<8x8xf32>
    %103 = arith.mulf %100, %102 : vector<8x8xf32>
    %c0_37 = arith.constant 0 : index
    %c0_38 = arith.constant 0 : index
    %c0_39 = arith.constant 0 : index
    %104 = vector.load %arg15[%c0_37, %c0_38, %c0_39] : memref<2x8x8xf32, #tpu.memory_space<vmem>>, vector<1x8x8xf32>
    %105 = vector.shape_cast %104 : vector<1x8x8xf32> to vector<8x8xf32>
    %106 = vector.shape_cast %103 : vector<8x8xf32> to vector<1x8x8xf32>
    tpu.vector_store %arg15[%c0_37, %c0_38, %c0_39], %106 {strides = array<i32>} : memref<2x8x8xf32, #tpu.memory_space<vmem>>, vector<1x8x8xf32>,
    %107 = tpu.concatenate %47, %65, %83, %101 in 1 : vector<8x8xf32>, vector<8x8xf32>, vector<8x8xf32>, vector<8x8xf32> -> vector<8x32xf32>
    %cst_40 = arith.constant 0.000000e+00 : f32
    %108 = vector.broadcast %cst_40 : f32 to vector<8x8xf32>
    %109 = vector.extract_strided_slice %28 {offsets = [8, 0], sizes = [8, 8], strides = [1, 1]} : vector<16x96xf32> to vector<8x8xf32>
    %110 = vector.extract_strided_slice %28 {offsets = [8, 32], sizes = [8, 8], strides = [1, 1]} : vector<16x96xf32> to vector<8x8xf32>
    %111 = vector.extract_strided_slice %28 {offsets = [8, 64], sizes = [8, 8], strides = [1, 1]} : vector<16x96xf32> to vector<8x8xf32>
    %cst_41 = arith.constant dense<0.000000e+00> : vector<8x8xf32>
    %112 = tpu.matmul %109, %110, %cst_41 {dimension_numbers = #tpu.dot_dimension_numbers<[1], [1], [0], [0], [0, 0, 1, 0], [], []>} : vector<8x8xf32>, vector<8x8xf32>, vector<8x8xf32> -> vector<8x8xf32>
    %cst_42 = arith.constant 0.353553385 : f32
    %113 = vector.broadcast %cst_42 : f32 to vector<8x8xf32>
    %114 = arith.mulf %112, %113 : vector<8x8xf32>
    %cst_43 = arith.constant dense<0xFF800000> : vector<8xf32>
    %115 = vector.multi_reduction <maximumf>, %114, %cst_43 [1] : vector<8x8xf32> to vector<8xf32>
    %116 = vector.shape_cast %115 : vector<8xf32> to vector<8x1xf32>
    %117 = vector.broadcast %116 : vector<8x1xf32> to vector<8x8xf32>
    %118 = arith.subf %114, %117 : vector<8x8xf32>
    %119 = math.exp %118 : vector<8x8xf32>
    %cst_44 = arith.constant dense<0.000000e+00> : vector<8xf32>
    %120 = vector.multi_reduction <add>, %119, %cst_44 [1] : vector<8x8xf32> to vector<8xf32>
    %121 = vector.shape_cast %120 : vector<8xf32> to vector<8x1xf32>
    %122 = tpu.reciprocal %121 {approx = true} : vector<8x1xf32> -> vector<8x1xf32>
    %123 = vector.broadcast %122 : vector<8x1xf32> to vector<8x8xf32>
    %124 = arith.mulf %119, %123 : vector<8x8xf32>
    %125 = arith.addf %108, %124 : vector<8x8xf32>
    %cst_45 = arith.constant dense<0.000000e+00> : vector<8x8xf32>
    %126 = tpu.matmul %124, %111, %cst_45 {dimension_numbers = #tpu.dot_dimension_numbers<[1], [0], [0], [1], [0, 0, 1, 1], [], []>} : vector<8x8xf32>, vector<8x8xf32>, vector<8x8xf32> -> vector<8x8xf32>
    %127 = vector.extract_strided_slice %28 {offsets = [8, 8], sizes = [8, 8], strides = [1, 1]} : vector<16x96xf32> to vector<8x8xf32>
    %128 = vector.extract_strided_slice %28 {offsets = [8, 40], sizes = [8, 8], strides = [1, 1]} : vector<16x96xf32> to vector<8x8xf32>
    %129 = vector.extract_strided_slice %28 {offsets = [8, 72], sizes = [8, 8], strides = [1, 1]} : vector<16x96xf32> to vector<8x8xf32>
    %cst_46 = arith.constant dense<0.000000e+00> : vector<8x8xf32>
    %130 = tpu.matmul %127, %128, %cst_46 {dimension_numbers = #tpu.dot_dimension_numbers<[1], [1], [0], [0], [0, 0, 1, 0], [], []>} : vector<8x8xf32>, vector<8x8xf32>, vector<8x8xf32> -> vector<8x8xf32>
    %cst_47 = arith.constant 0.353553385 : f32
    %131 = vector.broadcast %cst_47 : f32 to vector<8x8xf32>
    %132 = arith.mulf %130, %131 : vector<8x8xf32>
    %cst_48 = arith.constant dense<0xFF800000> : vector<8xf32>
    %133 = vector.multi_reduction <maximumf>, %132, %cst_48 [1] : vector<8x8xf32> to vector<8xf32>
    %134 = vector.shape_cast %133 : vector<8xf32> to vector<8x1xf32>
    %135 = vector.broadcast %134 : vector<8x1xf32> to vector<8x8xf32>
    %136 = arith.subf %132, %135 : vector<8x8xf32>
    %137 = math.exp %136 : vector<8x8xf32>
    %cst_49 = arith.constant dense<0.000000e+00> : vector<8xf32>
    %138 = vector.multi_reduction <add>, %137, %cst_49 [1] : vector<8x8xf32> to vector<8xf32>
    %139 = vector.shape_cast %138 : vector<8xf32> to vector<8x1xf32>
    %140 = tpu.reciprocal %139 {approx = true} : vector<8x1xf32> -> vector<8x1xf32>
    %141 = vector.broadcast %140 : vector<8x1xf32> to vector<8x8xf32>
    %142 = arith.mulf %137, %141 : vector<8x8xf32>
    %143 = arith.addf %125, %142 : vector<8x8xf32>
    %cst_50 = arith.constant dense<0.000000e+00> : vector<8x8xf32>
    %144 = tpu.matmul %142, %129, %cst_50 {dimension_numbers = #tpu.dot_dimension_numbers<[1], [0], [0], [1], [0, 0, 1, 1], [], []>} : vector<8x8xf32>, vector<8x8xf32>, vector<8x8xf32> -> vector<8x8xf32>
    %145 = vector.extract_strided_slice %28 {offsets = [8, 16], sizes = [8, 8], strides = [1, 1]} : vector<16x96xf32> to vector<8x8xf32>
    %146 = vector.extract_strided_slice %28 {offsets = [8, 48], sizes = [8, 8], strides = [1, 1]} : vector<16x96xf32> to vector<8x8xf32>
    %147 = vector.extract_strided_slice %28 {offsets = [8, 80], sizes = [8, 8], strides = [1, 1]} : vector<16x96xf32> to vector<8x8xf32>
    %cst_51 = arith.constant dense<0.000000e+00> : vector<8x8xf32>
    %148 = tpu.matmul %145, %146, %cst_51 {dimension_numbers = #tpu.dot_dimension_numbers<[1], [1], [0], [0], [0, 0, 1, 0], [], []>} : vector<8x8xf32>, vector<8x8xf32>, vector<8x8xf32> -> vector<8x8xf32>
    %cst_52 = arith.constant 0.353553385 : f32
    %149 = vector.broadcast %cst_52 : f32 to vector<8x8xf32>
    %150 = arith.mulf %148, %149 : vector<8x8xf32>
    %cst_53 = arith.constant dense<0xFF800000> : vector<8xf32>
    %151 = vector.multi_reduction <maximumf>, %150, %cst_53 [1] : vector<8x8xf32> to vector<8xf32>
    %152 = vector.shape_cast %151 : vector<8xf32> to vector<8x1xf32>
    %153 = vector.broadcast %152 : vector<8x1xf32> to vector<8x8xf32>
    %154 = arith.subf %150, %153 : vector<8x8xf32>
    %155 = math.exp %154 : vector<8x8xf32>
    %cst_54 = arith.constant dense<0.000000e+00> : vector<8xf32>
    %156 = vector.multi_reduction <add>, %155, %cst_54 [1] : vector<8x8xf32> to vector<8xf32>
    %157 = vector.shape_cast %156 : vector<8xf32> to vector<8x1xf32>
    %158 = tpu.reciprocal %157 {approx = true} : vector<8x1xf32> -> vector<8x1xf32>
    %159 = vector.broadcast %158 : vector<8x1xf32> to vector<8x8xf32>
    %160 = arith.mulf %155, %159 : vector<8x8xf32>
    %161 = arith.addf %143, %160 : vector<8x8xf32>
    %cst_55 = arith.constant dense<0.000000e+00> : vector<8x8xf32>
    %162 = tpu.matmul %160, %147, %cst_55 {dimension_numbers = #tpu.dot_dimension_numbers<[1], [0], [0], [1], [0, 0, 1, 1], [], []>} : vector<8x8xf32>, vector<8x8xf32>, vector<8x8xf32> -> vector<8x8xf32>
    %163 = vector.extract_strided_slice %28 {offsets = [8, 24], sizes = [8, 8], strides = [1, 1]} : vector<16x96xf32> to vector<8x8xf32>
    %164 = vector.extract_strided_slice %28 {offsets = [8, 56], sizes = [8, 8], strides = [1, 1]} : vector<16x96xf32> to vector<8x8xf32>
    %165 = vector.extract_strided_slice %28 {offsets = [8, 88], sizes = [8, 8], strides = [1, 1]} : vector<16x96xf32> to vector<8x8xf32>
    %cst_56 = arith.constant dense<0.000000e+00> : vector<8x8xf32>
    %166 = tpu.matmul %163, %164, %cst_56 {dimension_numbers = #tpu.dot_dimension_numbers<[1], [1], [0], [0], [0, 0, 1, 0], [], []>} : vector<8x8xf32>, vector<8x8xf32>, vector<8x8xf32> -> vector<8x8xf32>
    %cst_57 = arith.constant 0.353553385 : f32
    %167 = vector.broadcast %cst_57 : f32 to vector<8x8xf32>
    %168 = arith.mulf %166, %167 : vector<8x8xf32>
    %cst_58 = arith.constant dense<0xFF800000> : vector<8xf32>
    %169 = vector.multi_reduction <maximumf>, %168, %cst_58 [1] : vector<8x8xf32> to vector<8xf32>
    %170 = vector.shape_cast %169 : vector<8xf32> to vector<8x1xf32>
    %171 = vector.broadcast %170 : vector<8x1xf32> to vector<8x8xf32>
    %172 = arith.subf %168, %171 : vector<8x8xf32>
    %173 = math.exp %172 : vector<8x8xf32>
    %cst_59 = arith.constant dense<0.000000e+00> : vector<8xf32>
    %174 = vector.multi_reduction <add>, %173, %cst_59 [1] : vector<8x8xf32> to vector<8xf32>
    %175 = vector.shape_cast %174 : vector<8xf32> to vector<8x1xf32>
    %176 = tpu.reciprocal %175 {approx = true} : vector<8x1xf32> -> vector<8x1xf32>
    %177 = vector.broadcast %176 : vector<8x1xf32> to vector<8x8xf32>
    %178 = arith.mulf %173, %177 : vector<8x8xf32>
    %179 = arith.addf %161, %178 : vector<8x8xf32>
    %cst_60 = arith.constant dense<0.000000e+00> : vector<8x8xf32>
    %180 = tpu.matmul %178, %165, %cst_60 {dimension_numbers = #tpu.dot_dimension_numbers<[1], [0], [0], [1], [0, 0, 1, 1], [], []>} : vector<8x8xf32>, vector<8x8xf32>, vector<8x8xf32> -> vector<8x8xf32>
    %cst_61 = arith.constant 2.500000e-01 : f32
    %181 = vector.broadcast %cst_61 : f32 to vector<8x8xf32>
    %182 = arith.mulf %179, %181 : vector<8x8xf32>
    %c1 = arith.constant 1 : index
    %c0_62 = arith.constant 0 : index
    %c0_63 = arith.constant 0 : index
    %183 = vector.load %arg15[%c1, %c0_62, %c0_63] : memref<2x8x8xf32, #tpu.memory_space<vmem>>, vector<1x8x8xf32>
    %184 = vector.shape_cast %183 : vector<1x8x8xf32> to vector<8x8xf32>
    %185 = vector.shape_cast %182 : vector<8x8xf32> to vector<1x8x8xf32>
    tpu.vector_store %arg15[%c1, %c0_62, %c0_63], %185 {strides = array<i32>} : memref<2x8x8xf32, #tpu.memory_space<vmem>>, vector<1x8x8xf32>,
    %186 = tpu.concatenate %126, %144, %162, %180 in 1 : vector<8x8xf32>, vector<8x8xf32>, vector<8x8xf32>, vector<8x8xf32> -> vector<8x32xf32>
    %187 = tpu.concatenate %107, %186 in 0 : vector<8x32xf32>, vector<8x32xf32> -> vector<16x32xf32>
    %c0_64 = arith.constant 0 : index
    %c0_65 = arith.constant 0 : index
    %188 = vector.load %arg6[%c0_64, %c0_65] : memref<32x32xf32, #tpu.memory_space<vmem>>, vector<32x32xf32>
    %cst_66 = arith.constant dense<0.000000e+00> : vector<16x32xf32>
    %189 = tpu.matmul %187, %188, %cst_66 {dimension_numbers = #tpu.dot_dimension_numbers<[1], [0], [0], [1], [0, 0, 1, 1], [], []>} : vector<16x32xf32>, vector<32x32xf32>, vector<16x32xf32> -> vector<16x32xf32>
    %c0_67 = arith.constant 0 : index
    %c0_68 = arith.constant 0 : index
    %190 = vector.load %arg7[%c0_67, %c0_68] : memref<1x32xf32, #tpu.memory_space<vmem>>, vector<1x32xf32>
    %191 = vector.broadcast %190 : vector<1x32xf32> to vector<16x32xf32>
    %192 = arith.addf %189, %191 : vector<16x32xf32>
    %193 = arith.addf %1, %192 : vector<16x32xf32>
    %c0_69 = arith.constant 0 : index
    %c0_70 = arith.constant 0 : index
    %194 = vector.load %arg8[%c0_69, %c0_70] : memref<1x32xf32, #tpu.memory_space<vmem>>, vector<1x32xf32>
    %c0_71 = arith.constant 0 : index
    %c0_72 = arith.constant 0 : index
    %195 = vector.load %arg9[%c0_71, %c0_72] : memref<1x32xf32, #tpu.memory_space<vmem>>, vector<1x32xf32>
    %cst_73 = arith.constant dense<0.000000e+00> : vector<16xf32>
    %196 = vector.multi_reduction <add>, %193, %cst_73 [1] : vector<16x32xf32> to vector<16xf32>
    %197 = vector.shape_cast %196 : vector<16xf32> to vector<16x1xf32>
    %cst_74 = arith.constant 3.200000e+01 : f32
    %198 = vector.broadcast %cst_74 : f32 to vector<16x1xf32>
    %199 = arith.divf %197, %198 : vector<16x1xf32>
    %200 = vector.broadcast %199 : vector<16x1xf32> to vector<16x32xf32>
    %201 = arith.subf %193, %200 : vector<16x32xf32>
    %202 = arith.mulf %201, %201 : vector<16x32xf32>
    %cst_75 = arith.constant dense<0.000000e+00> : vector<16xf32>
    %203 = vector.multi_reduction <add>, %202, %cst_75 [1] : vector<16x32xf32> to vector<16xf32>
    %204 = vector.shape_cast %203 : vector<16xf32> to vector<16x1xf32>
    %cst_76 = arith.constant 3.200000e+01 : f32
    %205 = vector.broadcast %cst_76 : f32 to vector<16x1xf32>
    %206 = arith.divf %204, %205 : vector<16x1xf32>
    %cst_77 = arith.constant 9.99999974E-6 : f32
    %207 = vector.broadcast %cst_77 : f32 to vector<16x1xf32>
    %208 = arith.addf %206, %207 : vector<16x1xf32>
    %209 = math.rsqrt %208 : vector<16x1xf32>
    %210 = vector.broadcast %209 : vector<16x1xf32> to vector<16x32xf32>
    %211 = arith.mulf %201, %210 : vector<16x32xf32>
    %212 = vector.broadcast %194 : vector<1x32xf32> to vector<16x32xf32>
    %213 = arith.mulf %211, %212 : vector<16x32xf32>
    %214 = vector.broadcast %195 : vector<1x32xf32> to vector<16x32xf32>
    %215 = arith.addf %213, %214 : vector<16x32xf32>
    %c0_78 = arith.constant 0 : index
    %c0_79 = arith.constant 0 : index
    %216 = vector.load %arg10[%c0_78, %c0_79] : memref<32x32xf32, #tpu.memory_space<vmem>>, vector<32x32xf32>
    %cst_80 = arith.constant dense<0.000000e+00> : vector<16x32xf32>
    %217 = tpu.matmul %215, %216, %cst_80 {dimension_numbers = #tpu.dot_dimension_numbers<[1], [0], [0], [1], [0, 0, 1, 1], [], []>} : vector<16x32xf32>, vector<32x32xf32>, vector<16x32xf32> -> vector<16x32xf32>
    %c0_81 = arith.constant 0 : index
    %c0_82 = arith.constant 0 : index
    %218 = vector.load %arg11[%c0_81, %c0_82] : memref<1x32xf32, #tpu.memory_space<vmem>>, vector<1x32xf32>
    %219 = vector.broadcast %218 : vector<1x32xf32> to vector<16x32xf32>
    %220 = arith.addf %217, %219 : vector<16x32xf32>
    %cst_83 = arith.constant 0.000000e+00 : f32
    %221 = vector.broadcast %cst_83 : f32 to vector<16x32xf32>
    %222 = arith.cmpf ogt, %220, %221 : vector<16x32xf32>
    %223 = math.exp %220 : vector<16x32xf32>
    %cst_84 = arith.constant 1.000000e+00 : f32
    %224 = vector.broadcast %cst_84 : f32 to vector<16x32xf32>
    %225 = arith.subf %223, %224 : vector<16x32xf32>
    %cst_85 = arith.constant 1.67326319 : f32
    %226 = vector.broadcast %cst_85 : f32 to vector<16x32xf32>
    %227 = arith.mulf %226, %225 : vector<16x32xf32>
    %228 = arith.select %222, %220, %227 : vector<16x32xi1>, vector<16x32xf32>
    %cst_86 = arith.constant 1.05070102 : f32
    %229 = vector.broadcast %cst_86 : f32 to vector<16x32xf32>
    %230 = arith.mulf %229, %228 : vector<16x32xf32>
    %c0_87 = arith.constant 0 : index
    %c0_88 = arith.constant 0 : index
    %231 = vector.load %arg12[%c0_87, %c0_88] : memref<32x32xf32, #tpu.memory_space<vmem>>, vector<32x32xf32>
    %cst_89 = arith.constant dense<0.000000e+00> : vector<16x32xf32>
    %232 = tpu.matmul %230, %231, %cst_89 {dimension_numbers = #tpu.dot_dimension_numbers<[1], [0], [0], [1], [0, 0, 1, 1], [], []>} : vector<16x32xf32>, vector<32x32xf32>, vector<16x32xf32> -> vector<16x32xf32>
    %c0_90 = arith.constant 0 : index
    %c0_91 = arith.constant 0 : index
    %233 = vector.load %arg13[%c0_90, %c0_91] : memref<1x32xf32, #tpu.memory_space<vmem>>, vector<1x32xf32>
    %234 = vector.broadcast %233 : vector<1x32xf32> to vector<16x32xf32>
    %235 = arith.addf %232, %234 : vector<16x32xf32>
    %236 = arith.addf %193, %235 : vector<16x32xf32>
    %237 = vector.shape_cast %236 : vector<16x32xf32> to vector<2x8x32xf32>
    %c0_92 = arith.constant 0 : index
    %c0_93 = arith.constant 0 : index
    %c0_94 = arith.constant 0 : index
    %238 = vector.load %arg14[%c0_92, %c0_93, %c0_94] : memref<2x8x32xf32, #tpu.memory_space<vmem>>, vector<2x8x32xf32>
    tpu.vector_store %arg14[%c0_92, %c0_93, %c0_94], %237 {strides = array<i32>} : memref<2x8x32xf32, #tpu.memory_space<vmem>>, vector<2x8x32xf32>,
    return
  }
  func.func @transform_0(%arg0: i32) -> (i32, i32, i32) {
    %c0_i32 = arith.constant 0 : i32
    %c0_i32_0 = arith.constant 0 : i32
    %c0_i32_1 = arith.constant 0 : i32
    return %arg0, %c0_i32, %c0_i32_0 : i32, i32, i32
  }
  func.func @transform_1(%arg0: i32) -> (i32, i32) {
    %c0_i32 = arith.constant 0 : i32
    %c0_i32_0 = arith.constant 0 : i32
    %c0_i32_1 = arith.constant 0 : i32
    return %c0_i32, %c0_i32_0 : i32, i32
  }
  func.func @transform_2(%arg0: i32) -> (i32, i32) {
    %c0_i32 = arith.constant 0 : i32
    %c0_i32_0 = arith.constant 0 : i32
    %c0_i32_1 = arith.constant 0 : i32
    return %c0_i32, %c0_i32_0 : i32, i32
  }
  func.func @transform_3(%arg0: i32) -> (i32, i32) {
    %c0_i32 = arith.constant 0 : i32
    %c0_i32_0 = arith.constant 0 : i32
    %c0_i32_1 = arith.constant 0 : i32
    return %c0_i32, %c0_i32_0 : i32, i32
  }
  func.func @transform_4(%arg0: i32) -> (i32, i32) {
    %c0_i32 = arith.constant 0 : i32
    %c0_i32_0 = arith.constant 0 : i32
    %c0_i32_1 = arith.constant 0 : i32
    return %c0_i32, %c0_i32_0 : i32, i32
  }
  func.func @transform_5(%arg0: i32) -> (i32, i32) {
    %c0_i32 = arith.constant 0 : i32
    %c0_i32_0 = arith.constant 0 : i32
    %c0_i32_1 = arith.constant 0 : i32
    return %c0_i32, %c0_i32_0 : i32, i32
  }
  func.func @transform_6(%arg0: i32) -> (i32, i32) {
    %c0_i32 = arith.constant 0 : i32
    %c0_i32_0 = arith.constant 0 : i32
    %c0_i32_1 = arith.constant 0 : i32
    return %c0_i32, %c0_i32_0 : i32, i32
  }
  func.func @transform_7(%arg0: i32) -> (i32, i32) {
    %c0_i32 = arith.constant 0 : i32
    %c0_i32_0 = arith.constant 0 : i32
    %c0_i32_1 = arith.constant 0 : i32
    return %c0_i32, %c0_i32_0 : i32, i32
  }
  func.func @transform_8(%arg0: i32) -> (i32, i32) {
    %c0_i32 = arith.constant 0 : i32
    %c0_i32_0 = arith.constant 0 : i32
    %c0_i32_1 = arith.constant 0 : i32
    return %c0_i32, %c0_i32_0 : i32, i32
  }
  func.func @transform_9(%arg0: i32) -> (i32, i32) {
    %c0_i32 = arith.constant 0 : i32
    %c0_i32_0 = arith.constant 0 : i32
    %c0_i32_1 = arith.constant 0 : i32
    return %c0_i32, %c0_i32_0 : i32, i32
  }
  func.func @transform_10(%arg0: i32) -> (i32, i32) {
    %c0_i32 = arith.constant 0 : i32
    %c0_i32_0 = arith.constant 0 : i32
    %c0_i32_1 = arith.constant 0 : i32
    return %c0_i32, %c0_i32_0 : i32, i32
  }
  func.func @transform_11(%arg0: i32) -> (i32, i32) {
    %c0_i32 = arith.constant 0 : i32
    %c0_i32_0 = arith.constant 0 : i32
    %c0_i32_1 = arith.constant 0 : i32
    return %c0_i32, %c0_i32_0 : i32, i32
  }
  func.func @transform_12(%arg0: i32) -> (i32, i32) {
    %c0_i32 = arith.constant 0 : i32
    %c0_i32_0 = arith.constant 0 : i32
    %c0_i32_1 = arith.constant 0 : i32
    return %c0_i32, %c0_i32_0 : i32, i32
  }
  func.func @transform_13(%arg0: i32) -> (i32, i32, i32) {
    %c0_i32 = arith.constant 0 : i32
    %c0_i32_0 = arith.constant 0 : i32
    %c0_i32_1 = arith.constant 0 : i32
    return %arg0, %c0_i32, %c0_i32_0 : i32, i32, i32
  }
  func.func @transform_14(%arg0: i32) -> (i32, i32, i32) {
    %c0_i32 = arith.constant 0 : i32
    %c0_i32_0 = arith.constant 0 : i32
    %c0_i32_1 = arith.constant 0 : i32
    return %arg0, %c0_i32, %c0_i32_0 : i32, i32, i32
  }
}

</mosaic_0001>

<bundles_post_ra>
// kernel: respective_layer_forward.3
= control target key start
LH: loop header
LB: loop body
LE: loop exit
PB: predicated region body
PF: predicated region fallthrough
CT: control target
= control target key end

     0   :  { %s1904_s0 = inlined_call_operand.hbm [shape: s32[4,4], index: 0, kind: input, shape index: {}]   ;;  %s1905_s1 = inlined_call_operand.hbm [shape: f32[16,32], index: 1, kind: input, shape index: {}]   ;;  %s1906_s2 = inlined_call_operand.vmem [shape: f32[32,96], index: 2, kind: input, shape index: {}]   ;;  %s1907_s3 = inlined_call_operand.hbm [shape: f32[1,96], index: 3, kind: input, shape index: {}]   ;;  %s1908_s4 = inlined_call_operand.vmem [shape: f32[32,32], index: 4, kind: input, shape index: {}]   ;;  %s1909_s5 = inlined_call_operand.vmem [shape: f32[1,32], index: 5, kind: input, shape index: {}]   ;;  %s1910_s6 = inlined_call_operand.hbm [shape: f32[16,32], index: 6, kind: output, shape index: {}]  }
   0x1   :  { %s1384_s23 = scalar_lea.hbm %s1904_s0, 64 }
   0x2   :  { %p1385_p0 = scmp.ne.s32.totalorder %s1904_s0, %s1384_s23  ;;  %p1388_p1 = scmp.lt.u32.totalorder %s1384_s23, %s1904_s0 }
   0x4   :  { %p1390_p2 = pnand %p1388_p1, %p1385_p0 }
   0x6   :  { %1393 = shalt.err (!%p1390_p2)  }
   0x7   :  { %s1576_s28 = smov [#allocation6]  }
   0x8   :  { %12 = dma.hbm_to_smem %s1904_s0, 64, %s1576_s28, [#allocation5] }
   0x9   :  { %1546 = dma.done.wait [#allocation5], 64 }
   0xa   :  { %1547 = vsyncadd [#allocation5], 4294967232 }
   0xb   :  { %14 = sfence }
   0xc   :  { %15 = vsyncpa [#allocation8], 0  ;;  %s1650_s7 = smov 0  }
   0xd LB: > { %s1577_s8 = smov [#allocation7]   ;;  %s1656_s10 = sadd.s32 4294967295, %s1574_s7   ;;  %s1574_s7 = sphi %s1650_s7, %s21_s7  }
   0xe   : > { %s95_s9 = sshll.u32 %s1577_s8, 4  ;;  %p1327_p4 = scmp.ge.s32.totalorder %s1574_s7, 1  ;;  %s96_s9 = int_to_ptr.vmem [resolvable:$true] %s95_s9 }
   0xf   : > { %p1911_p5 = scmp.eq.s32.totalorder %s1656_s10, 0  ;;  %s1394_s13 = scalar_lea.hbm %s1907_s3, 16 }
  0x10   : > { %p1395_p7 = scmp.ne.s32.totalorder %s1907_s3, %s1394_s13  ;;  %p1401_p11 = scmp.lt.u32.totalorder %s1394_s13, %s1907_s3 }
  0x11   : > { %p1663_p6 = pnand %p1911_p5, %p1327_p4 }
  0x13   : > { %p1396_p8 = pneg %p1663_p6 }
  0x15   : > { %p1397_p9 = pnand %p1396_p8, %p1395_p7 }
  0x17   : > { %p1398_p10 = pneg %p1397_p9 }
  0x19   : > { %p1403_p12 = pnand %p1401_p11, %p1398_p10 }
  0x1b   : > { %1406 = shalt.err (!%p1403_p12)
}
  0x1c   : > { %s1407_s18 = scalar_lea.vmem %s96_s9, 16  ;;  %s1414_s19 = scalar_lea.vmem %s96_s9, 32 }
  0x1d   : > { %p1408_p13 = scmp.ne.s32.totalorder %s96_s9, %s1407_s18  ;;  %p1415_p2 = scmp.lt.s32.totalorder %s96_s9, %s96_s9 }
  0x1e   : > { %p1416_p4 = scmp.lt.s32.totalorder %s1414_s19, %s1407_s18 }
  0x1f   : > { %p1410_p0 = pnand %p1408_p13, %p1396_p8 }
  0x20   : > { %p1417_p5 = por %p1416_p4, %p1415_p2 }
  0x21   : > { %p1411_p1 = pneg %p1410_p0 }
  0x23   : > { %p1418_p3 = pnand %p1417_p5, %p1411_p1 }
  0x25   : > { %1421 = shalt.err (!%p1418_p3)
}
  0x26   : > { %1326 = dma.hbm_to_vmem [thread:$0]  (!%p1663_p6), %s1907_s3, 16, %s96_s9, [#allocation8]  }
  0x27   : > { %p1913_p7 = scmp.lt.s32.totalorder %s1574_s7, 1 }
  0x28   : > { %p1914_p9 = scmp.eq.s32.totalorder (!%p1913_p7), %s1656_s10, 0 }
  0x29   : > { %112 = sbr.rel (%p1913_p7) target bundleno = 2156 (0x86c), region = 36 }
  0x30   : > { %1549 = dma.done.wait (%p1914_p9), [#allocation8], 16   ;;  %p1915_p8 = pmov %p1914_p9 }
  0x31   : > { %s1183_s22 = sshll.u32 %s1656_s10, 7  ;;  %s1578_s30 = smov [#allocation4 + $0x4]  }
  0x32   : > { %1551 = vsyncadd (%p1915_p8), [#allocation8], 4294967280  ;;  %s127_s23 = sld [smem:[#allocation6 + %s1183_s22]]  ;;  %s128_s24 = sadd.s32 1, %s1183_s22 }
  0x33   : > { %s1690_s25 = sld [smem:[#allocation6 + %s128_s24]]  ;;  %s130_s26 = sadd.s32 2, %s1183_s22 }
  0x34   : > { %s1692_s27 = sld [smem:[#allocation6 + %s130_s26]]  ;;  %s132_s28 = sadd.s32 3, %s1183_s22 }
  0x35   : > { %s1694_s29 = sld [smem:[#allocation6 + %s132_s28]]  ;;  %s1579_s8 = smov [#allocation9]  }
  0x36   : > { %s1580_s9 = smov 0   ;;  %p1916_p3 = pmov %p1915_p8 }
  0x38   : > { %1317 = dma.general (%p1916_p3), %s1905_s1, 256, %s1910_s6, %s1578_s30, %s1579_s8, [#allocation10], %s1580_s9, 0  }
  0x39   : > { %p1917_p5 = pmov %p1916_p3 }
  0x3a   : > { %p1918_p6 = pmov %p1916_p3 }
  0x3b   : > { %1553 = dma.done.wait (%p1917_p5), [#allocation4 + $0x4], 256 }
  0x3c   : > { %1555 = vsyncadd (%p1918_p6), [#allocation4 + $0x4], 4294967040  ;;  %p1331_p10 = scmp.gt.s32.totalorder %s1656_s10, 0 }
  0x3e   : > { %1557 = dma.done.wait (%p1331_p10), [#allocation4 + $0x5], 16 }
  0x3f   : > { %1559 = vsyncadd (%p1331_p10), [#allocation4 + $0x5], 4294967280  ;;  %vm168_vm0 = vcmask 257024   ;;  %s1186_s14 = sshll.u32 %s127_s23, 4  ;;  %v1581_v0 = vmov 0.0   ;;  %s1582_s18 = smov [#allocation2]  }
  0x40   : > { %169 = vst.msk [vmem:[#allocation2 + $0x4] sm:$0xf] %vm168_vm0, %v1581_v0  ;;  %s1713_s17 = scalar_lea.hbm %s1910_s6, %s1186_s14  ;;  %s179_s19 = sshll.u32 %s1582_s18, 4  ;;  %s1715_s19 = int_to_ptr.vmem [resolvable:$true] %s179_s19 }
  0x41   : > { %s1187_s20 = sshll.u32 %s1690_s25, 4  ;;  %s1422_s21 = scalar_lea.hbm %s1713_s17, 16 }
  0x42   : > { %p1423_p11 = scmp.ne.s32.totalorder %s1713_s17, %s1422_s21  ;;  %s1723_s24 = scalar_lea.hbm %s1910_s6, 256 }
  0x43   : > { %p1425_p12 = scmp.lt.u32.totalorder %s1713_s17, %s1910_s6  ;;  %p1426_p13 = scmp.lt.u32.totalorder %s1723_s24, %s1422_s21 }
  0x44   : > { %p1428_p1 = scmp.lt.u32.totalorder %s1422_s21, %s1713_s17 }
  0x45   : > { %p1427_p0 = por %p1426_p13, %p1425_p12 }
  0x47   : > { %p1429_p2 = por %p1428_p1, %p1427_p0 }
  0x49   : > { %p1731_p4 = pnand %p1429_p2, %p1423_p11 }
  0x4b   : > { %1433 = shalt.err (!%p1731_p4)  }
  0x4c   : > { %s1434_s25 = scalar_lea.vmem %s1715_s19, 16  ;;  %s1740_s8 = scalar_lea.vmem %s1715_s19, 128 }
  0x4d   : > { %p1435_p7 = scmp.ne.s32.totalorder %s1715_s19, %s1434_s25  ;;  %p1439_p9 = scmp.lt.s32.totalorder %s1715_s19, %s1715_s19 }
  0x4e   : > { %p1440_p8 = scmp.lt.s32.totalorder %s1740_s8, %s1434_s25 }
  0x50   : > { %p1441_p3 = por %p1440_p8, %p1439_p9 }
  0x52   : > { %p1442_p5 = pnand %p1441_p3, %p1435_p7 }
  0x54   : > { %1445 = shalt.err (!%p1442_p5)  }
  0x55   : > { %182 = dma.hbm_to_vmem [thread:$0]  %s1713_s17, 16, %s1715_s19, [#allocation4] }
  0x56   : > { %s184_s11 = scalar_lea.hbm %s1910_s6, %s1187_s20  ;;  %s1583_s12 = smov [#allocation2 + $0x1]  }
  0x57   : > { %s194_s13 = sshll.u32 %s1583_s12, 4  ;;  %s1188_s14 = sshll.u32 %s1692_s27, 4  ;;  %s195_s13 = int_to_ptr.vmem [resolvable:$true] %s194_s13 }
  0x58   : > { %s1754_s18 = scalar_lea.hbm %s1910_s6, %s1188_s14  ;;  %s1446_s21 = scalar_lea.hbm %s184_s11, 16 }
  0x59   : > { %p1447_p6 = scmp.ne.s32.totalorder %s184_s11, %s1446_s21  ;;  %p1449_p10 = scmp.lt.u32.totalorder %s184_s11, %s1910_s6 }
  0x5a   : > { %p1450_p11 = scmp.lt.u32.totalorder %s1723_s24, %s1446_s21  ;;  %p1452_p13 = scmp.lt.u32.totalorder %s1446_s21, %s184_s11 }
  0x5c   : > { %p1451_p12 = por %p1450_p11, %p1449_p10 }
  0x5e   : > { %p1453_p0 = por %p1452_p13, %p1451_p12 }
  0x60   : > { %p1454_p1 = pnand %p1453_p0, %p1447_p6 }
  0x62   : > { %1457 = shalt.err (!%p1454_p1)  }
  0x63   : > { %s1458_s20 = scalar_lea.vmem %s195_s13, 16  ;;  %p1463_p7 = scmp.lt.s32.totalorder %s195_s13, %s1715_s19 }
  0x64   : > { %p1459_p2 = scmp.ne.s32.totalorder %s195_s13, %s1458_s20  ;;  %p1464_p9 = scmp.lt.s32.totalorder %s1740_s8, %s1458_s20 }
  0x66   : > { %p1465_p8 = por %p1464_p9, %p1463_p7 }
  0x68   : > { %p1466_p3 = pnand %p1465_p8, %p1459_p2 }
  0x6a   : > { %1469 = shalt.err (!%p1466_p3)  }
  0x6b   : > { %197 = dma.hbm_to_vmem [thread:$0]  %s184_s11, 16, %s195_s13, [#allocation4 + $0x1] }
  0x6c   : > { %s1189_s27 = sshll.u32 %s1694_s29, 4  ;;  %s1584_s26 = smov [#allocation2 + $0x2]  }
  0x6d   : > { %s209_s28 = sshll.u32 %s1584_s26, 4  ;;  %s1766_s0 = scalar_lea.hbm %s1910_s6, %s1189_s27  ;;  %s210_s28 = int_to_ptr.vmem [resolvable:$true] %s209_s28 }
  0x6e   : > { %s1470_s12 = scalar_lea.hbm %s1754_s18, 16  ;;  %p1473_p6 = scmp.lt.u32.totalorder %s1754_s18, %s1910_s6 }
  0x6f   : > { %p1471_p5 = scmp.ne.s32.totalorder %s1754_s18, %s1470_s12  ;;  %p1474_p10 = scmp.lt.u32.totalorder %s1723_s24, %s1470_s12 }
  0x70   : > { %p1476_p12 = scmp.lt.u32.totalorder %s1470_s12, %s1754_s18 }
  0x71   : > { %p1475_p11 = por %p1474_p10, %p1473_p6 }
  0x73   : > { %p1477_p13 = por %p1476_p12, %p1475_p11 }
  0x75   : > { %p1478_p0 = pnand %p1477_p13, %p1471_p5 }
  0x77   : > { %1481 = shalt.err (!%p1478_p0)  }
  0x78   : > { %s1482_s29 = scalar_lea.vmem %s210_s28, 16  ;;  %p1487_p2 = scmp.lt.s32.totalorder %s210_s28, %s1715_s19 }
  0x79   : > { %p1483_p1 = scmp.ne.s32.totalorder %s210_s28, %s1482_s29  ;;  %p1488_p7 = scmp.lt.s32.totalorder %s1740_s8, %s1482_s29 }
  0x7b   : > { %p1489_p9 = por %p1488_p7, %p1487_p2 }
  0x7d   : > { %p1490_p8 = pnand %p1489_p9, %p1483_p1 }
  0x7f   : > { %1493 = shalt.err (!%p1490_p8)  }
  0x80   : > { %212 = dma.hbm_to_vmem [thread:$0]  %s1754_s18, 16, %s210_s28, [#allocation4 + $0x2] }
  0x81   : > { %s1585_s11 = smov [#allocation2 + $0x3]   ;;  %s1494_s16 = scalar_lea.hbm %s1766_s0, 16 }
  0x82   : > { %s224_s13 = sshll.u32 %s1585_s11, 4  ;;  %p1495_p3 = scmp.ne.s32.totalorder %s1766_s0, %s1494_s16  ;;  %s225_s13 = int_to_ptr.vmem [resolvable:$true] %s224_s13 }
  0x83   : > { %p1497_p5 = scmp.lt.u32.totalorder %s1766_s0, %s1910_s6  ;;  %p1498_p6 = scmp.lt.u32.totalorder %s1723_s24, %s1494_s16 }
  0x84   : > { %p1500_p11 = scmp.lt.u32.totalorder %s1494_s16, %s1766_s0 }
  0x85   : > { %p1499_p10 = por %p1498_p6, %p1497_p5 }
  0x87   : > { %p1501_p12 = por %p1500_p11, %p1499_p10 }
  0x89   : > { %p1502_p13 = pnand %p1501_p12, %p1495_p3 }
  0x8b   : > { %1505 = shalt.err (!%p1502_p13)  }
  0x8c   : > { %s1506_s23 = scalar_lea.vmem %s225_s13, 16  ;;  %p1511_p1 = scmp.lt.s32.totalorder %s225_s13, %s1715_s19 }
  0x8d   : > { %p1507_p0 = scmp.ne.s32.totalorder %s225_s13, %s1506_s23  ;;  %p1512_p2 = scmp.lt.s32.totalorder %s1740_s8, %s1506_s23 }
  0x8f   : > { %p1513_p7 = por %p1512_p2, %p1511_p1 }
  0x91   : > { %p1514_p9 = pnand %p1513_p7, %p1507_p0 }
  0x93   : > { %1517 = shalt.err (!%p1514_p9)  }
  0x94   : > { %227 = dma.hbm_to_vmem [thread:$0]  %s1766_s0, 16, %s225_s13, [#allocation4 + $0x3] }
  0x95   : > { %1560 = dma.done.wait [#allocation4], 16 }
  0x96   : > { %1561 = vsyncadd [#allocation4], 4294967280 }
  0x97   : > { %1562 = dma.done.wait [#allocation4 + $0x1], 16 }
  0x98   : > { %1563 = vsyncadd [#allocation4 + $0x1], 4294967280 }
  0x99   : > { %1564 = dma.done.wait [#allocation4 + $0x2], 16 }
  0x9a   : > { %1565 = vsyncadd [#allocation4 + $0x2], 4294967280 }
  0x9b   : > { %1566 = dma.done.wait [#allocation4 + $0x3], 16 }
  0x9c   : > { %1567 = vsyncadd [#allocation4 + $0x3], 4294967280  ;;  %1249 = vmatprep.subr.mxu1 %v1581_v0  ;;  %v1586_v1 = vmov 0.0|0.0   ;;  %vm1587_vm1 = vmmov 0   ;;  %v238_v2 = vld [vmem:[%s1906_s2] sm:$0xff]  ;;  %v239_v3 = vld [vmem:[%s1906_s2 + $0x8] sm:$0xff]  ;;  %v323_v18 = vlaneseq }
  0x9d   : > { %1300 = vmatprep.subr.bf16.mxu0 %v1586_v1  ;;  %1246 = vmatprep.mubr.msk.f32.mxu0 %vm1587_vm1, %v1581_v0  ;;  %v240_v4 = vld [vmem:[%s1906_s2 + $0x10] sm:$0xff]  ;;  %v1301_v5 = vpack.c.bf16 %v239_v3, %v238_v2  ;;  %v241_v6 = vld [vmem:[%s1906_s2 + $0x18] sm:$0xff]  ;;  %v237_v8 = vld [vmem:[#allocation2] sm:$0xff]  ;;  %vm249_vm2 = vcmask 261120   ;;  %s1588_s25 = smov 64   ;;  %s1589_s9 = smov 96  }
  0x9e   : > { %1251 = vmatprep.mubr.msk.f32.mxu1 %vm1587_vm1, %v1581_v0  ;;  %v1304_v7 = vpack.c.bf16 %v241_v6, %v240_v4  ;;  %v1190_v9 = vld [vmem:[#allocation7] ss:$0 sm:$0xff]  ;;  %s1590_s0 = smov 88   ;;  %s1591_s12 = smov 120   ;;  %vm329_vm3 = vcmask 64512   ;;  %v324_v19 = vand.u32 127, %v323_v18 }
  0x9f   : > { %1302 = vmatpush3.bf16.msra.mxu0 %v1301_v5  ;;  %s1592_s14 = smov 80   ;;  %vm406_vm5 = vcmask 57344   ;;  %s1593_s15 = smov 72   ;;  %v1012_v18 = vld [vmem:[%s1908_s4] sm:$0xff]  ;;  %vm1008_vm6 = vcmask 130048   ;;  %vm1010_vm7 = vcmask 195584  }
  0xa0   : > { %1303 = vmatprep.subr.bf16.mxu0 %v1586_v1  ;;  %vm325_vm4 = vcmp.lt.s32.totalorder %v324_v19, 4  ;;  %s1594_s29 = smov 112   ;;  %s1595_s11 = smov 104   ;;  %v1013_v19 = vld [vmem:[%s1908_s4 + $0x8] sm:$0xff]  ;;  %vm1090_vm8 = vcmask 253952  }
  0xa1   : > { %s1596_s13 = smov 56   ;;  %s1597_s16 = smov 48  }
  0xa2   : > { %s1598_s21 = smov 40   ;;  %s1599_s26 = smov 8  }
  0xa3   : > { %1305 = vmatpush3.bf16.msra.mxu0 %v1304_v7  ;;  %s1600_s28 = smov 16   ;;  %p1332_p8 = scmp.eq.s32.totalorder %s1656_s10, 3 }
  0xa4   : > { %1269 = vmatprep.subr.mxu0 %v1581_v0 }
  0xa6   : > { %1247 = vmatmul.mubr.msk.f32.vlgmr.msra.gmra.mrb[0].mxu0 %vm249_vm2, %v237_v8 }
  0xa7   : > { %1271 = vmatprep.mubr.msk.f32.mxu0 %vm1587_vm1, %v1581_v0 }
 0x179   : > { %v319_v10 = vpop.f32.mrb[0].mxu0 }
 0x17a   : > { %v1813_v11 = vadd.f32 %v1190_v9, %v319_v10  ;;  %v1248_v12 = vpop.f32.mrb[1].mxu0 }
 0x17c   : > { %418 = vrot.lane.b32.xlu1 %v1813_v11, %s1588_s25  ;;  %327 = vrot.lane.b32.xlu0 %v1813_v11, %s1589_s9  ;;  %s1601_s25 = smov 24  }
 0x180   : > { %496 = vrot.lane.b32.xlu1 %v1813_v11, %s1590_s0 }
 0x184   : > { %494 = vrot.lane.b32.xlu1 %v1813_v11, %s1591_s12  ;;  %s1602_s12 = smov [#allocation3]  }
 0x188   : > { %663 = vrot.lane.b32.xlu1 %v1813_v11, %s1592_s14  ;;  %s1100_s14 = sshll.u32 %s1602_s12, 4  ;;  %s1101_s14 = int_to_ptr.vmem [resolvable:$true] %s1100_s14 }
 0x189   : > { %p1523_p5 = scmp.lt.s32.totalorder %s1101_s14, %s1101_s14 }
 0x1ee   : > { %v419_v13 = vpop.permute.xlu1 %418  ;;  %v328_v14 = vpop.permute.xlu0 %327 }
 0x1ef   : > { %1250 = vmatpush3.xpose.msk.msra.mxu1 %vm329_vm3, %v328_v14 }
 0x1f0   : > { %1254 = vmatprep.subr.mxu1 %v1581_v0 }
 0x1f2   : > { %v497_v15 = vpop.permute.xlu1 %496  ;;  %1252 = vmatmul.mubr.msk.f32.vlgmr.msra.gmra.mrb[0].mxu1 %vm329_vm3, %v1813_v11 }
 0x1f3   : > { %1255 = vmatpush3.msra.mxu1 %v419_v13  ;;  %1256 = vmatprep.mubr.msk.f32.mxu1 %vm1587_vm1, %v1581_v0 }
 0x1f4   : > { %1259 = vmatprep.subr.mxu1 %v1581_v0 }
 0x1f6   : > { %v495_v16 = vpop.permute.xlu1 %494 }
 0x1fa   : > { %v664_v17 = vpop.permute.xlu1 %663 }
 0x1fb   : > { %1270 = vmatpush3.xpose.msk.msra.mxu0 %vm329_vm3, %v664_v17 }
 0x1fc   : > { %1279 = vmatprep.subr.mxu0 %v1581_v0 }
 0x2c5   : > { %v400_v20 = vpop.f32.mrb[0].mxu1 }
 0x2c6   : > { %v404_v21 = vmul.f32 0.35355338, %v400_v20  ;;  %v1253_v22 = vpop.f32.mrb[1].mxu1  ;;  %v1307_v20 = vpack.c.bf16 %v1013_v19, %v1012_v18 }
 0x2c8   : > { %v405_v23 = vsel %vm325_vm4, %v404_v21, -1e+30  ;;  %v1014_v21 = vld [vmem:[%s1908_s4 + $0x10] sm:$0xff] }
 0x2c9   : > { %v407_v24 = vsel %vm406_vm5, %v405_v23, -inf }
 0x2ca   : > { %408 = vmax.xlane.f32.xlu0 %v407_v24 }
 0x2e0   : > { %830 = vrot.lane.b32.xlu0 %v1813_v11, %s1593_s15  ;;  %s1518_s15 = scalar_lea.vmem %s1101_s14, 16 }
 0x2e1   : > { %p1519_p3 = scmp.ne.s32.totalorder %s1101_s14, %s1518_s15  ;;  %p1524_p6 = scmp.lt.s32.totalorder %s1518_s15, %s1518_s15 }
 0x2e3   : > { %p1525_p10 = por %p1524_p6, %p1523_p5 }
 0x2e5   : > { %p1526_p11 = pnand %p1525_p10, %p1519_p3 }
 0x357   : > { %v409_v25 = vpop.xlane.xlu0 %408 }
 0x358   : > { %v410_v26 = vsub.f32 %v405_v23, %v409_v25 }
 0x35a   : > { %v411_v27 = vmul.f32 1.442695, %v410_v26 }
 0x35b   : > { %v831_v32 = vpop.permute.xlu0 %830 }
 0x35c   : > { %1368 = vpow2.f32 %v411_v27 }
 0x366   : > { %v1369_v28 = vpop.eup %1368 }
 0x367   : > { %v413_v29 = vsel %vm406_vm5, %v1369_v28, 0.0 }
 0x368   : > { %414 = vadd.xlane.f32.xlu1 %v413_v29 }
 0x379   : > { %661 = vrot.lane.b32.xlu1 %v1813_v11, %s1594_s29 }
 0x37d   : > { %828 = vrot.lane.b32.xlu1 %v1813_v11, %s1595_s11 }
 0x3f5   : > { %v415_v30 = vpop.xlane.xlu1 %414 }
 0x3f6   : > { %1370 = vrcp.f32 %v415_v30 }
 0x3f9   : > { %v662_v31 = vpop.permute.xlu1 %661 }
 0x3fa   : > { %1272 = vmatmul.mubr.msk.f32.vlgmr.msra.gmra.mrb[2].mxu0 %vm329_vm3, %v662_v31 }
 0x3fb   : > { %1280 = vmatpush3.xpose.msk.msra.mxu0 %vm329_vm3, %v831_v32  ;;  %1281 = vmatprep.mubr.msk.f32.mxu0 %vm1587_vm1, %v1581_v0 }
 0x3fc   : > { %1306 = vmatprep.subr.bf16.mxu0 %v1586_v1 }
 0x3fd   : > { %v829_v33 = vpop.permute.xlu1 %828 }
 0x3fe   : > { %1282 = vmatmul.mubr.msk.f32.vlgmr.msra.gmra.mrb[4].mxu0 %vm329_vm3, %v829_v33 }
 0x3ff   : > { %1297 = vmatprep.mubr.msk.f32.mxu0 %vm1587_vm1, %v1581_v0  ;;  %1308 = vmatpush3.bf16.msra.mxu0 %v1307_v20 }
 0x400   : > { %v1371_v34 = vpop.eup %1370  ;;  %1309 = vmatprep.subr.bf16.mxu0 %v1586_v1 }
 0x401   : > { %v417_v35 = vmul.f32 %v1371_v34, %v1369_v28  ;;  %v1016_v34 = vld [vmem:[%s1909_s5] sm:$0x1] }
 0x403   : > { %1257 = vmatmul.mubr.msk.f32.vlgmr.msra.gmra.mrb[2].mxu1 %vm329_vm3, %v417_v35 }
 0x404   : > { %1260 = vmatpush3.xpose.msk.msra.mxu1 %vm329_vm3, %v497_v15  ;;  %1261 = vmatprep.mubr.msk.f32.mxu1 %vm1587_vm1, %v1581_v0 }
 0x405   : > { %1264 = vmatprep.subr.mxu1 %v1581_v0 }
 0x407   : > { %1262 = vmatmul.mubr.msk.f32.vlgmr.msra.gmra.mrb[4].mxu1 %vm329_vm3, %v495_v16 }
 0x408   : > { %1266 = vmatprep.mubr.msk.f32.mxu1 %vm1587_vm1, %v1581_v0 }
 0x4cd   : > { %v735_v36 = vpop.f32.mrb[2].mxu0 }
 0x4ce   : > { %v739_v37 = vmul.f32 0.35355338, %v735_v36  ;;  %v1273_v38 = vpop.f32.mrb[3].mxu0 }
 0x4d0   : > { %v740_v39 = vsel %vm325_vm4, %v739_v37, -1e+30 }
 0x4d1   : > { %v902_v40 = vpop.f32.mrb[4].mxu0  ;;  %v741_v41 = vsel %vm406_vm5, %v740_v39, -inf }
 0x4d2   : > { %742 = vmax.xlane.f32.xlu0 %v741_v41  ;;  %v1283_v42 = vpop.f32.mrb[5].mxu0  ;;  %v906_v46 = vmul.f32 0.35355338, %v902_v40 }
 0x4d4   : > { %v907_v51 = vsel %vm325_vm4, %v906_v46, -1e+30 }
 0x4d5   : > { %v908_v52 = vsel %vm406_vm5, %v907_v51, -inf }
 0x4d6   : > { %v1853_v43 = vpop.f32.mrb[2].mxu1 }
 0x4d7   : > { %v1258_v44 = vpop.f32.mrb[3].mxu1 }
 0x4da   : > { %v568_v45 = vpop.f32.mrb[4].mxu1 }
 0x4db   : > { %v572_v47 = vmul.f32 0.35355338, %v568_v45  ;;  %v1263_v48 = vpop.f32.mrb[5].mxu1 }
 0x4dd   : > { %v573_v49 = vsel %vm325_vm4, %v572_v47, -1e+30 }
 0x4de   : > { %v574_v50 = vsel %vm406_vm5, %v573_v49, -inf }
 0x4df   : > { %575 = vmax.xlane.f32.xlu1 %v574_v50 }
 0x4e3   : > { %909 = vmax.xlane.f32.xlu1 %v908_v52 }
 0x55f   : > { %v743_v53 = vpop.xlane.xlu0 %742 }
 0x560   : > { %v744_v54 = vsub.f32 %v740_v39, %v743_v53 }
 0x562   : > { %v745_v55 = vmul.f32 1.442695, %v744_v54 }
 0x564   : > { %1372 = vpow2.f32 %v745_v55 }
 0x56c   : > { %v576_v56 = vpop.xlane.xlu1 %575 }
 0x56d   : > { %v577_v2 = vsub.f32 %v573_v49, %v576_v56 }
 0x56e   : > { %v1373_v57 = vpop.eup %1372 }
 0x56f   : > { %v747_v58 = vsel %vm406_vm5, %v1373_v57, 0.0  ;;  %v578_v3 = vmul.f32 1.442695, %v577_v2 }
 0x570   : > { %748 = vadd.xlane.f32.xlu1 %v747_v58  ;;  %v910_v59 = vpop.xlane.xlu1 %909 }
 0x571   : > { %v911_v60 = vsub.f32 %v907_v51, %v910_v59 }
 0x573   : > { %v912_v61 = vmul.f32 1.442695, %v911_v60 }
 0x575   : > { %1374 = vpow2.f32 %v912_v61 }
 0x576   : > { %1376 = vpow2.f32 %v578_v3 }
 0x57f   : > { %v1375_v62 = vpop.eup %1374 }
 0x580   : > { %v914_v63 = vsel %vm406_vm5, %v1375_v62, 0.0  ;;  %v1377_v4 = vpop.eup %1376 }
 0x581   : > { %585 = vrot.lane.b32.xlu1 %v1813_v11, %s1596_s13  ;;  %915 = vadd.xlane.f32.xlu0 %v914_v63  ;;  %v580_v5 = vsel %vm406_vm5, %v1377_v4, 0.0 }
 0x597   : > { %752 = vrot.lane.b32.xlu0 %v1813_v11, %s1597_s16 }
 0x5a5   : > { %581 = vadd.xlane.f32.xlu1 %v580_v5 }
 0x5b6   : > { %919 = vrot.lane.b32.xlu1 %v1813_v11, %s1598_s21 }
 0x5fd   : > { %v749_v6 = vpop.xlane.xlu1 %748 }
 0x601   : > { %v586_v7 = vpop.permute.xlu1 %585 }
 0x602   : > { %1265 = vmatpush3.msra.mxu1 %v586_v7 }
 0x603   : > { %1274 = vmatprep.subr.mxu1 %v1581_v0 }
 0x60e   : > { %v916_v9 = vpop.xlane.xlu0 %915 }
 0x612   : > { %v753_v14 = vpop.permute.xlu0 %752 }
 0x632   : > { %v582_v8 = vpop.xlane.xlu1 %581 }
 0x633   : > { %1378 = vrcp.f32 %v582_v8 }
 0x634   : > { %1380 = vrcp.f32 %v749_v6 }
 0x635   : > { %1382 = vrcp.f32 %v916_v9 }
 0x636   : > { %v920_v16 = vpop.permute.xlu1 %919 }
 0x63d   : > { %v1379_v10 = vpop.eup %1378 }
 0x63e   : > { %v584_v12 = vmul.f32 %v1379_v10, %v1377_v4  ;;  %v1381_v13 = vpop.eup %1380 }
 0x63f   : > { %v751_v11 = vmul.f32 %v1381_v13, %v1373_v57  ;;  %v1383_v15 = vpop.eup %1382 }
 0x640   : > { %1267 = vmatmul.mubr.msk.f32.vlgmr.msra.gmra.mrb[6].mxu1 %vm329_vm3, %v584_v12  ;;  %v918_v17 = vmul.f32 %v1383_v15, %v1375_v62 }
 0x641   : > { %1275 = vmatpush3.msra.mxu1 %v753_v14  ;;  %1276 = vmatprep.mubr.msk.f32.mxu1 %vm1587_vm1, %v1581_v0 }
 0x642   : > { %1284 = vmatprep.subr.mxu1 %v1581_v0 }
 0x644   : > { %1277 = vmatmul.mubr.msk.f32.vlgmr.msra.gmra.mrb[8].mxu1 %vm329_vm3, %v751_v11 }
 0x645   : > { %1285 = vmatpush3.msra.mxu1 %v920_v16  ;;  %1286 = vmatprep.mubr.msk.f32.mxu1 %vm1587_vm1, %v1581_v0  ;;  %v1015_v0 = vld [vmem:[%s1908_s4 + $0x18] sm:$0xff] }
 0x646   : > { %v1310_v22 = vpack.c.bf16 %v1015_v0, %v1014_v21 }
 0x648   : > { %1287 = vmatmul.mubr.msk.f32.vlgmr.msra.gmra.mrb[10].mxu1 %vm329_vm3, %v918_v17  ;;  %1311 = vmatpush3.bf16.msra.mxu0 %v1310_v22 }
 0x713   : > { %v657_v23 = vpop.f32.mrb[6].mxu1 }
 0x714   : > { %996 = vrot.lane.b32.xlu1 %v657_v23, %s1599_s26  ;;  %v1268_v24 = vpop.f32.mrb[7].mxu1 }
 0x717   : > { %v824_v25 = vpop.f32.mrb[8].mxu1 }
 0x718   : > { %1000 = vrot.lane.b32.xlu0 %v824_v25, %s1600_s28  ;;  %v1278_v26 = vpop.f32.mrb[9].mxu1 }
 0x71b   : > { %v991_v1 = vpop.f32.mrb[10].mxu1 }
 0x71c   : > { %1004 = vrot.lane.b32.xlu1 %v991_v1, %s1601_s25  ;;  %v1288_v27 = vpop.f32.mrb[11].mxu1 }
 0x786   : > { %v997_v28 = vpop.permute.xlu1 %996 }
 0x787   : > { %v1007_v30 = vsel %vm329_vm3, %v1853_v43, %v997_v28 }
 0x78a   : > { %v1001_v29 = vpop.permute.xlu0 %1000 }
 0x78b   : > { %v1009_v31 = vsel %vm1008_vm6, %v1007_v30, %v1001_v29 }
 0x78e   : > { %v1005_v32 = vpop.permute.xlu1 %1004 }
 0x78f   : > { %v1011_v33 = vsel %vm1010_vm7, %v1009_v31, %v1005_v32 }
 0x790   : > { %1298 = vmatmul.mubr.msk.f32.vlgmr.msra.gmra.mrb[6].mxu0 %vm249_vm2, %v1011_v33 }
 0x863   : > { %v1086_v35 = vpop.f32.mrb[6].mxu0 }
 0x864   : > { %v1087_v36 = vadd.f32 %v1086_v35, %v1016_v34  ;;  %v1299_v37 = vpop.f32.mrb[7].mxu0 }
 0x866   : > { %1091 = vst.msk [vmem:[#allocation3] sm:$0x1] %vm1090_vm8, %v1087_v36 }
 0x867   : > { %1529 = shalt.err (!%p1526_p11)  }
 0x868   : > { %1541 = shalt.err (!%p1731_p4)  }
 0x869   : > { %1103 = dma.vmem_to_hbm [thread:$0]  %s1101_s14, 16, %s1713_s17, [#allocation4 + $0x5] }
 0x86a   : > { %1569 = dma.done.wait (%p1332_p8), [#allocation4 + $0x5], 16 }
 0x86b   : > { %1571 = vsyncadd (%p1332_p8), [#allocation4 + $0x5], 4294967280 }
 0x86c PF: > { %s21_s7 = sadd.s32 1, %s1574_s7  }
 0x86d   : > { %p18_p12 = scmp.ge.s32.totalorder %s21_s7, 5  }
 0x86f   :  { %20 = sbr.rel (!%p18_p12) target bundleno = 13 (0xd), region = 102 }
 0x876   :  { %1110 = vsyncpa [#allocation8], 1 }
 0x877   :  { %1112 = vsyncpa [#allocation8 + $0x1], 1 }
 0x878   :  { %1113 = vsyncmov [#allocation4] }
 0x87b   :  { %s1114_s30 = vpop.sfrf %1113 }
 0x87c   :  { %p1206_p4 = scmp.ne.s32.totalorder %s1114_s30, 0 }
 0x87e   :  { %1118 = shalt.err (%p1206_p4)  }
 0x87f   :  { %1120 = vsyncmov [#allocation4 + $0x1] }
 0x882   :  { %s1121_s17 = vpop.sfrf %1120 }
 0x883   :  { %p1207_p13 = scmp.ne.s32.totalorder %s1121_s17, 0 }
 0x885   :  { %1125 = shalt.err (%p1207_p13)  }
 0x886   :  { %1127 = vsyncmov [#allocation4 + $0x2] }
 0x889   :  { %s1128_s10 = vpop.sfrf %1127 }
 0x88a   :  { %p1208_p0 = scmp.ne.s32.totalorder %s1128_s10, 0 }
 0x88c   :  { %1132 = shalt.err (%p1208_p0)  }
 0x88d   :  { %1134 = vsyncmov [#allocation4 + $0x3] }
 0x890   :  { %s1135_s29 = vpop.sfrf %1134 }
 0x891   :  { %p1209_p1 = scmp.ne.s32.totalorder %s1135_s29, 0 }
 0x893   :  { %1139 = shalt.err (%p1209_p1)  }
 0x894   :  { %1141 = vsyncmov [#allocation4 + $0x4] }
 0x897   :  { %s1142_s7 = vpop.sfrf %1141 }
 0x898   :  { %p1210_p2 = scmp.ne.s32.totalorder %s1142_s7, 0 }
 0x89a   :  { %1146 = shalt.err (%p1210_p2)  }
 0x89b   :  { %1148 = vsyncmov [#allocation4 + $0x5] }
 0x89e   :  { %s1149_s1 = vpop.sfrf %1148 }
 0x89f   :  { %p1211_p7 = scmp.ne.s32.totalorder %s1149_s1, 0 }
 0x8a1   :  { %1153 = shalt.err (%p1211_p7)  }

// kernel: respective_layer_forward.2
= control target key start
LH: loop header
LB: loop body
LE: loop exit
PB: predicated region body
PF: predicated region fallthrough
CT: control target
= control target key end

     0   :  { %s3806_s0 = inlined_call_operand.vmem [shape: f32[4,8,32], index: 0, kind: input, shape index: {}]   ;;  %s3807_s1 = inlined_call_operand.vmem [shape: f32[1,32], index: 1, kind: input, shape index: {}]   ;;  %s3808_s2 = inlined_call_operand.vmem [shape: f32[1,32], index: 2, kind: input, shape index: {}]   ;;  %s3809_s3 = inlined_call_operand.vmem [shape: f32[32,96], index: 3, kind: input, shape index: {}]   ;;  %s3810_s4 = inlined_call_operand.vmem [shape: f32[1,96], index: 4, kind: input, shape index: {}]   ;;  %s3811_s5 = inlined_call_operand.vmem [shape: f32[32,32], index: 5, kind: input, shape index: {}]   ;;  %s3812_s6 = inlined_call_operand.vmem [shape: f32[1,32], index: 6, kind: input, shape index: {}]   ;;  %s3813_s7 = inlined_call_operand.vmem [shape: f32[1,32], index: 7, kind: input, shape index: {}]   ;;  %s3814_s8 = inlined_call_operand.vmem [shape: f32[1,32], index: 8, kind: input, shape index: {}]   ;;  %s3815_s9 = inlined_call_operand.hbm [shape: f32[32,32], index: 9, kind: input, shape index: {}]   ;;  %s3816_s10 = inlined_call_operand.hbm [shape: f32[1,32], index: 10, kind: input, shape index: {}]   ;;  %s3817_s11 = inlined_call_operand.hbm [shape: f32[32,32], index: 11, kind: input, shape index: {}]   ;;  %s3818_s12 = inlined_call_operand.hbm [shape: f32[1,32], index: 12, kind: input, shape index: {}]   ;;  %s3819_s13 = inlined_call_operand.hbm [shape: f32[4,8,32], index: 13, kind: output, shape index: {0}]   ;;  %s3820_s14 = inlined_call_operand.hbm [shape: f32[4,8,8], index: 14, kind: output, shape index: {1}]  }
   0x1   :  { %3832 = sst [smem:[#allocation24_spill]] %s3815_s9 }
   0x2   :  { %3833 = sst [smem:[#allocation25_spill]] %s3816_s10 }
   0x3   :  { %3834 = sst [smem:[#allocation26_spill]] %s3819_s13 }
   0x4   :  { %3835 = sst [smem:[#allocation27_spill]] %s3820_s14 }
   0x5   :  { %20 = vsyncpa [#allocation3], 0 }
   0x6   :  { %21 = vsyncpa [#allocation6], 0 }
   0x7   :  { %22 = vsyncpa [#allocation9], 0 }
   0x8   :  { %23 = vsyncpa [#allocation4], 0 }
   0x9   :  { %25 = vsyncpa [#allocation4 + $0x1], 0 }
   0xa   :  { %26 = vsyncpa [#allocation12], 0 }
   0xb   :  { %28 = vsyncpa [#allocation12 + $0x1], 0  ;;  %s3307_s29 = smov 0   ;;  %s3309_s30 = smov 0  }
   0xc   :  { %s3311_s15 = smov 0   ;;  %s3313_s16 = smov 0  }
   0xd LB: > { %3836 = sst [smem:[#allocation18_spill]] %s3193_s29  ;;  %s3328_s17 = sadd.s32 4294967295, %s3205_s16   ;;  %s3205_s16 = sphi %s3313_s16, %s3864_s16   ;;  %s3201_s15 = sphi %s3311_s15, %s3866_s15   ;;  %s3197_s30 = sphi %s3309_s30, %s3868_s30   ;;  %s3193_s29 = sphi %s3307_s29, %s3867_s29  }
   0xe   : > { %3837 = sst [smem:[#allocation19_spill]] %s3201_s15  ;;  %s2558_s18 = sadd.s32 4294967294, %s3205_s16  }
   0xf   : > { %3838 = sst [smem:[#allocation20_spill]] %s3205_s16  ;;  %s3332_s19 = sadd.s32 1, %s3205_s16  }
  0x10   : > { %3839 = sst [smem:[#allocation21_spill]] %s3332_s19  ;;  %s319_s20 = sadd.s32 1, %s3201_s15 }
  0x11   : > { %s316_s21 = ssub.s32 %s3205_s16, %s3332_s19  ;;  %p329_p0 = scmp.ne.s32.totalorder %s3201_s15, %s3197_s30 }
  0x12   : > { %p317_p1 = scmp.eq.s32.totalorder %s316_s21, 0  ;;  %p330_p2 = scmp.eq.s32.totalorder %s3328_s17, 1 }
  0x13   : > { %p335_p3 = scmp.ne.s32.totalorder %s3197_s30, %s3193_s29  ;;  %p336_p4 = scmp.eq.s32.totalorder %s2558_s18, 1 }
  0x14   : > { %s3343_s22 = scalar_select %p317_p1, %s3201_s15, %s319_s20  }
  0x15   : > { %p3345_p5 = por %p330_p2, %p329_p0  ;;  %p3349_p6 = por %p336_p4, %p335_p3 }
  0x16   : > { %3840 = sst [smem:[#allocation22_spill]] %s3343_s22  ;;  %p2559_p7 = scmp.ge.s32.totalorder %s3205_s16, 1 }
  0x17   : > { %s3841_s23 = scalar_select %p3345_p5, 1, 0 }
  0x18   : > { %s3842_s24 = scalar_select %p3349_p6, 1, 0 }
  0x19   : > { %p369_p8 = scmp.lt.s32.totalorder %s3205_s16, 3  ;;  %p3827_p9 = scmp.eq.s32.totalorder %s3328_s17, 0 }
  0x1a   : > { %3843 = sst [smem:[#allocation23_spill]] %s3842_s24  ;;  %s3207_s26 = smov [#allocation5]  }
  0x1b   : > { %p3356_p10 = pnand %p2559_p7, %p369_p8  ;;  %s419_s27 = sshll.u32 %s3207_s26, 4  ;;  %s420_s27 = int_to_ptr.vmem [resolvable:$true] %s419_s27 }
  0x1c   : > { %s3208_s28 = smov [#allocation2]   ;;  %s3209_s21 = smov [#allocation7]  }
  0x1d   : > { %s3844_s25 = scalar_select %p3356_p10, 1, 0 }
  0x1e   : > { %p2859_p11 = pneg %p3356_p10  ;;  %s405_s18 = sshll.u32 %s3208_s28, 4  ;;  %s3368_s18 = int_to_ptr.vmem [resolvable:$true] %s405_s18 }
  0x1f   : > { %s3370_s22 = sshll.u32 %s3209_s21, 4  ;;  %s3846_s10 = sld [smem:[#allocation25_spill]]  ;;  %s430_s22 = int_to_ptr.vmem [resolvable:$true] %s3370_s22 }
  0x20   : > { %p3364_p12 = pnand %p3827_p9, %p2859_p11 }
  0x22   : > { %p3380_p0 = pneg %p3364_p12 }
  0x25   : > { %s2987_s26 = scalar_lea.hbm %s3846_s10, 16 }
  0x26   : > { %p2988_p13 = scmp.ne.s32.totalorder %s3846_s10, %s2987_s26  ;;  %p2994_p3 = scmp.lt.u32.totalorder %s2987_s26, %s3846_s10 }
  0x28   : > { %p2990_p1 = pnand %p3380_p0, %p2988_p13 }
  0x2a   : > { %p2991_p2 = pneg %p2990_p1 }
  0x2c   : > { %p2996_p4 = pnand %p2994_p3, %p2991_p2 }
  0x2e   : > { %2999 = shalt.err (!%p2996_p4)
}
  0x2f   : > { %s3000_s15 = scalar_lea.vmem %s420_s27, 16  ;;  %s3007_s29 = scalar_lea.vmem %s420_s27, 32 }
  0x30   : > { %p3001_p7 = scmp.ne.s32.totalorder %s420_s27, %s3000_s15  ;;  %p3008_p9 = scmp.lt.s32.totalorder %s420_s27, %s420_s27 }
  0x31   : > { %p3009_p6 = scmp.lt.s32.totalorder %s3007_s29, %s3000_s15 }
  0x32   : > { %p3003_p8 = pnand %p3001_p7, %p3380_p0 }
  0x33   : > { %p3010_p5 = por %p3009_p6, %p3008_p9 }
  0x34   : > { %p3004_p11 = pneg %p3003_p8 }
  0x36   : > { %p3011_p10 = pnand %p3010_p5, %p3004_p11 }
  0x38   : > { %3014 = shalt.err (!%p3011_p10)
}
  0x39   : > { %2865 = dma.hbm_to_vmem [thread:$0]  (!%p3364_p12), %s3846_s10, 16, %s420_s27, [#allocation6]  }
  0x3a   : > { %s3848_s9 = sld [smem:[#allocation24_spill]] }
  0x40   : > { %s3015_s21 = scalar_lea.hbm %s3848_s9, 512 }
  0x41   : > { %p3016_p13 = scmp.ne.s32.totalorder %s3848_s9, %s3015_s21  ;;  %p3022_p5 = scmp.lt.u32.totalorder %s3015_s21, %s3848_s9 }
  0x43   : > { %p3018_p1 = pnand %p3016_p13, %p3380_p0 }
  0x45   : > { %p3019_p6 = pneg %p3018_p1 }
  0x47   : > { %p3024_p9 = pnand %p3022_p5, %p3019_p6 }
  0x49   : > { %3027 = shalt.err (!%p3024_p9)
}
  0x4a   : > { %s3028_s27 = scalar_lea.vmem %s3368_s18, 512  ;;  %p3036_p4 = scmp.lt.s32.totalorder %s3368_s18, %s3368_s18 }
  0x4b   : > { %p3029_p10 = scmp.ne.s32.totalorder %s3368_s18, %s3028_s27  ;;  %p3037_p7 = scmp.lt.s32.totalorder %s3028_s27, %s3028_s27 }
  0x4d   : > { %p3031_p2 = pnand %p3029_p10, %p3380_p0  ;;  %p3038_p8 = por %p3037_p7, %p3036_p4 }
  0x4f   : > { %p3032_p3 = pneg %p3031_p2 }
  0x51   : > { %p3039_p11 = pnand %p3038_p8, %p3032_p3 }
  0x53   : > { %3042 = shalt.err (!%p3039_p11)
}
  0x54   : > { %s3210_s13 = smov 128   ;;  %s3211_s14 = smov 8  }
  0x55   : > { %2862 = dma.hbm_to_vmem [thread:$0]  (!%p3364_p12), %s3848_s9, 512, %s3368_s18, [#allocation3], %s3210_s13, %s3210_s13, %s3211_s14  }
  0x56   : > { %s3043_s21 = scalar_lea.hbm %s3817_s11, 512 }
  0x57   : > { %p3044_p13 = scmp.ne.s32.totalorder %s3817_s11, %s3043_s21  ;;  %p3050_p5 = scmp.lt.u32.totalorder %s3043_s21, %s3817_s11 }
  0x59   : > { %p3046_p1 = pnand %p3044_p13, %p3380_p0 }
  0x5b   : > { %p3047_p6 = pneg %p3046_p1 }
  0x5d   : > { %p3052_p9 = pnand %p3050_p5, %p3047_p6 }
  0x5f   : > { %3055 = shalt.err (!%p3052_p9)
}
  0x60   : > { %s3056_s19 = scalar_lea.vmem %s430_s22, 512  ;;  %p3064_p4 = scmp.lt.s32.totalorder %s430_s22, %s430_s22 }
  0x61   : > { %p3057_p10 = scmp.ne.s32.totalorder %s430_s22, %s3056_s19  ;;  %p3065_p7 = scmp.lt.s32.totalorder %s3056_s19, %s3056_s19 }
  0x63   : > { %p3059_p2 = pnand %p3057_p10, %p3380_p0  ;;  %p3066_p8 = por %p3065_p7, %p3064_p4 }
  0x65   : > { %p3060_p3 = pneg %p3059_p2 }
  0x67   : > { %p3067_p11 = pnand %p3066_p8, %p3060_p3 }
  0x69   : > { %3070 = shalt.err (!%p3067_p11)
}
  0x6a   : > { %2868 = dma.hbm_to_vmem [thread:$0]  (!%p3364_p12), %s3817_s11, 512, %s430_s22, [#allocation6], %s3210_s13, %s3210_s13, %s3211_s14  }
  0x6b   : > { %s3212_s10 = smov [#allocation8]   ;;  %s3071_s15 = scalar_lea.hbm %s3818_s12, 16 }
  0x6c   : > { %s443_s16 = sshll.u32 %s3212_s10, 4  ;;  %p3072_p13 = scmp.ne.s32.totalorder %s3818_s12, %s3071_s15  ;;  %s444_s16 = int_to_ptr.vmem [resolvable:$true] %s443_s16 }
  0x6d   : > { %p3078_p5 = scmp.lt.u32.totalorder %s3071_s15, %s3818_s12 }
  0x6e   : > { %p3074_p1 = pnand %p3072_p13, %p3380_p0 }
  0x70   : > { %p3075_p6 = pneg %p3074_p1 }
  0x72   : > { %p3080_p9 = pnand %p3078_p5, %p3075_p6 }
  0x74   : > { %3083 = shalt.err (!%p3080_p9)
}
  0x75   : > { %s3084_s22 = scalar_lea.vmem %s444_s16, 16  ;;  %s3091_s13 = scalar_lea.vmem %s444_s16, 32 }
  0x76   : > { %p3085_p10 = scmp.ne.s32.totalorder %s444_s16, %s3084_s22  ;;  %p3092_p4 = scmp.lt.s32.totalorder %s444_s16, %s444_s16 }
  0x77   : > { %p3093_p7 = scmp.lt.s32.totalorder %s3091_s13, %s3084_s22 }
  0x78   : > { %p3087_p2 = pnand %p3085_p10, %p3380_p0 }
  0x79   : > { %p3094_p8 = por %p3093_p7, %p3092_p4 }
  0x7a   : > { %p3088_p3 = pneg %p3087_p2 }
  0x7c   : > { %p3095_p11 = pnand %p3094_p8, %p3088_p3 }
  0x7e   : > { %3098 = shalt.err (!%p3095_p11)
}
  0x7f   : > { %2871 = dma.hbm_to_vmem [thread:$0]  (!%p3364_p12), %s3818_s12, 16, %s444_s16, [#allocation9]  }
  0x80   : > { %p3849_p13 = scmp.ne.s32.totalorder %s3844_s25, 0 }
  0x81   : > { %p3850_p1 = scmp.eq.s32.totalorder (!%p3849_p13), %s3328_s17, 0 }
  0x82   : > { %465 = sbr.rel (%p3849_p13) target bundleno = 3227 (0xc9b), region = 72 }
  0x89   : > { %3172 = dma.done.wait (%p3850_p1), [#allocation3], 512   ;;  %p3851_p0 = pmov %p3850_p1 }
  0x8b   : > { %3174 = vsyncadd (%p3851_p0), [#allocation3], 4294966784  ;;  %p3852_p6 = pmov %p3851_p0 }
  0x8c   : > { %p3853_p5 = pmov %p3851_p0 }
  0x8d   : > { %3176 = dma.done.wait (%p3852_p6), [#allocation6], 528  }
  0x8e   : > { %3178 = vsyncadd (%p3853_p5), [#allocation6], 4294966768  ;;  %p3854_p9 = pmov %p3851_p0 }
  0x8f   : > { %p3855_p12 = pmov %p3851_p0 }
  0x90   : > { %3180 = dma.done.wait (%p3854_p9), [#allocation9], 16  }
  0x91   : > { %3182 = vsyncadd (%p3855_p12), [#allocation9], 4294967280  ;;  %s2572_s9 = sshll.u32 %s3328_s17, 1  ;;  %vm540_vm0 = vcmask 261120   ;;  %v584_v14 = vld [vmem:[%s3809_s3] sm:$0xff]  ;;  %v585_v15 = vld [vmem:[%s3809_s3 + $0x8] sm:$0xff] }
  0x92   : > { %p529_p10 = scmp.lt.s32.totalorder %s2572_s9, 3  ;;  %v586_v16 = vld [vmem:[%s3809_s3 + $0x10] sm:$0xff]  ;;  %v2807_v17 = vpack.c.bf16 %v585_v15, %v584_v14  ;;  %v587_v18 = vld [vmem:[%s3809_s3 + $0x18] sm:$0xff]  ;;  %v2574_v27 = vld [vmem:[%s3807_s1] ss:$0 sm:$0xff]  ;;  %v3213_v36 = vmov 0.0  }
  0x93   : > { %v2811_v19 = vpack.c.bf16 %v587_v18, %v586_v16  ;;  %v2575_v29 = vld [vmem:[%s3808_s2] ss:$0 sm:$0xff]  ;;  %2694 = vmatprep.subr.mxu1 %v3213_v36  ;;  %vm3214_vm1 = vmmov 0   ;;  %s3215_s20 = smov 96   ;;  %s3216_s28 = smov 88   ;;  %vm679_vm2 = vcmask 64512  }
  0x94   : > { %s3870_s9 = smov (!%p529_p10, %s2572_s9), 3  ;;  %2808 = vmatprep.subr.bf16.mxu0 %v2807_v17  ;;  %2696 = vmatprep.mubr.msk.f32.mxu1 %vm3214_vm1, %v3213_v36  ;;  %v2576_v37 = vld [vmem:[%s3810_s4] ss:$0 sm:$0xff]  ;;  %s3218_s10 = smov 72   ;;  %vm1359_vm3 = vcmask 130048   ;;  %vm1361_vm4 = vcmask 195584  }
  0x95   : > { %s2573_s25 = sshll.u32 %s3870_s9, 3  ;;  %2810 = vmatpush3.bf16.msra.mxu0 %v2807_v17  ;;  %s3219_s16 = smov 120  }
  0x96   : > { %s532_s24 = scalar_lea.vmem %s3806_s0, %s2573_s25  ;;  %2812 = vmatprep.subr.bf16.mxu0 %v2811_v19  ;;  %s3220_s26 = smov 112  }
  0x97   : > { %v3474_v0 = vld [vmem:[%s532_s24] sm:$0xff]  ;;  %v3476_v1 = vld [vmem:[%s532_s24 + $0x8] sm:$0xff]  ;;  %s3217_s24 = smov 80   ;;  %s3221_s21 = smov 104  }
  0x98   : > { %v541_v2 = vsel %vm540_vm0, %v3474_v0, 0.0  ;;  %v544_v3 = vsel %vm540_vm0, %v3476_v1, 0.0  ;;  %s3222_s15 = smov 64   ;;  %s3223_s29 = smov 56  }
  0x99   : > { %542 = vadd.xlane.f32.xlu0 %v541_v2  ;;  %2814 = vmatpush3.bf16.msra.mxu0 %v2811_v19  ;;  %s3224_s27 = smov 40   ;;  %s3225_s19 = smov 48  }
  0x9a   : > { %2714 = vmatprep.subr.mxu0 %v3213_v36  ;;  %s3625_s22 = sand.u32 1, %s3197_s30   ;;  %s3226_s18 = smov 8  }
  0x9b   : > { %s2570_s13 = sshll.u32 %s3625_s22, 4  ;;  %p3858_p3 = scmp.ne.s32.totalorder %s3841_s23, 0 }
  0x9c   : > { %s3633_s14 = scalar_lea.vmem [#allocation11], %s2570_s13 }
  0x9d   : > { %545 = vadd.xlane.f32.xlu0 %v544_v3 }
 0x126   : > { %v543_v4 = vpop.xlane.xlu0 %542 }
 0x127   : > { %v548_v5 = vmul.f32 0.03125, %v543_v4 }
 0x129   : > { %v550_v6 = vsub.f32 %v3474_v0, %v548_v5 }
 0x12a   : > { %v546_v7 = vpop.xlane.xlu0 %545 }
 0x12b   : > { %v549_v8 = vmul.f32 0.03125, %v546_v7  ;;  %v552_v9 = vmul.f32 %v550_v6, %v550_v6 }
 0x12d   : > { %v551_v10 = vsub.f32 %v3476_v1, %v549_v8  ;;  %v554_v11 = vsel %vm540_vm0, %v552_v9, 0.0 }
 0x12e   : > { %555 = vadd.xlane.f32.xlu1 %v554_v11 }
 0x12f   : > { %v553_v12 = vmul.f32 %v551_v10, %v551_v10 }
 0x131   : > { %v557_v13 = vsel %vm540_vm0, %v553_v12, 0.0 }
 0x132   : > { %558 = vadd.xlane.f32.xlu1 %v557_v13 }
 0x1bb   : > { %v556_v20 = vpop.xlane.xlu1 %555 }
 0x1bc   : > { %v560_v21 = vmul.f32 0.03125, %v556_v20 }
 0x1be   : > { %v562_v22 = vadd.f32 1e-05, %v560_v21 }
 0x1bf   : > { %v559_v23 = vpop.xlane.xlu1 %558 }
 0x1c0   : > { %2943 = vrsqrt.f32 %v562_v22  ;;  %v561_v24 = vmul.f32 0.03125, %v559_v23 }
 0x1c2   : > { %v563_v25 = vadd.f32 1e-05, %v561_v24 }
 0x1c4   : > { %2945 = vrsqrt.f32 %v563_v25 }
 0x1ca   : > { %v2944_v26 = vpop.eup %2943 }
 0x1cb   : > { %v566_v28 = vmul.f32 %v2944_v26, %v550_v6 }
 0x1cd   : > { %v574_v30 = vmul.f32 %v2574_v27, %v566_v28 }
 0x1ce   : > { %v2946_v31 = vpop.eup %2945 }
 0x1cf   : > { %v567_v32 = vmul.f32 %v2946_v31, %v551_v10  ;;  %v582_v33 = vadd.f32 %v2575_v29, %v574_v30 }
 0x1d1   : > { %v575_v34 = vmul.f32 %v2574_v27, %v567_v32  ;;  %2691 = vmatprep.mubr.msk.f32.mxu0 %vm540_vm0, %v582_v33 }
 0x1d3   : > { %v583_v35 = vadd.f32 %v2575_v29, %v575_v34 }
 0x1d5   : > { %2692 = vmatmul.mubr.msk.f32.vlgmr.msra.gmra.mrb[0].mxu0 %vm540_vm0, %v583_v35 }
 0x1d6   : > { %2716 = vmatprep.mubr.msk.f32.mxu0 %vm3214_vm1, %v3213_v36 }
 0x2a8   : > { %v2693_v38 = vpop.f32.mrb[0].mxu0 }
 0x2a9   : > { %v667_v39 = vpop.f32.mrb[1].mxu0  ;;  %v3524_v41 = vadd.f32 %v2693_v38, %v2576_v37 }
 0x2aa   : > { %v3515_v40 = vadd.f32 %v2576_v37, %v667_v39 }
 0x2ac   : > { %677 = vrot.lane.b32.xlu0 %v3515_v40, %s3215_s20 }
 0x2b0   : > { %845 = vrot.lane.b32.xlu0 %v3515_v40, %s3216_s28 }
 0x2b4   : > { %1012 = vrot.lane.b32.xlu0 %v3515_v40, %s3217_s24 }
 0x2b8   : > { %1179 = vrot.lane.b32.xlu0 %v3515_v40, %s3218_s10 }
 0x2bc   : > { %1364 = vrot.lane.b32.xlu0 %v3524_v41, %s3215_s20 }
 0x2c0   : > { %1529 = vrot.lane.b32.xlu0 %v3524_v41, %s3219_s16 }
 0x2c4   : > { %1696 = vrot.lane.b32.xlu0 %v3524_v41, %s3220_s26 }
 0x2c8   : > { %1863 = vrot.lane.b32.xlu0 %v3524_v41, %s3221_s21 }
 0x31e   : > { %v678_v42 = vpop.permute.xlu0 %677 }
 0x31f   : > { %2695 = vmatpush3.xpose.msk.msra.mxu1 %vm679_vm2, %v678_v42 }
 0x320   : > { %2699 = vmatprep.subr.mxu1 %v3213_v36 }
 0x322   : > { %2697 = vmatmul.mubr.msk.f32.vlgmr.msra.gmra.mrb[0].mxu1 %vm679_vm2, %v3515_v40  ;;  %v846_v43 = vpop.permute.xlu0 %845 }
 0x323   : > { %2701 = vmatprep.mubr.msk.f32.mxu1 %vm3214_vm1, %v3213_v36 }
 0x326   : > { %v1013_v44 = vpop.permute.xlu0 %1012 }
 0x327   : > { %2715 = vmatpush3.xpose.msk.msra.mxu0 %vm679_vm2, %v1013_v44 }
 0x328   : > { %2724 = vmatprep.subr.mxu0 %v3213_v36 }
 0x32a   : > { %v1180_v56 = vpop.permute.xlu0 %1179 }
 0x32e   : > { %v1365_v59 = vpop.permute.xlu0 %1364 }
 0x332   : > { %v1530_v62 = vpop.permute.xlu0 %1529 }
 0x336   : > { %v1697_v4 = vpop.permute.xlu0 %1696 }
 0x33a   : > { %v1864_v6 = vpop.permute.xlu0 %1863 }
 0x3f5   : > { %v750_v45 = vpop.f32.mrb[0].mxu1 }
 0x3f6   : > { %v754_v46 = vmul.f32 0.35355338, %v750_v45  ;;  %v2698_v47 = vpop.f32.mrb[1].mxu1 }
 0x3f8   : > { %v755_v48 = vsel %vm679_vm2, %v754_v46, -inf }
 0x3f9   : > { %756 = vmax.xlane.f32.xlu1 %v755_v48 }
 0x40a   : > { %767 = vrot.lane.b32.xlu1 %v3515_v40, %s3222_s15 }
 0x40e   : > { %843 = vrot.lane.b32.xlu1 %v3515_v40, %s3219_s16  ;;  %s3856_s16 = sld [smem:[#allocation27_spill]] }
 0x486   : > { %v757_v49 = vpop.xlane.xlu1 %756 }
 0x487   : > { %v758_v50 = vsub.f32 %v754_v46, %v757_v49 }
 0x489   : > { %v759_v51 = vmul.f32 1.442695, %v758_v50 }
 0x48a   : > { %v768_v52 = vpop.permute.xlu1 %767 }
 0x48b   : > { %2947 = vpow2.f32 %v759_v51  ;;  %2700 = vmatpush3.msra.mxu1 %v768_v52 }
 0x48c   : > { %2704 = vmatprep.subr.mxu1 %v3213_v36 }
 0x48e   : > { %v844_v55 = vpop.permute.xlu1 %843 }
 0x495   : > { %v2948_v53 = vpop.eup %2947 }
 0x496   : > { %v761_v54 = vsel %vm679_vm2, %v2948_v53, 0.0 }
 0x497   : > { %762 = vadd.xlane.f32.xlu1 %v761_v54 }
 0x4a8   : > { %1010 = vrot.lane.b32.xlu1 %v3515_v40, %s3220_s26  ;;  %s3857_s26 = smov %s3856_s16 }
 0x4ac   : > { %1177 = vrot.lane.b32.xlu1 %v3515_v40, %s3221_s21 }
 0x4b0   : > { %1531 = vrot.lane.b32.xlu1 %v3524_v41, %s3216_s28  ;;  %s2625_s28 = sshll.u32 %s3328_s17, 8 }
 0x4b1   : > { %s3715_s21 = scalar_lea.hbm %s3856_s16, %s2625_s28 }
 0x4b4   : > { %1698 = vrot.lane.b32.xlu1 %v3524_v41, %s3217_s24  ;;  %s3227_s24 = smov 16  }
 0x4b8   : > { %1865 = vrot.lane.b32.xlu1 %v3524_v41, %s3218_s10 }
 0x524   : > { %v763_v57 = vpop.xlane.xlu1 %762 }
 0x525   : > { %2949 = vrcp.f32 %v763_v57 }
 0x528   : > { %v1011_v58 = vpop.permute.xlu1 %1010 }
 0x529   : > { %2717 = vmatmul.mubr.msk.f32.vlgmr.msra.gmra.mrb[2].mxu0 %vm679_vm2, %v1011_v58 }
 0x52a   : > { %2725 = vmatpush3.xpose.msk.msra.mxu0 %vm679_vm2, %v1180_v56  ;;  %2726 = vmatprep.mubr.msk.f32.mxu0 %vm3214_vm1, %v3213_v36 }
 0x52b   : > { %2734 = vmatprep.subr.mxu0 %v3213_v36 }
 0x52c   : > { %v1178_v60 = vpop.permute.xlu1 %1177 }
 0x52d   : > { %2727 = vmatmul.mubr.msk.f32.vlgmr.msra.gmra.mrb[4].mxu0 %vm679_vm2, %v1178_v60 }
 0x52e   : > { %2735 = vmatpush3.xpose.msk.msra.mxu0 %vm679_vm2, %v1365_v59  ;;  %2736 = vmatprep.mubr.msk.f32.mxu0 %vm3214_vm1, %v3213_v36 }
 0x52f   : > { %v2950_v61 = vpop.eup %2949  ;;  %2744 = vmatprep.subr.mxu0 %v3213_v36 }
 0x530   : > { %v3566_v63 = vmul.f32 %v2950_v61, %v2948_v53  ;;  %v1532_v2 = vpop.permute.xlu1 %1531 }
 0x531   : > { %2737 = vmatmul.mubr.msk.f32.vlgmr.msra.gmra.mrb[6].mxu0 %vm679_vm2, %v3524_v41 }
 0x532   : > { %2745 = vmatpush3.xpose.msk.msra.mxu0 %vm679_vm2, %v1532_v2  ;;  %2702 = vmatmul.mubr.msk.f32.vlgmr.msra.gmra.mrb[2].mxu1 %vm679_vm2, %v3566_v63 }
 0x533   : > { %2705 = vmatpush3.xpose.msk.msra.mxu1 %vm679_vm2, %v846_v43  ;;  %2746 = vmatprep.mubr.msk.f32.mxu0 %vm3214_vm1, %v3213_v36 }
 0x534   : > { %v1699_v3 = vpop.permute.xlu1 %1698  ;;  %2754 = vmatprep.subr.mxu0 %v3213_v36  ;;  %2706 = vmatprep.mubr.msk.f32.mxu1 %vm3214_vm1, %v3213_v36 }
 0x535   : > { %2747 = vmatmul.mubr.msk.f32.vlgmr.msra.gmra.mrb[8].mxu0 %vm679_vm2, %v1530_v62  ;;  %2709 = vmatprep.subr.mxu1 %v3213_v36 }
 0x536   : > { %2755 = vmatpush3.xpose.msk.msra.mxu0 %vm679_vm2, %v1699_v3  ;;  %2707 = vmatmul.mubr.msk.f32.vlgmr.msra.gmra.mrb[4].mxu1 %vm679_vm2, %v844_v55 }
 0x537   : > { %2756 = vmatprep.mubr.msk.f32.mxu0 %vm3214_vm1, %v3213_v36  ;;  %2764 = vmatprep.subr.mxu0 %v3213_v36 }
 0x538   : > { %v1866_v5 = vpop.permute.xlu1 %1865  ;;  %2711 = vmatprep.mubr.msk.f32.mxu1 %vm3214_vm1, %v3213_v36 }
 0x539   : > { %2757 = vmatmul.mubr.msk.f32.vlgmr.msra.gmra.mrb[10].mxu0 %vm679_vm2, %v1697_v4 }
 0x53a   : > { %2765 = vmatpush3.xpose.msk.msra.mxu0 %vm679_vm2, %v1866_v5  ;;  %2766 = vmatprep.mubr.msk.f32.mxu0 %vm3214_vm1, %v3213_v36 }
 0x53d   : > { %2767 = vmatmul.mubr.msk.f32.vlgmr.msra.gmra.mrb[12].mxu0 %vm679_vm2, %v1864_v6 }
 0x5fc   : > { %v1084_v7 = vpop.f32.mrb[2].mxu0 }
 0x5fd   : > { %v1088_v8 = vmul.f32 0.35355338, %v1084_v7  ;;  %v2718_v9 = vpop.f32.mrb[3].mxu0 }
 0x5ff   : > { %v1089_v10 = vsel %vm679_vm2, %v1088_v8, -inf }
 0x600   : > { %1090 = vmax.xlane.f32.xlu0 %v1089_v10  ;;  %v1251_v11 = vpop.f32.mrb[4].mxu0 }
 0x601   : > { %v1255_v12 = vmul.f32 0.35355338, %v1251_v11  ;;  %v2728_v13 = vpop.f32.mrb[5].mxu0 }
 0x603   : > { %v1256_v14 = vsel %vm679_vm2, %v1255_v12, -inf }
 0x604   : > { %1257 = vmax.xlane.f32.xlu0 %v1256_v14  ;;  %v1436_v15 = vpop.f32.mrb[6].mxu0 }
 0x605   : > { %v1440_v16 = vmul.f32 0.35355338, %v1436_v15  ;;  %v3595_v17 = vpop.f32.mrb[2].mxu1  ;;  %v2738_v18 = vpop.f32.mrb[7].mxu0 }
 0x606   : > { %v2703_v19 = vpop.f32.mrb[3].mxu1 }
 0x607   : > { %v1441_v20 = vsel %vm679_vm2, %v1440_v16, -inf }
 0x608   : > { %1442 = vmax.xlane.f32.xlu0 %v1441_v20  ;;  %v1603_v21 = vpop.f32.mrb[8].mxu0 }
 0x609   : > { %v917_v22 = vpop.f32.mrb[4].mxu1  ;;  %v2748_v23 = vpop.f32.mrb[9].mxu0  ;;  %v1607_v26 = vmul.f32 0.35355338, %v1603_v21 }
 0x60a   : > { %v921_v24 = vmul.f32 0.35355338, %v917_v22  ;;  %v2708_v25 = vpop.f32.mrb[5].mxu1 }
 0x60b   : > { %v1608_v33 = vsel %vm679_vm2, %v1607_v26, -inf }
 0x60c   : > { %v1770_v27 = vpop.f32.mrb[10].mxu0  ;;  %v922_v28 = vsel %vm679_vm2, %v921_v24, -inf }
 0x60d   : > { %v1774_v29 = vmul.f32 0.35355338, %v1770_v27  ;;  %923 = vmax.xlane.f32.xlu1 %v922_v28  ;;  %v2758_v30 = vpop.f32.mrb[11].mxu0 }
 0x60f   : > { %v1775_v31 = vsel %vm679_vm2, %v1774_v29, -inf }
 0x610   : > { %1776 = vmax.xlane.f32.xlu0 %v1775_v31  ;;  %v1937_v32 = vpop.f32.mrb[12].mxu0 }
 0x611   : > { %v1941_v34 = vmul.f32 0.35355338, %v1937_v32  ;;  %1609 = vmax.xlane.f32.xlu1 %v1608_v33  ;;  %v2768_v35 = vpop.f32.mrb[13].mxu0 }
 0x613   : > { %v1942_v37 = vsel %vm679_vm2, %v1941_v34, -inf }
 0x615   : > { %1943 = vmax.xlane.f32.xlu1 %v1942_v37 }
 0x68d   : > { %v1091_v38 = vpop.xlane.xlu0 %1090 }
 0x68e   : > { %v1092_v39 = vsub.f32 %v1088_v8, %v1091_v38 }
 0x690   : > { %v1093_v42 = vmul.f32 1.442695, %v1092_v39 }
 0x691   : > { %v1258_v43 = vpop.xlane.xlu0 %1257 }
 0x692   : > { %2951 = vpow2.f32 %v1093_v42  ;;  %v1259_v44 = vsub.f32 %v1255_v12, %v1258_v43 }
 0x694   : > { %v1260_v45 = vmul.f32 1.442695, %v1259_v44 }
 0x695   : > { %v1443_v46 = vpop.xlane.xlu0 %1442 }
 0x696   : > { %2953 = vpow2.f32 %v1260_v45  ;;  %v1444_v47 = vsub.f32 %v1440_v16, %v1443_v46 }
 0x698   : > { %v1445_v48 = vmul.f32 1.442695, %v1444_v47 }
 0x69a   : > { %2955 = vpow2.f32 %v1445_v48  ;;  %v924_v49 = vpop.xlane.xlu1 %923 }
 0x69b   : > { %v925_v58 = vsub.f32 %v921_v24, %v924_v49 }
 0x69c   : > { %v3602_v50 = vpop.eup %2951 }
 0x69d   : > { %v1777_v51 = vpop.xlane.xlu0 %1776  ;;  %v1095_v52 = vsel %vm679_vm2, %v3602_v50, 0.0  ;;  %v926_v3 = vmul.f32 1.442695, %v925_v58  ;;  %v2051_v58 = vld [vmem:[%s3811_s5 + $0x18] sm:$0xff] }
 0x69e   : > { %v1778_v53 = vsub.f32 %v1774_v29, %v1777_v51  ;;  %v1610_v54 = vpop.xlane.xlu1 %1609  ;;  %1096 = vadd.xlane.f32.xlu1 %v1095_v52 }
 0x69f   : > { %v1611_v55 = vsub.f32 %v1607_v26, %v1610_v54  ;;  %v2049_v54 = vld [vmem:[%s3811_s5 + $0x8] sm:$0xff] }
 0x6a0   : > { %v3606_v56 = vpop.eup %2953  ;;  %v1779_v57 = vmul.f32 1.442695, %v1778_v53  ;;  %v2048_v53 = vld [vmem:[%s3811_s5] sm:$0xff] }
 0x6a1   : > { %v1612_v59 = vmul.f32 1.442695, %v1611_v55  ;;  %v1262_v60 = vsel %vm679_vm2, %v3606_v56, 0.0 }
 0x6a2   : > { %2957 = vpow2.f32 %v1779_v57  ;;  %v1944_v61 = vpop.xlane.xlu1 %1943  ;;  %1263 = vadd.xlane.f32.xlu0 %v1262_v60  ;;  %v2050_v57 = vld [vmem:[%s3811_s5 + $0x10] sm:$0xff] }
 0x6a3   : > { %2959 = vpow2.f32 %v1612_v59  ;;  %v1945_v62 = vsub.f32 %v1941_v34, %v1944_v61  ;;  %v2819_v60 = vpack.c.bf16 %v2051_v58, %v2050_v57 }
 0x6a4   : > { %v2956_v2 = vpop.eup %2955 }
 0x6a5   : > { %v1946_v4 = vmul.f32 1.442695, %v1945_v62  ;;  %v1447_v5 = vsel %vm679_vm2, %v2956_v2, 0.0 }
 0x6a6   : > { %1448 = vadd.xlane.f32.xlu1 %v1447_v5 }
 0x6a7   : > { %2961 = vpow2.f32 %v1946_v4 }
 0x6a8   : > { %2963 = vpow2.f32 %v926_v3 }
 0x6ac   : > { %v2958_v6 = vpop.eup %2957 }
 0x6ad   : > { %v2960_v7 = vpop.eup %2959  ;;  %v1781_v8 = vsel %vm679_vm2, %v2958_v6, 0.0 }
 0x6ae   : > { %1782 = vadd.xlane.f32.xlu1 %v1781_v8  ;;  %v1614_v9 = vsel %vm679_vm2, %v2960_v7, 0.0 }
 0x6af   : > { %1615 = vadd.xlane.f32.xlu0 %v1614_v9 }
 0x6b1   : > { %v2962_v10 = vpop.eup %2961 }
 0x6b2   : > { %v1948_v11 = vsel %vm679_vm2, %v2962_v10, 0.0  ;;  %v2964_v12 = vpop.eup %2963 }
 0x6b3   : > { %1949 = vadd.xlane.f32.xlu0 %v1948_v11  ;;  %v928_v13 = vsel %vm679_vm2, %v2964_v12, 0.0 }
 0x6b7   : > { %929 = vadd.xlane.f32.xlu0 %v928_v13 }
 0x6bf   : > { %934 = vrot.lane.b32.xlu1 %v3515_v40, %s3223_s29 }
 0x6c3   : > { %1268 = vrot.lane.b32.xlu1 %v3515_v40, %s3224_s27 }
 0x6c7   : > { %1453 = vrot.lane.b32.xlu1 %v3524_v41, %s3222_s15  ;;  %s3228_s15 = smov 24  }
 0x6cb   : > { %1620 = vrot.lane.b32.xlu1 %v3524_v41, %s3223_s29  ;;  %s2394_s29 = scalar_lea.sflag [#allocation12], %s3625_s22 }
 0x6cd   : > { %1101 = vrot.lane.b32.xlu0 %v3515_v40, %s3225_s19 }
 0x6cf   : > { %1954 = vrot.lane.b32.xlu1 %v3524_v41, %s3224_s27 }
 0x6d1   : > { %1787 = vrot.lane.b32.xlu0 %v3524_v41, %s3225_s19  ;;  %s3229_s19 = smov [#allocation11]  }
 0x6d2   : > { %s3103_s9 = sshll.u32 %s3229_s19, 4  ;;  %s3104_s9 = int_to_ptr.vmem [resolvable:$false] %s3103_s9 }
 0x6d3   : > { %s3105_s25 = scalar_lea.vmem %s3104_s9, 512 }
 0x72b   : > { %v1097_v14 = vpop.xlane.xlu1 %1096 }
 0x72f   : > { %v1264_v16 = vpop.xlane.xlu0 %1263 }
 0x733   : > { %v1449_v15 = vpop.xlane.xlu1 %1448 }
 0x734   : > { %2965 = vrcp.f32 %v1449_v15 }
 0x73b   : > { %v1783_v18 = vpop.xlane.xlu1 %1782 }
 0x73c   : > { %2967 = vrcp.f32 %v1783_v18  ;;  %v1616_v19 = vpop.xlane.xlu0 %1615 }
 0x73d   : > { %2969 = vrcp.f32 %v1616_v19 }
 0x73e   : > { %v2966_v22 = vpop.eup %2965 }
 0x73f   : > { %v935_v20 = vpop.permute.xlu1 %934  ;;  %v1451_v24 = vmul.f32 %v2966_v22, %v2956_v2 }
 0x740   : > { %2710 = vmatpush3.msra.mxu1 %v935_v20  ;;  %v1950_v21 = vpop.xlane.xlu0 %1949 }
 0x741   : > { %2971 = vrcp.f32 %v1950_v21  ;;  %2719 = vmatprep.subr.mxu1 %v3213_v36 }
 0x742   : > { %2973 = vrcp.f32 %v1097_v14 }
 0x743   : > { %v1269_v39 = vpop.permute.xlu1 %1268 }
 0x744   : > { %v930_v40 = vpop.xlane.xlu0 %929 }
 0x745   : > { %2975 = vrcp.f32 %v930_v40  ;;  %v2604_v40 = vld [vmem:[%s3812_s6] ss:$0 sm:$0xff] }
 0x746   : > { %v2968_v41 = vpop.eup %2967  ;;  %2977 = vrcp.f32 %v1264_v16 }
 0x747   : > { %v2970_v23 = vpop.eup %2969  ;;  %v1785_v26 = vmul.f32 %v2968_v41, %v2958_v6  ;;  %v1454_v47 = vpop.permute.xlu1 %1453 }
 0x748   : > { %v1618_v25 = vmul.f32 %v2970_v23, %v2960_v7  ;;  %v1102_v43 = vpop.permute.xlu0 %1101 }
 0x74a   : > { %v1619_v27 = vadd.f32 %v1618_v25, %v1451_v24 }
 0x74b   : > { %v2972_v28 = vpop.eup %2971  ;;  %v1621_v48 = vpop.permute.xlu1 %1620 }
 0x74c   : > { %v1786_v29 = vadd.f32 %v1785_v26, %v1619_v27  ;;  %v1952_v30 = vmul.f32 %v2972_v28, %v2962_v10  ;;  %v2974_v31 = vpop.eup %2973  ;;  %v1788_v49 = vpop.permute.xlu0 %1787 }
 0x74d   : > { %v1099_v38 = vmul.f32 %v2974_v31, %v3602_v50 }
 0x74e   : > { %v1953_v32 = vadd.f32 %v1952_v30, %v1786_v29 }
 0x74f   : > { %v2976_v33 = vpop.eup %2975  ;;  %v1955_v50 = vpop.permute.xlu1 %1954 }
 0x750   : > { %v2030_v34 = vmul.f32 0.25, %v1953_v32  ;;  %v932_v35 = vmul.f32 %v2976_v33, %v2964_v12  ;;  %v2978_v37 = vpop.eup %2977 }
 0x751   : > { %v1266_v44 = vmul.f32 %v2978_v37, %v3606_v56  ;;  %v2815_v56 = vpack.c.bf16 %v2049_v54, %v2048_v53  ;;  %v2186_v37 = vld [vmem:[#allocation2] sm:$0xff] }
 0x752   : > { %v933_v42 = vadd.f32 %v932_v35, %v3566_v63  ;;  %2712 = vmatmul.mubr.msk.f32.vlgmr.msra.gmra.mrb[6].mxu1 %vm679_vm2, %v932_v35  ;;  %2603 = vst.msk [vmem:[%s3633_s14 + $0x8] sm:$0xff] %vm679_vm2, %v2030_v34  ;;  %v2608_v53 = vld [vmem:[%s3814_s8] ss:$0 sm:$0xff] }
 0x753   : > { %2720 = vmatpush3.msra.mxu1 %v1102_v43  ;;  %2721 = vmatprep.mubr.msk.f32.mxu1 %vm3214_vm1, %v3213_v36  ;;  %v2189_v43 = vld [vmem:[#allocation2 + $0x18] sm:$0xff] }
 0x754   : > { %v1100_v45 = vadd.f32 %v1099_v38, %v933_v42  ;;  %2729 = vmatprep.subr.mxu1 %v3213_v36  ;;  %2816 = vmatprep.subr.bf16.mxu0 %v2815_v56  ;;  %v2188_v42 = vld [vmem:[#allocation2 + $0x10] sm:$0xff] }
 0x755   : > { %2818 = vmatpush3.bf16.msra.mxu0 %v2815_v56 }
 0x756   : > { %v1267_v63 = vadd.f32 %v1266_v44, %v1100_v45  ;;  %2722 = vmatmul.mubr.msk.f32.vlgmr.msra.gmra.mrb[8].mxu1 %vm679_vm2, %v1099_v38  ;;  %2820 = vmatprep.subr.bf16.mxu0 %v2819_v60  ;;  %v2187_v38 = vld [vmem:[#allocation2 + $0x8] sm:$0xff] }
 0x757   : > { %2730 = vmatpush3.msra.mxu1 %v1269_v39  ;;  %2731 = vmatprep.mubr.msk.f32.mxu1 %vm3214_vm1, %v3213_v36  ;;  %v2823_v39 = vpack.c.bf16 %v2187_v38, %v2186_v37 }
 0x758   : > { %v1344_v46 = vmul.f32 0.25, %v1267_v63  ;;  %2739 = vmatprep.subr.mxu1 %v3213_v36 }
 0x759   : > { %2822 = vmatpush3.bf16.msra.mxu0 %v2819_v60  ;;  %v2293_v60 = vld [vmem:[#allocation7 + $0x8] sm:$0xff] }
 0x75a   : > { %2732 = vmatmul.mubr.msk.f32.vlgmr.msra.gmra.mrb[10].mxu1 %vm679_vm2, %v1266_v44  ;;  %1345 = vst.msk [vmem:[%s3633_s14] sm:$0xff] %vm679_vm2, %v1344_v46  ;;  %v2827_v44 = vpack.c.bf16 %v2189_v43, %v2188_v42 }
 0x75b   : > { %2740 = vmatpush3.msra.mxu1 %v1454_v47  ;;  %2741 = vmatprep.mubr.msk.f32.mxu1 %vm3214_vm1, %v3213_v36 }
 0x75c   : > { %2749 = vmatprep.subr.mxu1 %v3213_v36 }
 0x75e   : > { %2742 = vmatmul.mubr.msk.f32.vlgmr.msra.gmra.mrb[12].mxu1 %vm679_vm2, %v1451_v24 }
 0x75f   : > { %2750 = vmatpush3.msra.mxu1 %v1621_v48  ;;  %2751 = vmatprep.mubr.msk.f32.mxu1 %vm3214_vm1, %v3213_v36 }
 0x760   : > { %2759 = vmatprep.subr.mxu1 %v3213_v36 }
 0x762   : > { %2752 = vmatmul.mubr.msk.f32.vlgmr.msra.gmra.mrb[14].mxu1 %vm679_vm2, %v1618_v25 }
 0x763   : > { %2760 = vmatpush3.msra.mxu1 %v1788_v49  ;;  %2761 = vmatprep.mubr.msk.f32.mxu1 %vm3214_vm1, %v3213_v36 }
 0x764   : > { %2769 = vmatprep.subr.mxu1 %v3213_v36 }
 0x766   : > { %2762 = vmatmul.mubr.msk.f32.vlgmr.msra.gmra.mrb[16].mxu1 %vm679_vm2, %v1785_v26 }
 0x767   : > { %2770 = vmatpush3.msra.mxu1 %v1955_v50  ;;  %2771 = vmatprep.mubr.msk.f32.mxu1 %vm3214_vm1, %v3213_v36 }
 0x768   : > { %2824 = vmatprep.subr.bf16.mxu1 %v2823_v39 }
 0x76a   : > { %2772 = vmatmul.mubr.msk.f32.vlgmr.msra.gmra.mrb[18].mxu1 %vm679_vm2, %v1952_v30 }
 0x76b   : > { %2826 = vmatpush3.bf16.msra.mxu1 %v2823_v39 }
 0x76c   : > { %2828 = vmatprep.subr.bf16.mxu1 %v2827_v44 }
 0x76f   : > { %2830 = vmatpush3.bf16.msra.mxu1 %v2827_v44 }
 0x825   : > { %v1006_v51 = vpop.f32.mrb[6].mxu1 }
 0x826   : > { %1347 = vrot.lane.b32.xlu0 %v1006_v51, %s3226_s18  ;;  %v2713_v52 = vpop.f32.mrb[7].mxu1  ;;  %v2607_v51 = vld [vmem:[%s3813_s7] ss:$0 sm:$0xff] }
 0x829   : > { %v1173_v55 = vpop.f32.mrb[8].mxu1 }
 0x82a   : > { %1351 = vrot.lane.b32.xlu1 %v1173_v55, %s3227_s24  ;;  %v2723_v36 = vpop.f32.mrb[9].mxu1 }
 0x82d   : > { %v1340_v59 = vpop.f32.mrb[10].mxu1 }
 0x82e   : > { %1355 = vrot.lane.b32.xlu1 %v1340_v59, %s3228_s15  ;;  %v2733_v61 = vpop.f32.mrb[11].mxu1  ;;  %v2292_v59 = vld [vmem:[#allocation7] sm:$0xff] }
 0x82f   : > { %v2831_v61 = vpack.c.bf16 %v2293_v60, %v2292_v59 }
 0x831   : > { %v1525_v62 = vpop.f32.mrb[12].mxu1  ;;  %2832 = vmatprep.subr.bf16.mxu0 %v2831_v61 }
 0x832   : > { %v2743_v2 = vpop.f32.mrb[13].mxu1 }
 0x833   : > { %v2295_v2 = vld [vmem:[#allocation7 + $0x18] sm:$0xff] }
 0x835   : > { %v1692_v3 = vpop.f32.mrb[14].mxu1 }
 0x836   : > { %2034 = vrot.lane.b32.xlu0 %v1692_v3, %s3226_s18  ;;  %v2753_v4 = vpop.f32.mrb[15].mxu1 }
 0x837   : > { %v2609_v4 = vld [vmem:[#allocation5] ss:$0 sm:$0xff] }
 0x839   : > { %v1859_v5 = vpop.f32.mrb[16].mxu1 }
 0x83a   : > { %2038 = vrot.lane.b32.xlu0 %v1859_v5, %s3227_s24  ;;  %v2763_v6 = vpop.f32.mrb[17].mxu1 }
 0x83d   : > { %v2026_v7 = vpop.f32.mrb[18].mxu1 }
 0x83e   : > { %2042 = vrot.lane.b32.xlu1 %v2026_v7, %s3228_s15  ;;  %v2773_v8 = vpop.f32.mrb[19].mxu1  ;;  %s2423_s15 = sshll.u32 %s3633_s14, 4  ;;  %s3718_s15 = int_to_ptr.vmem [resolvable:$true] %s2423_s15 }
 0x83f   : > { %s3099_s27 = scalar_lea.vmem %s3718_s15, 256  ;;  %p3106_p8 = scmp.lt.s32.totalorder %s3718_s15, %s3104_s9 }
 0x840   : > { %p3100_p2 = scmp.ne.s32.totalorder %s3718_s15, %s3099_s27  ;;  %p3107_p11 = scmp.lt.s32.totalorder %s3105_s25, %s3099_s27 }
 0x842   : > { %p3101_p4 = pnand %p3100_p2, %p3858_p3  ;;  %p3108_p13 = por %p3107_p11, %p3106_p8 }
 0x844   : > { %p3102_p7 = pneg %p3101_p4 }
 0x846   : > { %p3109_p1 = pnand %p3108_p13, %p3102_p7 }
 0x898   : > { %v1348_v9 = vpop.permute.xlu0 %1347 }
 0x899   : > { %v1358_v11 = vsel %vm679_vm2, %v3595_v17, %v1348_v9 }
 0x89c   : > { %v1352_v10 = vpop.permute.xlu1 %1351 }
 0x89d   : > { %v1360_v12 = vsel %vm1359_vm3, %v1358_v11, %v1352_v10 }
 0x8a0   : > { %v1356_v13 = vpop.permute.xlu1 %1355 }
 0x8a1   : > { %v1362_v14 = vsel %vm1361_vm4, %v1360_v12, %v1356_v13 }
 0x8a2   : > { %2782 = vmatprep.mubr.msk.f32.mxu0 %vm540_vm0, %v1362_v14 }
 0x8a8   : > { %v2035_v15 = vpop.permute.xlu0 %2034 }
 0x8a9   : > { %v2045_v18 = vsel %vm679_vm2, %v1525_v62, %v2035_v15  ;;  %v2294_v62 = vld [vmem:[#allocation7 + $0x10] sm:$0xff] }
 0x8aa   : > { %v2835_v3 = vpack.c.bf16 %v2295_v2, %v2294_v62 }
 0x8ac   : > { %v2039_v16 = vpop.permute.xlu0 %2038 }
 0x8ad   : > { %v2046_v19 = vsel %vm1359_vm3, %v2045_v18, %v2039_v16 }
 0x8b0   : > { %v2043_v20 = vpop.permute.xlu1 %2042 }
 0x8b1   : > { %v2047_v21 = vsel %vm1361_vm4, %v2046_v19, %v2043_v20 }
 0x8b2   : > { %2783 = vmatmul.mubr.msk.f32.vlgmr.msra.gmra.mrb[14].mxu0 %vm540_vm0, %v2047_v21 }
 0x8b3   : > { %2834 = vmatpush3.bf16.msra.mxu0 %v2831_v61 }
 0x8b4   : > { %2836 = vmatprep.subr.bf16.mxu0 %v2835_v3 }
 0x8b7   : > { %2838 = vmatpush3.bf16.msra.mxu0 %v2835_v3 }
 0x985   : > { %v2784_v22 = vpop.f32.mrb[14].mxu0 }
 0x986   : > { %v2137_v17 = vadd.f32 %v2784_v22, %v2604_v40  ;;  %v2131_v41 = vpop.f32.mrb[15].mxu0 }
 0x987   : > { %v2132_v23 = vadd.f32 %v2604_v40, %v2131_v41 }
 0x988   : > { %v3686_v24 = vadd.f32 %v2137_v17, %v3476_v1 }
 0x989   : > { %v3689_v25 = vadd.f32 %v2132_v23, %v3474_v0 }
 0x98a   : > { %v2147_v26 = vsel %vm540_vm0, %v3686_v24, 0.0 }
 0x98b   : > { %2148 = vadd.xlane.f32.xlu1 %v2147_v26  ;;  %v2144_v27 = vsel %vm540_vm0, %v3689_v25, 0.0 }
 0x98c   : > { %2145 = vadd.xlane.f32.xlu0 %v2144_v27 }
 0xa18   : > { %v2149_v28 = vpop.xlane.xlu1 %2148 }
 0xa19   : > { %v2151_v29 = vmul.f32 0.03125, %v2149_v28  ;;  %v2146_v30 = vpop.xlane.xlu0 %2145 }
 0xa1a   : > { %v2150_v31 = vmul.f32 0.03125, %v2146_v30 }
 0xa1b   : > { %v2153_v32 = vsub.f32 %v3686_v24, %v2151_v29 }
 0xa1c   : > { %v2152_v1 = vsub.f32 %v3689_v25, %v2150_v31 }
 0xa1d   : > { %v2155_v34 = vmul.f32 %v2153_v32, %v2153_v32 }
 0xa1e   : > { %v2154_v33 = vmul.f32 %v2152_v1, %v2152_v1 }
 0xa1f   : > { %v2159_v35 = vsel %vm540_vm0, %v2155_v34, 0.0 }
 0xa20   : > { %v2156_v0 = vsel %vm540_vm0, %v2154_v33, 0.0 }
 0xa21   : > { %2157 = vadd.xlane.f32.xlu0 %v2156_v0 }
 0xa25   : > { %2160 = vadd.xlane.f32.xlu0 %v2159_v35 }
 0xaae   : > { %v2158_v45 = vpop.xlane.xlu0 %2157 }
 0xaaf   : > { %v2162_v63 = vmul.f32 0.03125, %v2158_v45 }
 0xab1   : > { %v2164_v46 = vadd.f32 1e-05, %v2162_v63 }
 0xab2   : > { %v2161_v47 = vpop.xlane.xlu0 %2160 }
 0xab3   : > { %2979 = vrsqrt.f32 %v2164_v46  ;;  %v2163_v48 = vmul.f32 0.03125, %v2161_v47 }
 0xab5   : > { %v2165_v49 = vadd.f32 1e-05, %v2163_v48 }
 0xab7   : > { %2981 = vrsqrt.f32 %v2165_v49 }
 0xabd   : > { %v2980_v50 = vpop.eup %2979 }
 0xabe   : > { %v2168_v52 = vmul.f32 %v2980_v50, %v2152_v1 }
 0xac0   : > { %v2176_v54 = vmul.f32 %v2607_v51, %v2168_v52 }
 0xac1   : > { %v2982_v55 = vpop.eup %2981 }
 0xac2   : > { %v2169_v56 = vmul.f32 %v2982_v55, %v2153_v32  ;;  %v2184_v36 = vadd.f32 %v2608_v53, %v2176_v54 }
 0xac4   : > { %v2177_v57 = vmul.f32 %v2607_v51, %v2169_v56  ;;  %2793 = vmatprep.mubr.msk.f32.mxu1 %vm540_vm0, %v2184_v36 }
 0xac6   : > { %v2185_v58 = vadd.f32 %v2608_v53, %v2177_v57 }
 0xac8   : > { %2794 = vmatmul.mubr.msk.f32.vlgmr.msra.gmra.mrb[20].mxu1 %vm540_vm0, %v2185_v58 }
 0xb9b   : > { %v2795_v5 = vpop.f32.mrb[20].mxu1 }
 0xb9c   : > { %v2275_v6 = vadd.f32 %v2795_v5, %v2609_v4  ;;  %v2269_v7 = vpop.f32.mrb[21].mxu1 }
 0xb9d   : > { %v2270_v8 = vadd.f32 %v2609_v4, %v2269_v7 }
 0xb9e   : > { %v2282_v9 = vmul.f32 1.442695, %v2275_v6  ;;  %vm2279_vm5 = vcmp.gt.f32.partialorder %v2275_v6, 0.0 }
 0xb9f   : > { %v2280_v10 = vmul.f32 1.442695, %v2270_v8  ;;  %vm2278_vm6 = vcmp.gt.f32.partialorder %v2270_v8, 0.0 }
 0xba0   : > { %2983 = vpow2.f32 %v2282_v9 }
 0xba1   : > { %2985 = vpow2.f32 %v2280_v10 }
 0xbaa   : > { %v2984_v11 = vpop.eup %2983 }
 0xbab   : > { %v2986_v12 = vpop.eup %2985  ;;  %v2613_v13 = vadd.f32 -1.0, %v2984_v11 }
 0xbac   : > { %v2612_v14 = vadd.f32 -1.0, %v2986_v12 }
 0xbad   : > { %v2287_v15 = vmul.f32 1.6732632, %v2613_v13 }
 0xbae   : > { %v2286_v16 = vmul.f32 1.6732632, %v2612_v14 }
 0xbaf   : > { %v2289_v18 = vsel %vm2279_vm5, %v2275_v6, %v2287_v15 }
 0xbb0   : > { %v2288_v19 = vsel %vm2278_vm6, %v2270_v8, %v2286_v16  ;;  %v2291_v21 = vmul.f32 1.050701, %v2289_v18 }
 0xbb1   : > { %v2290_v20 = vmul.f32 1.050701, %v2288_v19 }
 0xbb3   : > { %2804 = vmatprep.mubr.msk.f32.mxu0 %vm540_vm0, %v2290_v20 }
 0xbb4   : > { %2805 = vmatmul.mubr.msk.f32.vlgmr.msra.gmra.mrb[16].mxu0 %vm540_vm0, %v2291_v21 }
 0xbb5   : > { %3112 = shalt.err (!%p3109_p1)
}
 0xbb6   : > { %s3113_s14 = scalar_lea.hbm %s3715_s21, 256  ;;  %s3117_s10 = scalar_lea.hbm %s3857_s26, 512 }
 0xbb7   : > { %p3114_p0 = scmp.ne.s32.totalorder %s3715_s21, %s3113_s14  ;;  %p3118_p9 = scmp.lt.u32.totalorder %s3715_s21, %s3857_s26 }
 0xbb8   : > { %p3119_p12 = scmp.lt.u32.totalorder %s3117_s10, %s3113_s14  ;;  %p3121_p2 = scmp.lt.u32.totalorder %s3113_s14, %s3715_s21 }
 0xbb9   : > { %p3115_p6 = pnand %p3114_p0, %p3858_p3 }
 0xbba   : > { %p3120_p10 = por %p3119_p12, %p3118_p9 }
 0xbbb   : > { %p3116_p5 = pneg %p3115_p6 }
 0xbbc   : > { %p3122_p4 = por %p3121_p2, %p3120_p10 }
 0xbbe   : > { %p3123_p7 = pnand %p3122_p4, %p3116_p5 }
 0xbc0   : > { %3126 = shalt.err (!%p3123_p7)
}
 0xbc1   : > { %s3230_s27 = smov 128   ;;  %v2614_v40 = vld [vmem:[#allocation8] ss:$0 sm:$0xff]  ;;  %s520_s9 = scalar_lea.vmem [#allocation10], %s2570_s13 }
 0xbc2   : > { %2856 = dma.vmem_to_hbm [thread:$0]  (%p3858_p3), %s3718_s15, 256, %s3715_s21, %s2394_s29, %s3230_s27, %s3230_s27, %s3226_s18  }
 0xbc3   : > { %s2407_s25 = sshll.u32 %s520_s9, 4  ;;  %s3859_s24 = sld [smem:[#allocation26_spill]]  ;;  %s3758_s25 = int_to_ptr.vmem [resolvable:$true] %s2407_s25 }
 0xbc4   : > { %s2389_s13 = scalar_lea.sflag [#allocation4], %s3625_s22  ;;  %s3127_s21 = scalar_lea.vmem %s3758_s25, 256 }
 0xbc5   : > { %p3128_p8 = scmp.ne.s32.totalorder %s3758_s25, %s3127_s21  ;;  %s3231_s17 = smov [#allocation10]  }
 0xbc6   : > { %s3131_s15 = sshll.u32 %s3231_s17, 4  ;;  %s3132_s15 = int_to_ptr.vmem [resolvable:$false] %s3131_s15 }
 0xbc7   : > { %p3129_p11 = pnand %p3128_p8, %p3858_p3  ;;  %p3134_p1 = scmp.lt.s32.totalorder %s3758_s25, %s3132_s15 }
 0xbc9   : > { %s3756_s10 = scalar_lea.hbm %s3859_s24, %s2625_s28  ;;  %p3130_p13 = pneg %p3129_p11 }
 0xbca   : > { %s3133_s28 = scalar_lea.vmem %s3132_s15, 512 }
 0xbcb   : > { %p3135_p0 = scmp.lt.s32.totalorder %s3133_s28, %s3127_s21 }
 0xbcd   : > { %p3136_p6 = por %p3135_p0, %p3134_p1 }
 0xbcf   : > { %p3137_p5 = pnand %p3136_p6, %p3130_p13 }
 0xc87   : > { %v2806_v22 = vpop.f32.mrb[16].mxu0 }
 0xc88   : > { %v2381_v17 = vadd.f32 %v2806_v22, %v2614_v40  ;;  %v2375_v41 = vpop.f32.mrb[17].mxu0 }
 0xc89   : > { %v2376_v23 = vadd.f32 %v2614_v40, %v2375_v41 }
 0xc8a   : > { %v2385_v26 = vadd.f32 %v2381_v17, %v3686_v24 }
 0xc8b   : > { %v2384_v27 = vadd.f32 %v2376_v23, %v3689_v25 }
 0xc8c   : > { %2387 = vst.msk [vmem:[%s520_s9 + $0x8] sm:$0xff] %vm540_vm0, %v2385_v26 }
 0xc8d   : > { %2386 = vst.msk [vmem:[%s520_s9] sm:$0xff] %vm540_vm0, %v2384_v27 }
 0xc8e   : > { %3140 = shalt.err (!%p3137_p5)
}
 0xc8f   : > { %s3141_s29 = scalar_lea.hbm %s3756_s10, 256  ;;  %s3145_s9 = scalar_lea.hbm %s3859_s24, 512 }
 0xc90   : > { %p3142_p9 = scmp.ne.s32.totalorder %s3756_s10, %s3141_s29  ;;  %p3146_p2 = scmp.lt.u32.totalorder %s3756_s10, %s3859_s24 }
 0xc91   : > { %p3147_p4 = scmp.lt.u32.totalorder %s3145_s9, %s3141_s29  ;;  %p3149_p8 = scmp.lt.u32.totalorder %s3141_s29, %s3756_s10 }
 0xc92   : > { %p3143_p12 = pnand %p3142_p9, %p3858_p3 }
 0xc93   : > { %p3148_p7 = por %p3147_p4, %p3146_p2 }
 0xc94   : > { %p3144_p10 = pneg %p3143_p12 }
 0xc95   : > { %p3150_p11 = por %p3149_p8, %p3148_p7 }
 0xc97   : > { %p3151_p13 = pnand %p3150_p11, %p3144_p10 }
 0xc99   : > { %3154 = shalt.err (!%p3151_p13)
}
 0xc9a   : > { %2855 = dma.vmem_to_hbm [thread:$0]  (%p3858_p3), %s3758_s25, 256, %s3756_s10, %s2389_s13, %s3230_s27, %s3230_s27, %s3226_s18  }
 0xc9b PF: > { %s3860_s21 = sld [smem:[#allocation20_spill]]  ;;  %s3861_s17 = sld [smem:[#allocation18_spill]] }
 0xc9c   : > { %s3862_s15 = sld [smem:[#allocation23_spill]] }
 0xca1   : > { %p2887_p1 = scmp.ge.s32.totalorder %s3860_s21, 2  ;;  %s2438_s28 = sand.u32 1, %s3861_s17  }
 0xca2   : > { %p3863_p0 = scmp.ne.s32.totalorder %s3862_s15, 0  ;;  %s2439_s29 = scalar_lea.sflag [#allocation4], %s2438_s28 }
 0xca4   : > { %p2873_p6 = pnand %p2887_p1, %p3863_p0 }
 0xca6   : > { %3184 = dma.done.wait (!%p2873_p6), %s2439_s29, 256  }
 0xca7   : > { %3186 = vsyncadd (!%p2873_p6), %s2439_s29, 4294967040  ;;  %s2448_s23 = scalar_lea.sflag [#allocation12], %s2438_s28 }
 0xca8   : > { %3188 = dma.done.wait (!%p2873_p6), %s2448_s23, 256  }
 0xca9   : > { %3190 = vsyncadd (!%p2873_p6), %s2448_s23, 4294967040  ;;  %s3864_s16 = sld [smem:[#allocation21_spill]]  ;;  %s3865_s22 = sld [smem:[#allocation19_spill]] }
 0xcaa   : > { %s3866_s15 = sld [smem:[#allocation22_spill]]  ;;  %s3867_s29 = smov %s3197_s30 }
 0xcaf   : > { %p31_p3 = scmp.ge.s32.totalorder %s3864_s16, 4   ;;  %s3868_s30 = smov %s3865_s22 }
 0xcb1   :  { %33 = sbr.rel (!%p31_p3) target bundleno = 13 (0xd), region = 142 }
 0xcb8   :  { %2453 = vsyncpa [#allocation3], 1 }
 0xcb9   :  { %2455 = vsyncpa [#allocation3 + $0x1], 1 }
 0xcba   :  { %2456 = vsyncpa [#allocation6], 1 }
 0xcbb   :  { %2457 = vsyncpa [#allocation9], 1 }
 0xcbc   :  { %2458 = vsyncpa [#allocation4], 1 }
 0xcbd   :  { %2460 = vsyncpa [#allocation4 + $0x1], 1 }
 0xcbe   :  { %2461 = vsyncpa [#allocation12], 1 }
 0xcbf   :  { %2463 = vsyncpa [#allocation12 + $0x1], 1 }

</bundles_post_ra>
